<compile_context>
chip_gen: v6e
topology: v6e:2x2x1
jax: 0.10.0
libtpu: 0.0.40
codegen_flags: <defaults>
</compile_context>

<pallas_src>
import functools

import jax
import jax.numpy as jnp
from jax import lax
from jax.experimental import pallas as pl
from jax.experimental.pallas import tpu as pltpu

EPS = 1e-5
# Scoped-VMEM cap: safe on v5e (16 MiB default / 128 MiB phys), v6e (32/128)
# and v7x (32/64).  Tiles below are sized well under this.
_VMEM_LIMIT = 32 * 1024 * 1024


# ----------------------------------------------------------------------------
# tile-size helpers (compile-time Python)
# ----------------------------------------------------------------------------
def _pick_row_tile(hout, wout, max_lanes=1024):
    """Output-row tile TH with TH | Hout and (TH*Wout) % 128 == 0 (lane-dense
    writeback).  Falls back to the full height (always legal)."""
    cands = [t for t in range(1, hout + 1)
             if hout % t == 0 and (t * wout) % 128 == 0]
    if not cands:
        return hout
    small = [t for t in cands if t * wout <= max_lanes]
    return max(small) if small else min(cands)


def _pick_lane_tile(hw, max_lanes=2048):
    """Lane tile T with T | HW and T % 128 == 0; falls back to HW."""
    cands = [t for t in range(128, hw + 1, 128) if hw % t == 0]
    if not cands:
        return hw
    small = [t for t in cands if t <= max_lanes]
    return max(small) if small else min(cands)


# ----------------------------------------------------------------------------
# phase 1 (stride == 1): fused conv + per-image sum / sum-of-squares
# ----------------------------------------------------------------------------
def _conv_stats_kernel(x_ref, w_ref, conv_ref, stats_ref, *, KH, KW, Wout, TH):
    # x_ref:    (Cin, Hp, Wp)    whole zero-padded image, resident per batch elem
    # w_ref:    (KH*KW, F, Cin)  all filter taps, resident for the whole grid
    # conv_ref: (F, TH*Wout)     raw conv tile (channels on sublanes, spatial on lanes)
    # stats_ref:(F, 2)           per-image [sum, sum_sq] accumulator (resident over h)
    f = conv_ref.shape[0]
    row0 = pl.program_id(1) * TH

    @pl.when(pl.program_id(1) == 0)
    def _init():
        stats_ref[...] = jnp.zeros_like(stats_ref)

    # One dynamic sublane-sliced load of the TH(+halo) input rows per step; all
    # further slicing is static, so only bread-and-butter Mosaic ops are used.
    slab = x_ref[:, pl.ds(row0, TH + KH - 1), :]            # (Cin, TH+KH-1, Wp)

    s_acc = jnp.zeros((f, 1), jnp.float32)
    sq_acc = jnp.zeros((f, 1), jnp.float32)
    for t in range(TH):                                     # unrolled small MXU dots
        row_acc = jnp.zeros((f, Wout), jnp.float32)
        for kh in range(KH):
            line = slab[:, t + kh, :]                       # (Cin, Wp)
            for kw in range(KW):
                win = line[:, kw:kw + Wout]                 # (Cin, Wout)
                row_acc = row_acc + jnp.dot(
                    w_ref[kh * KW + kw], win,
                    preferred_element_type=jnp.float32)
        conv_ref[:, t * Wout:(t + 1) * Wout] = row_acc
        s_acc = s_acc + jnp.sum(row_acc, axis=1, keepdims=True)
        sq_acc = sq_acc + jnp.sum(row_acc * row_acc, axis=1, keepdims=True)

    stats_ref[...] += jnp.concatenate([s_acc, sq_acc], axis=1)


# ----------------------------------------------------------------------------
# phase 1 (stride > 1 fallback): tiled im2col GEMM + stats
# ----------------------------------------------------------------------------
def _im2col_stats_kernel(p_ref, w_ref, conv_ref, stats_ref):
    # p_ref: (K, T) patch tile; w_ref: (F, K); conv_ref: (F, T); stats_ref: (F, 2)
    @pl.when(pl.program_id(1) == 0)
    def _init():
        stats_ref[...] = jnp.zeros_like(stats_ref)

    acc = jnp.dot(w_ref[...], p_ref[...], preferred_element_type=jnp.float32)
    conv_ref[...] = acc
    stats_ref[...] += jnp.concatenate(
        [jnp.sum(acc, axis=1, keepdims=True),
         jnp.sum(acc * acc, axis=1, keepdims=True)], axis=1)


# ----------------------------------------------------------------------------
# phase 2: y = x * scale + shift  (BatchNorm folded to one FMA per element)
# ----------------------------------------------------------------------------
def _bn_apply_kernel(x_ref, ss_ref, o_ref):
    # x_ref/o_ref: (F, T); ss_ref: (F, 2) with columns (scale, shift)
    o_ref[...] = (x_ref[...] * ss_ref[:, 0:1] + ss_ref[:, 1:2]).astype(o_ref.dtype)


# ----------------------------------------------------------------------------
# wrapper
# ----------------------------------------------------------------------------
@functools.partial(jax.jit, static_argnames=("stride", "padding"))
def conv2d_batchnorm(x_nchw, weight, bias, gamma, beta, *, stride, padding):
    """Conv2d(stride, padding, bias) -> BatchNorm2d (training-mode batch stats).

    x_nchw: (N, Cin, H, W); weight: (F, Cin, KH, KW).  The conv bias is
    accepted for parity but never used: BN centering cancels it exactly.
    """
    del bias                                   # cancelled exactly by BN centering
    N, Cin, H, W = x_nchw.shape
    F, _, KH, KW = weight.shape
    Hout = (H + 2 * padding - KH) // stride + 1
    Wout = (W + 2 * padding - KW) // stride + 1
    HW = Hout * Wout
    M = N * HW

    x = x_nchw.astype(jnp.float32)
    xp = jnp.pad(x, ((0, 0), (0, 0), (padding, padding), (padding, padding)))
    Hp, Wp = H + 2 * padding, W + 2 * padding

    # batch axis "parallel" (sharded over v7x's two TCs); the inner axis carries
    # the per-image stats accumulation -> "arbitrary".
    p1_params = pltpu.CompilerParams(
        dimension_semantics=("parallel", "arbitrary"),
        vmem_limit_bytes=_VMEM_LIMIT)

    if stride == 1:
        # Fused conv: the padded image of one batch element stays resident in
        # VMEM while its output-row tiles are produced, so the input is read
        # from HBM exactly once (no KH*KW im2col blow-up in HBM).
        # TODO(synk): for images too large to keep one padded (Cin,Hp,Wp) slab
        # in VMEM, switch to a manually DMA'd row-strip with halo.
        w_taps = jnp.transpose(weight, (2, 3, 0, 1)).reshape(KH * KW, F, Cin)
        w_taps = w_taps.astype(jnp.float32)
        TH = _pick_row_tile(Hout, Wout)
        conv_raw, stats = pl.pallas_call(
            functools.partial(_conv_stats_kernel, KH=KH, KW=KW, Wout=Wout, TH=TH),
            grid=(N, Hout // TH),
            in_specs=[
                pl.BlockSpec((None, Cin, Hp, Wp), lambda n, h: (n, 0, 0, 0)),
                pl.BlockSpec((KH * KW, F, Cin), lambda n, h: (0, 0, 0)),
            ],
            out_specs=(
                pl.BlockSpec((None, F, TH * Wout), lambda n, h: (n, 0, h)),
                pl.BlockSpec((None, F, 2), lambda n, h: (n, 0, 0)),
            ),
            out_shape=(
                jax.ShapeDtypeStruct((N, F, HW), jnp.float32),
                jax.ShapeDtypeStruct((N, F, 2), jnp.float32),
            ),
            compiler_params=p1_params,
        )(xp, w_taps)
    else:
        # Fallback for strided convs: wrapper-side im2col (K = KH*KW*Cin), then
        # a tiled GEMM kernel producing the same (N, F, HW) + stats layout.
        cols = []
        for kh in range(KH):
            for kw in range(KW):
                cols.append(
                    xp[:, :, kh:kh + (Hout - 1) * stride + 1:stride,
                          kw:kw + (Wout - 1) * stride + 1:stride])
        patches = jnp.stack(cols, axis=1).reshape(N, KH * KW * Cin, HW)
        patches = patches.astype(jnp.float32)
        w2 = jnp.transpose(weight, (0, 2, 3, 1)).reshape(F, KH * KW * Cin)
        w2 = w2.astype(jnp.float32)
        K = KH * KW * Cin
        T = _pick_lane_tile(HW, max_lanes=512)
        conv_raw, stats = pl.pallas_call(
            _im2col_stats_kernel,
            grid=(N, HW // T),
            in_specs=[
                pl.BlockSpec((None, K, T), lambda n, j: (n, 0, j)),
                pl.BlockSpec((F, K), lambda n, j: (0, 0)),
            ],
            out_specs=(
                pl.BlockSpec((None, F, T), lambda n, j: (n, 0, j)),
                pl.BlockSpec((None, F, 2), lambda n, j: (n, 0, 0)),
            ),
            out_shape=(
                jax.ShapeDtypeStruct((N, F, HW), jnp.float32),
                jax.ShapeDtypeStruct((N, F, 2), jnp.float32),
            ),
            compiler_params=p1_params,
        )(patches, w2)

    # ---- finalize: tiny [F]-sized math, folded into one scale/shift ----------
    totals = jnp.sum(stats, axis=0)                         # (F, 2)
    mean = totals[:, 0] / M
    var = jnp.maximum(totals[:, 1] / M - mean * mean, 0.0)
    scale = gamma.astype(jnp.float32) * lax.rsqrt(var + EPS)
    shift = beta.astype(jnp.float32) - mean * scale
    scale_shift = jnp.stack([scale, shift], axis=1)         # (F, 2)

    # ---- phase 2: lane-dense elementwise normalize, fully parallel ------------
    T2 = _pick_lane_tile(HW)
    out_flat = pl.pallas_call(
        _bn_apply_kernel,
        grid=(N, HW // T2),
        in_specs=[
            pl.BlockSpec((None, F, T2), lambda n, j: (n, 0, j)),
            pl.BlockSpec((F, 2), lambda n, j: (0, 0)),
        ],
        out_specs=pl.BlockSpec((None, F, T2), lambda n, j: (n, 0, j)),
        out_shape=jax.ShapeDtypeStruct((N, F, HW), jnp.float32),
        compiler_params=pltpu.CompilerParams(
            dimension_semantics=("parallel", "parallel"),
            vmem_limit_bytes=_VMEM_LIMIT),
    )(conv_raw, scale_shift)

    return out_flat.reshape(N, F, Hout, Wout)               # already NCHW


# ----------------------------------------------------------------------------
# pure-JAX reference (includes the conv bias; BN cancels it, outputs match)
# ----------------------------------------------------------------------------
def _reference(x_nchw, weight, bias, gamma, beta, *, stride, padding):
    conv = lax.conv_general_dilated(
        x_nchw.astype(jnp.float32),
        weight.astype(jnp.float32),
        window_strides=(stride, stride),
        padding=[(padding, padding), (padding, padding)],
        dimension_numbers=("NCHW", "OIHW", "NCHW"),
    ) + bias.reshape(1, -1, 1, 1)
    mean = jnp.mean(conv, axis=(0, 2, 3), keepdims=True)
    var = jnp.mean((conv - mean) ** 2, axis=(0, 2, 3), keepdims=True)
    norm = (conv - mean) * lax.rsqrt(var + EPS)
    return norm * gamma.reshape(1, -1, 1, 1) + beta.reshape(1, -1, 1, 1)


if __name__ == "__main__":
    # conv2dBatchNorm(in_channels=4, n_filters=8, k_size=3, stride=1, padding=1, bias=True)
    N, Cin, H, W = 2, 4, 16, 16
    F, KH, KW = 8, 3, 3
    stride, padding = 1, 1

    key = jax.random.PRNGKey(0)
    kx, kw, kb, kg, kbeta = jax.random.split(key, 5)

    x = jax.random.normal(kx, (N, Cin, H, W), dtype=jnp.float32)
    weight = jax.random.normal(kw, (F, Cin, KH, KW), dtype=jnp.float32) * 0.1
    bias = jax.random.normal(kb, (F,), dtype=jnp.float32) * 0.1
    gamma = 1.0 + 0.1 * jax.random.normal(kg, (F,), dtype=jnp.float32)
    beta = 0.1 * jax.random.normal(kbeta, (F,), dtype=jnp.float32)

    out = conv2d_batchnorm(x, weight, bias, gamma, beta, stride=stride, padding=padding)
    out = jax.block_until_ready(out)

    ref = _reference(x, weight, bias, gamma, beta, stride=stride, padding=padding)
    assert out.shape == (N, F, H, W), out.shape
    assert jnp.allclose(out, ref, atol=1e-4, rtol=1e-4), float(
        jnp.max(jnp.abs(out - ref))
    )

    print("KERNEL_OK")
</pallas_src>

<mosaic_0001>
module attributes {stable_mosaic.version = 11 : i64} {
  func.func @_conv_stats_kernel(%arg0: i32, %arg1: i32, %arg2: memref<1x4x18x18xf32, #tpu.memory_space<vmem>>, %arg3: memref<9x8x4xf32, #tpu.memory_space<vmem>>, %arg4: memref<1x8x256xf32, #tpu.memory_space<vmem>>, %arg5: memref<1x8x2xf32, #tpu.memory_space<vmem>>) attributes {dimension_semantics = [#tpu.dimension_semantics<parallel>, #tpu.dimension_semantics<arbitrary>], iteration_bounds = array<i64: 2, 1>, scalar_prefetch = 0 : i64, scratch_operands = 0 : i64, tpu.core_type = #tpu.core_type<tc>, window_params = [{transform_indices = @transform_0, window_bounds = array<i64: 1, 4, 18, 18>}, {pipeline_mode = #tpu.pipeline_mode<synchronous>, transform_indices = @transform_1, window_bounds = array<i64: 9, 8, 4>}, {transform_indices = @transform_2, window_bounds = array<i64: 1, 8, 256>}, {transform_indices = @transform_3, window_bounds = array<i64: 1, 8, 2>}]} {
    %c16_i32 = arith.constant 16 : i32
    %0 = arith.muli %arg1, %c16_i32 : i32
    %c0_i32 = arith.constant 0 : i32
    %1 = arith.cmpi eq, %arg1, %c0_i32 : i32
    %2 = arith.extui %1 : i1 to i32
    %c0_i32_0 = arith.constant 0 : i32
    %3 = arith.cmpi ne, %2, %c0_i32_0 : i32
    scf.if %3 {
      %cst_659 = arith.constant 0.000000e+00 : f32
      %1008 = vector.broadcast %cst_659 : f32 to vector<8x2xf32>
      %c0_660 = arith.constant 0 : index
      %c0_661 = arith.constant 0 : index
      %c0_662 = arith.constant 0 : index
      %1009 = vector.load %arg5[%c0_660, %c0_661, %c0_662] : memref<1x8x2xf32, #tpu.memory_space<vmem>>, vector<1x8x2xf32>
      %1010 = vector.shape_cast %1009 : vector<1x8x2xf32> to vector<8x2xf32>
      %1011 = vector.shape_cast %1008 : vector<8x2xf32> to vector<1x8x2xf32>
      tpu.vector_store %arg5[%c0_660, %c0_661, %c0_662], %1011 {strides = array<i32>} : memref<1x8x2xf32, #tpu.memory_space<vmem>>, vector<1x8x2xf32>,
    } else {
    }
    %c0 = arith.constant 0 : index
    %c0_1 = arith.constant 0 : index
    %4 = arith.index_cast %0 : i32 to index
    %c0_2 = arith.constant 0 : index
    %5 = vector.load %arg2[%c0, %c0_1, %4, %c0_2] : memref<1x4x18x18xf32, #tpu.memory_space<vmem>>, vector<1x4x18x18xf32>
    %6 = vector.shape_cast %5 : vector<1x4x18x18xf32> to vector<4x18x18xf32>
    %cst = arith.constant 0.000000e+00 : f32
    %7 = vector.broadcast %cst : f32 to vector<8x1xf32>
    %cst_3 = arith.constant 0.000000e+00 : f32
    %8 = vector.broadcast %cst_3 : f32 to vector<8x1xf32>
    %cst_4 = arith.constant 0.000000e+00 : f32
    %9 = vector.broadcast %cst_4 : f32 to vector<8x16xf32>
    %10 = vector.extract_strided_slice %6 {offsets = [0, 0, 0], sizes = [4, 1, 18], strides = [1, 1, 1]} : vector<4x18x18xf32> to vector<4x1x18xf32>
    %11 = vector.shape_cast %10 : vector<4x1x18xf32> to vector<4x18xf32>
    %12 = vector.extract_strided_slice %11 {offsets = [0, 0], sizes = [4, 16], strides = [1, 1]} : vector<4x18xf32> to vector<4x16xf32>
    %c0_5 = arith.constant 0 : index
    %c0_6 = arith.constant 0 : index
    %c0_7 = arith.constant 0 : index
    %13 = vector.load %arg3[%c0_5, %c0_6, %c0_7] : memref<9x8x4xf32, #tpu.memory_space<vmem>>, vector<1x8x4xf32>
    %14 = vector.shape_cast %13 : vector<1x8x4xf32> to vector<8x4xf32>
    %cst_8 = arith.constant dense<0.000000e+00> : vector<8x16xf32>
    %15 = tpu.matmul %14, %12, %cst_8 {dimension_numbers = #tpu.dot_dimension_numbers<[1], [0], [0], [1], [0, 0, 1, 1], [], []>} : vector<8x4xf32>, vector<4x16xf32>, vector<8x16xf32> -> vector<8x16xf32>
    %16 = arith.addf %9, %15 : vector<8x16xf32>
    %17 = vector.extract_strided_slice %11 {offsets = [0, 1], sizes = [4, 16], strides = [1, 1]} : vector<4x18xf32> to vector<4x16xf32>
    %c1 = arith.constant 1 : index
    %c0_9 = arith.constant 0 : index
    %c0_10 = arith.constant 0 : index
    %18 = vector.load %arg3[%c1, %c0_9, %c0_10] : memref<9x8x4xf32, #tpu.memory_space<vmem>>, vector<1x8x4xf32>
    %19 = vector.shape_cast %18 : vector<1x8x4xf32> to vector<8x4xf32>
    %cst_11 = arith.constant dense<0.000000e+00> : vector<8x16xf32>
    %20 = tpu.matmul %19, %17, %cst_11 {dimension_numbers = #tpu.dot_dimension_numbers<[1], [0], [0], [1], [0, 0, 1, 1], [], []>} : vector<8x4xf32>, vector<4x16xf32>, vector<8x16xf32> -> vector<8x16xf32>
    %21 = arith.addf %16, %20 : vector<8x16xf32>
    %22 = vector.extract_strided_slice %11 {offsets = [0, 2], sizes = [4, 16], strides = [1, 1]} : vector<4x18xf32> to vector<4x16xf32>
    %c2 = arith.constant 2 : index
    %c0_12 = arith.constant 0 : index
    %c0_13 = arith.constant 0 : index
    %23 = vector.load %arg3[%c2, %c0_12, %c0_13] : memref<9x8x4xf32, #tpu.memory_space<vmem>>, vector<1x8x4xf32>
    %24 = vector.shape_cast %23 : vector<1x8x4xf32> to vector<8x4xf32>
    %cst_14 = arith.constant dense<0.000000e+00> : vector<8x16xf32>
    %25 = tpu.matmul %24, %22, %cst_14 {dimension_numbers = #tpu.dot_dimension_numbers<[1], [0], [0], [1], [0, 0, 1, 1], [], []>} : vector<8x4xf32>, vector<4x16xf32>, vector<8x16xf32> -> vector<8x16xf32>
    %26 = arith.addf %21, %25 : vector<8x16xf32>
    %27 = vector.extract_strided_slice %6 {offsets = [0, 1, 0], sizes = [4, 1, 18], strides = [1, 1, 1]} : vector<4x18x18xf32> to vector<4x1x18xf32>
    %28 = vector.shape_cast %27 : vector<4x1x18xf32> to vector<4x18xf32>
    %29 = vector.extract_strided_slice %28 {offsets = [0, 0], sizes = [4, 16], strides = [1, 1]} : vector<4x18xf32> to vector<4x16xf32>
    %c3 = arith.constant 3 : index
    %c0_15 = arith.constant 0 : index
    %c0_16 = arith.constant 0 : index
    %30 = vector.load %arg3[%c3, %c0_15, %c0_16] : memref<9x8x4xf32, #tpu.memory_space<vmem>>, vector<1x8x4xf32>
    %31 = vector.shape_cast %30 : vector<1x8x4xf32> to vector<8x4xf32>
    %cst_17 = arith.constant dense<0.000000e+00> : vector<8x16xf32>
    %32 = tpu.matmul %31, %29, %cst_17 {dimension_numbers = #tpu.dot_dimension_numbers<[1], [0], [0], [1], [0, 0, 1, 1], [], []>} : vector<8x4xf32>, vector<4x16xf32>, vector<8x16xf32> -> vector<8x16xf32>
    %33 = arith.addf %26, %32 : vector<8x16xf32>
    %34 = vector.extract_strided_slice %28 {offsets = [0, 1], sizes = [4, 16], strides = [1, 1]} : vector<4x18xf32> to vector<4x16xf32>
    %c4 = arith.constant 4 : index
    %c0_18 = arith.constant 0 : index
    %c0_19 = arith.constant 0 : index
    %35 = vector.load %arg3[%c4, %c0_18, %c0_19] : memref<9x8x4xf32, #tpu.memory_space<vmem>>, vector<1x8x4xf32>
    %36 = vector.shape_cast %35 : vector<1x8x4xf32> to vector<8x4xf32>
    %cst_20 = arith.constant dense<0.000000e+00> : vector<8x16xf32>
    %37 = tpu.matmul %36, %34, %cst_20 {dimension_numbers = #tpu.dot_dimension_numbers<[1], [0], [0], [1], [0, 0, 1, 1], [], []>} : vector<8x4xf32>, vector<4x16xf32>, vector<8x16xf32> -> vector<8x16xf32>
    %38 = arith.addf %33, %37 : vector<8x16xf32>
    %39 = vector.extract_strided_slice %28 {offsets = [0, 2], sizes = [4, 16], strides = [1, 1]} : vector<4x18xf32> to vector<4x16xf32>
    %c5 = arith.constant 5 : index
    %c0_21 = arith.constant 0 : index
    %c0_22 = arith.constant 0 : index
    %40 = vector.load %arg3[%c5, %c0_21, %c0_22] : memref<9x8x4xf32, #tpu.memory_space<vmem>>, vector<1x8x4xf32>
    %41 = vector.shape_cast %40 : vector<1x8x4xf32> to vector<8x4xf32>
    %cst_23 = arith.constant dense<0.000000e+00> : vector<8x16xf32>
    %42 = tpu.matmul %41, %39, %cst_23 {dimension_numbers = #tpu.dot_dimension_numbers<[1], [0], [0], [1], [0, 0, 1, 1], [], []>} : vector<8x4xf32>, vector<4x16xf32>, vector<8x16xf32> -> vector<8x16xf32>
    %43 = arith.addf %38, %42 : vector<8x16xf32>
    %44 = vector.extract_strided_slice %6 {offsets = [0, 2, 0], sizes = [4, 1, 18], strides = [1, 1, 1]} : vector<4x18x18xf32> to vector<4x1x18xf32>
    %45 = vector.shape_cast %44 : vector<4x1x18xf32> to vector<4x18xf32>
    %46 = vector.extract_strided_slice %45 {offsets = [0, 0], sizes = [4, 16], strides = [1, 1]} : vector<4x18xf32> to vector<4x16xf32>
    %c6 = arith.constant 6 : index
    %c0_24 = arith.constant 0 : index
    %c0_25 = arith.constant 0 : index
    %47 = vector.load %arg3[%c6, %c0_24, %c0_25] : memref<9x8x4xf32, #tpu.memory_space<vmem>>, vector<1x8x4xf32>
    %48 = vector.shape_cast %47 : vector<1x8x4xf32> to vector<8x4xf32>
    %cst_26 = arith.constant dense<0.000000e+00> : vector<8x16xf32>
    %49 = tpu.matmul %48, %46, %cst_26 {dimension_numbers = #tpu.dot_dimension_numbers<[1], [0], [0], [1], [0, 0, 1, 1], [], []>} : vector<8x4xf32>, vector<4x16xf32>, vector<8x16xf32> -> vector<8x16xf32>
    %50 = arith.addf %43, %49 : vector<8x16xf32>
    %51 = vector.extract_strided_slice %45 {offsets = [0, 1], sizes = [4, 16], strides = [1, 1]} : vector<4x18xf32> to vector<4x16xf32>
    %c7 = arith.constant 7 : index
    %c0_27 = arith.constant 0 : index
    %c0_28 = arith.constant 0 : index
    %52 = vector.load %arg3[%c7, %c0_27, %c0_28] : memref<9x8x4xf32, #tpu.memory_space<vmem>>, vector<1x8x4xf32>
    %53 = vector.shape_cast %52 : vector<1x8x4xf32> to vector<8x4xf32>
    %cst_29 = arith.constant dense<0.000000e+00> : vector<8x16xf32>
    %54 = tpu.matmul %53, %51, %cst_29 {dimension_numbers = #tpu.dot_dimension_numbers<[1], [0], [0], [1], [0, 0, 1, 1], [], []>} : vector<8x4xf32>, vector<4x16xf32>, vector<8x16xf32> -> vector<8x16xf32>
    %55 = arith.addf %50, %54 : vector<8x16xf32>
    %56 = vector.extract_strided_slice %45 {offsets = [0, 2], sizes = [4, 16], strides = [1, 1]} : vector<4x18xf32> to vector<4x16xf32>
    %c8 = arith.constant 8 : index
    %c0_30 = arith.constant 0 : index
    %c0_31 = arith.constant 0 : index
    %57 = vector.load %arg3[%c8, %c0_30, %c0_31] : memref<9x8x4xf32, #tpu.memory_space<vmem>>, vector<1x8x4xf32>
    %58 = vector.shape_cast %57 : vector<1x8x4xf32> to vector<8x4xf32>
    %cst_32 = arith.constant dense<0.000000e+00> : vector<8x16xf32>
    %59 = tpu.matmul %58, %56, %cst_32 {dimension_numbers = #tpu.dot_dimension_numbers<[1], [0], [0], [1], [0, 0, 1, 1], [], []>} : vector<8x4xf32>, vector<4x16xf32>, vector<8x16xf32> -> vector<8x16xf32>
    %60 = arith.addf %55, %59 : vector<8x16xf32>
    %c0_33 = arith.constant 0 : index
    %c0_34 = arith.constant 0 : index
    %c0_35 = arith.constant 0 : index
    %61 = vector.load %arg4[%c0_33, %c0_34, %c0_35] : memref<1x8x256xf32, #tpu.memory_space<vmem>>, vector<1x8x16xf32>
    %62 = vector.shape_cast %61 : vector<1x8x16xf32> to vector<8x16xf32>
    %63 = vector.shape_cast %60 : vector<8x16xf32> to vector<1x8x16xf32>
    tpu.vector_store %arg4[%c0_33, %c0_34, %c0_35], %63 {strides = array<i32>} : memref<1x8x256xf32, #tpu.memory_space<vmem>>, vector<1x8x16xf32>,
    %cst_36 = arith.constant dense<0.000000e+00> : vector<8xf32>
    %64 = vector.multi_reduction <add>, %60, %cst_36 [1] : vector<8x16xf32> to vector<8xf32>
    %65 = vector.shape_cast %64 : vector<8xf32> to vector<8x1xf32>
    %66 = arith.addf %7, %65 : vector<8x1xf32>
    %67 = arith.mulf %60, %60 : vector<8x16xf32>
    %cst_37 = arith.constant dense<0.000000e+00> : vector<8xf32>
    %68 = vector.multi_reduction <add>, %67, %cst_37 [1] : vector<8x16xf32> to vector<8xf32>
    %69 = vector.shape_cast %68 : vector<8xf32> to vector<8x1xf32>
    %70 = arith.addf %8, %69 : vector<8x1xf32>
    %cst_38 = arith.constant 0.000000e+00 : f32
    %71 = vector.broadcast %cst_38 : f32 to vector<8x16xf32>
    %72 = vector.extract_strided_slice %6 {offsets = [0, 1, 0], sizes = [4, 1, 18], strides = [1, 1, 1]} : vector<4x18x18xf32> to vector<4x1x18xf32>
    %73 = vector.shape_cast %72 : vector<4x1x18xf32> to vector<4x18xf32>
    %74 = vector.extract_strided_slice %73 {offsets = [0, 0], sizes = [4, 16], strides = [1, 1]} : vector<4x18xf32> to vector<4x16xf32>
    %c0_39 = arith.constant 0 : index
    %c0_40 = arith.constant 0 : index
    %c0_41 = arith.constant 0 : index
    %75 = vector.load %arg3[%c0_39, %c0_40, %c0_41] : memref<9x8x4xf32, #tpu.memory_space<vmem>>, vector<1x8x4xf32>
    %76 = vector.shape_cast %75 : vector<1x8x4xf32> to vector<8x4xf32>
    %cst_42 = arith.constant dense<0.000000e+00> : vector<8x16xf32>
    %77 = tpu.matmul %76, %74, %cst_42 {dimension_numbers = #tpu.dot_dimension_numbers<[1], [0], [0], [1], [0, 0, 1, 1], [], []>} : vector<8x4xf32>, vector<4x16xf32>, vector<8x16xf32> -> vector<8x16xf32>
    %78 = arith.addf %71, %77 : vector<8x16xf32>
    %79 = vector.extract_strided_slice %73 {offsets = [0, 1], sizes = [4, 16], strides = [1, 1]} : vector<4x18xf32> to vector<4x16xf32>
    %c1_43 = arith.constant 1 : index
    %c0_44 = arith.constant 0 : index
    %c0_45 = arith.constant 0 : index
    %80 = vector.load %arg3[%c1_43, %c0_44, %c0_45] : memref<9x8x4xf32, #tpu.memory_space<vmem>>, vector<1x8x4xf32>
    %81 = vector.shape_cast %80 : vector<1x8x4xf32> to vector<8x4xf32>
    %cst_46 = arith.constant dense<0.000000e+00> : vector<8x16xf32>
    %82 = tpu.matmul %81, %79, %cst_46 {dimension_numbers = #tpu.dot_dimension_numbers<[1], [0], [0], [1], [0, 0, 1, 1], [], []>} : vector<8x4xf32>, vector<4x16xf32>, vector<8x16xf32> -> vector<8x16xf32>
    %83 = arith.addf %78, %82 : vector<8x16xf32>
    %84 = vector.extract_strided_slice %73 {offsets = [0, 2], sizes = [4, 16], strides = [1, 1]} : vector<4x18xf32> to vector<4x16xf32>
    %c2_47 = arith.constant 2 : index
    %c0_48 = arith.constant 0 : index
    %c0_49 = arith.constant 0 : index
    %85 = vector.load %arg3[%c2_47, %c0_48, %c0_49] : memref<9x8x4xf32, #tpu.memory_space<vmem>>, vector<1x8x4xf32>
    %86 = vector.shape_cast %85 : vector<1x8x4xf32> to vector<8x4xf32>
    %cst_50 = arith.constant dense<0.000000e+00> : vector<8x16xf32>
    %87 = tpu.matmul %86, %84, %cst_50 {dimension_numbers = #tpu.dot_dimension_numbers<[1], [0], [0], [1], [0, 0, 1, 1], [], []>} : vector<8x4xf32>, vector<4x16xf32>, vector<8x16xf32> -> vector<8x16xf32>
    %88 = arith.addf %83, %87 : vector<8x16xf32>
    %89 = vector.extract_strided_slice %6 {offsets = [0, 2, 0], sizes = [4, 1, 18], strides = [1, 1, 1]} : vector<4x18x18xf32> to vector<4x1x18xf32>
    %90 = vector.shape_cast %89 : vector<4x1x18xf32> to vector<4x18xf32>
    %91 = vector.extract_strided_slice %90 {offsets = [0, 0], sizes = [4, 16], strides = [1, 1]} : vector<4x18xf32> to vector<4x16xf32>
    %c3_51 = arith.constant 3 : index
    %c0_52 = arith.constant 0 : index
    %c0_53 = arith.constant 0 : index
    %92 = vector.load %arg3[%c3_51, %c0_52, %c0_53] : memref<9x8x4xf32, #tpu.memory_space<vmem>>, vector<1x8x4xf32>
    %93 = vector.shape_cast %92 : vector<1x8x4xf32> to vector<8x4xf32>
    %cst_54 = arith.constant dense<0.000000e+00> : vector<8x16xf32>
    %94 = tpu.matmul %93, %91, %cst_54 {dimension_numbers = #tpu.dot_dimension_numbers<[1], [0], [0], [1], [0, 0, 1, 1], [], []>} : vector<8x4xf32>, vector<4x16xf32>, vector<8x16xf32> -> vector<8x16xf32>
    %95 = arith.addf %88, %94 : vector<8x16xf32>
    %96 = vector.extract_strided_slice %90 {offsets = [0, 1], sizes = [4, 16], strides = [1, 1]} : vector<4x18xf32> to vector<4x16xf32>
    %c4_55 = arith.constant 4 : index
    %c0_56 = arith.constant 0 : index
    %c0_57 = arith.constant 0 : index
    %97 = vector.load %arg3[%c4_55, %c0_56, %c0_57] : memref<9x8x4xf32, #tpu.memory_space<vmem>>, vector<1x8x4xf32>
    %98 = vector.shape_cast %97 : vector<1x8x4xf32> to vector<8x4xf32>
    %cst_58 = arith.constant dense<0.000000e+00> : vector<8x16xf32>
    %99 = tpu.matmul %98, %96, %cst_58 {dimension_numbers = #tpu.dot_dimension_numbers<[1], [0], [0], [1], [0, 0, 1, 1], [], []>} : vector<8x4xf32>, vector<4x16xf32>, vector<8x16xf32> -> vector<8x16xf32>
    %100 = arith.addf %95, %99 : vector<8x16xf32>
    %101 = vector.extract_strided_slice %90 {offsets = [0, 2], sizes = [4, 16], strides = [1, 1]} : vector<4x18xf32> to vector<4x16xf32>
    %c5_59 = arith.constant 5 : index
    %c0_60 = arith.constant 0 : index
    %c0_61 = arith.constant 0 : index
    %102 = vector.load %arg3[%c5_59, %c0_60, %c0_61] : memref<9x8x4xf32, #tpu.memory_space<vmem>>, vector<1x8x4xf32>
    %103 = vector.shape_cast %102 : vector<1x8x4xf32> to vector<8x4xf32>
    %cst_62 = arith.constant dense<0.000000e+00> : vector<8x16xf32>
    %104 = tpu.matmul %103, %101, %cst_62 {dimension_numbers = #tpu.dot_dimension_numbers<[1], [0], [0], [1], [0, 0, 1, 1], [], []>} : vector<8x4xf32>, vector<4x16xf32>, vector<8x16xf32> -> vector<8x16xf32>
    %105 = arith.addf %100, %104 : vector<8x16xf32>
    %106 = vector.extract_strided_slice %6 {offsets = [0, 3, 0], sizes = [4, 1, 18], strides = [1, 1, 1]} : vector<4x18x18xf32> to vector<4x1x18xf32>
    %107 = vector.shape_cast %106 : vector<4x1x18xf32> to vector<4x18xf32>
    %108 = vector.extract_strided_slice %107 {offsets = [0, 0], sizes = [4, 16], strides = [1, 1]} : vector<4x18xf32> to vector<4x16xf32>
    %c6_63 = arith.constant 6 : index
    %c0_64 = arith.constant 0 : index
    %c0_65 = arith.constant 0 : index
    %109 = vector.load %arg3[%c6_63, %c0_64, %c0_65] : memref<9x8x4xf32, #tpu.memory_space<vmem>>, vector<1x8x4xf32>
    %110 = vector.shape_cast %109 : vector<1x8x4xf32> to vector<8x4xf32>
    %cst_66 = arith.constant dense<0.000000e+00> : vector<8x16xf32>
    %111 = tpu.matmul %110, %108, %cst_66 {dimension_numbers = #tpu.dot_dimension_numbers<[1], [0], [0], [1], [0, 0, 1, 1], [], []>} : vector<8x4xf32>, vector<4x16xf32>, vector<8x16xf32> -> vector<8x16xf32>
    %112 = arith.addf %105, %111 : vector<8x16xf32>
    %113 = vector.extract_strided_slice %107 {offsets = [0, 1], sizes = [4, 16], strides = [1, 1]} : vector<4x18xf32> to vector<4x16xf32>
    %c7_67 = arith.constant 7 : index
    %c0_68 = arith.constant 0 : index
    %c0_69 = arith.constant 0 : index
    %114 = vector.load %arg3[%c7_67, %c0_68, %c0_69] : memref<9x8x4xf32, #tpu.memory_space<vmem>>, vector<1x8x4xf32>
    %115 = vector.shape_cast %114 : vector<1x8x4xf32> to vector<8x4xf32>
    %cst_70 = arith.constant dense<0.000000e+00> : vector<8x16xf32>
    %116 = tpu.matmul %115, %113, %cst_70 {dimension_numbers = #tpu.dot_dimension_numbers<[1], [0], [0], [1], [0, 0, 1, 1], [], []>} : vector<8x4xf32>, vector<4x16xf32>, vector<8x16xf32> -> vector<8x16xf32>
    %117 = arith.addf %112, %116 : vector<8x16xf32>
    %118 = vector.extract_strided_slice %107 {offsets = [0, 2], sizes = [4, 16], strides = [1, 1]} : vector<4x18xf32> to vector<4x16xf32>
    %c8_71 = arith.constant 8 : index
    %c0_72 = arith.constant 0 : index
    %c0_73 = arith.constant 0 : index
    %119 = vector.load %arg3[%c8_71, %c0_72, %c0_73] : memref<9x8x4xf32, #tpu.memory_space<vmem>>, vector<1x8x4xf32>
    %120 = vector.shape_cast %119 : vector<1x8x4xf32> to vector<8x4xf32>
    %cst_74 = arith.constant dense<0.000000e+00> : vector<8x16xf32>
    %121 = tpu.matmul %120, %118, %cst_74 {dimension_numbers = #tpu.dot_dimension_numbers<[1], [0], [0], [1], [0, 0, 1, 1], [], []>} : vector<8x4xf32>, vector<4x16xf32>, vector<8x16xf32> -> vector<8x16xf32>
    %122 = arith.addf %117, %121 : vector<8x16xf32>
    %c0_75 = arith.constant 0 : index
    %c0_76 = arith.constant 0 : index
    %c16 = arith.constant 16 : index
    %123 = vector.load %arg4[%c0_75, %c0_76, %c16] : memref<1x8x256xf32, #tpu.memory_space<vmem>>, vector<1x8x16xf32>
    %124 = vector.shape_cast %123 : vector<1x8x16xf32> to vector<8x16xf32>
    %125 = vector.shape_cast %122 : vector<8x16xf32> to vector<1x8x16xf32>
    tpu.vector_store %arg4[%c0_75, %c0_76, %c16], %125 {strides = array<i32>} : memref<1x8x256xf32, #tpu.memory_space<vmem>>, vector<1x8x16xf32>,
    %cst_77 = arith.constant dense<0.000000e+00> : vector<8xf32>
    %126 = vector.multi_reduction <add>, %122, %cst_77 [1] : vector<8x16xf32> to vector<8xf32>
    %127 = vector.shape_cast %126 : vector<8xf32> to vector<8x1xf32>
    %128 = arith.addf %66, %127 : vector<8x1xf32>
    %129 = arith.mulf %122, %122 : vector<8x16xf32>
    %cst_78 = arith.constant dense<0.000000e+00> : vector<8xf32>
    %130 = vector.multi_reduction <add>, %129, %cst_78 [1] : vector<8x16xf32> to vector<8xf32>
    %131 = vector.shape_cast %130 : vector<8xf32> to vector<8x1xf32>
    %132 = arith.addf %70, %131 : vector<8x1xf32>
    %cst_79 = arith.constant 0.000000e+00 : f32
    %133 = vector.broadcast %cst_79 : f32 to vector<8x16xf32>
    %134 = vector.extract_strided_slice %6 {offsets = [0, 2, 0], sizes = [4, 1, 18], strides = [1, 1, 1]} : vector<4x18x18xf32> to vector<4x1x18xf32>
    %135 = vector.shape_cast %134 : vector<4x1x18xf32> to vector<4x18xf32>
    %136 = vector.extract_strided_slice %135 {offsets = [0, 0], sizes = [4, 16], strides = [1, 1]} : vector<4x18xf32> to vector<4x16xf32>
    %c0_80 = arith.constant 0 : index
    %c0_81 = arith.constant 0 : index
    %c0_82 = arith.constant 0 : index
    %137 = vector.load %arg3[%c0_80, %c0_81, %c0_82] : memref<9x8x4xf32, #tpu.memory_space<vmem>>, vector<1x8x4xf32>
    %138 = vector.shape_cast %137 : vector<1x8x4xf32> to vector<8x4xf32>
    %cst_83 = arith.constant dense<0.000000e+00> : vector<8x16xf32>
    %139 = tpu.matmul %138, %136, %cst_83 {dimension_numbers = #tpu.dot_dimension_numbers<[1], [0], [0], [1], [0, 0, 1, 1], [], []>} : vector<8x4xf32>, vector<4x16xf32>, vector<8x16xf32> -> vector<8x16xf32>
    %140 = arith.addf %133, %139 : vector<8x16xf32>
    %141 = vector.extract_strided_slice %135 {offsets = [0, 1], sizes = [4, 16], strides = [1, 1]} : vector<4x18xf32> to vector<4x16xf32>
    %c1_84 = arith.constant 1 : index
    %c0_85 = arith.constant 0 : index
    %c0_86 = arith.constant 0 : index
    %142 = vector.load %arg3[%c1_84, %c0_85, %c0_86] : memref<9x8x4xf32, #tpu.memory_space<vmem>>, vector<1x8x4xf32>
    %143 = vector.shape_cast %142 : vector<1x8x4xf32> to vector<8x4xf32>
    %cst_87 = arith.constant dense<0.000000e+00> : vector<8x16xf32>
    %144 = tpu.matmul %143, %141, %cst_87 {dimension_numbers = #tpu.dot_dimension_numbers<[1], [0], [0], [1], [0, 0, 1, 1], [], []>} : vector<8x4xf32>, vector<4x16xf32>, vector<8x16xf32> -> vector<8x16xf32>
    %145 = arith.addf %140, %144 : vector<8x16xf32>
    %146 = vector.extract_strided_slice %135 {offsets = [0, 2], sizes = [4, 16], strides = [1, 1]} : vector<4x18xf32> to vector<4x16xf32>
    %c2_88 = arith.constant 2 : index
    %c0_89 = arith.constant 0 : index
    %c0_90 = arith.constant 0 : index
    %147 = vector.load %arg3[%c2_88, %c0_89, %c0_90] : memref<9x8x4xf32, #tpu.memory_space<vmem>>, vector<1x8x4xf32>
    %148 = vector.shape_cast %147 : vector<1x8x4xf32> to vector<8x4xf32>
    %cst_91 = arith.constant dense<0.000000e+00> : vector<8x16xf32>
    %149 = tpu.matmul %148, %146, %cst_91 {dimension_numbers = #tpu.dot_dimension_numbers<[1], [0], [0], [1], [0, 0, 1, 1], [], []>} : vector<8x4xf32>, vector<4x16xf32>, vector<8x16xf32> -> vector<8x16xf32>
    %150 = arith.addf %145, %149 : vector<8x16xf32>
    %151 = vector.extract_strided_slice %6 {offsets = [0, 3, 0], sizes = [4, 1, 18], strides = [1, 1, 1]} : vector<4x18x18xf32> to vector<4x1x18xf32>
    %152 = vector.shape_cast %151 : vector<4x1x18xf32> to vector<4x18xf32>
    %153 = vector.extract_strided_slice %152 {offsets = [0, 0], sizes = [4, 16], strides = [1, 1]} : vector<4x18xf32> to vector<4x16xf32>
    %c3_92 = arith.constant 3 : index
    %c0_93 = arith.constant 0 : index
    %c0_94 = arith.constant 0 : index
    %154 = vector.load %arg3[%c3_92, %c0_93, %c0_94] : memref<9x8x4xf32, #tpu.memory_space<vmem>>, vector<1x8x4xf32>
    %155 = vector.shape_cast %154 : vector<1x8x4xf32> to vector<8x4xf32>
    %cst_95 = arith.constant dense<0.000000e+00> : vector<8x16xf32>
    %156 = tpu.matmul %155, %153, %cst_95 {dimension_numbers = #tpu.dot_dimension_numbers<[1], [0], [0], [1], [0, 0, 1, 1], [], []>} : vector<8x4xf32>, vector<4x16xf32>, vector<8x16xf32> -> vector<8x16xf32>
    %157 = arith.addf %150, %156 : vector<8x16xf32>
    %158 = vector.extract_strided_slice %152 {offsets = [0, 1], sizes = [4, 16], strides = [1, 1]} : vector<4x18xf32> to vector<4x16xf32>
    %c4_96 = arith.constant 4 : index
    %c0_97 = arith.constant 0 : index
    %c0_98 = arith.constant 0 : index
    %159 = vector.load %arg3[%c4_96, %c0_97, %c0_98] : memref<9x8x4xf32, #tpu.memory_space<vmem>>, vector<1x8x4xf32>
    %160 = vector.shape_cast %159 : vector<1x8x4xf32> to vector<8x4xf32>
    %cst_99 = arith.constant dense<0.000000e+00> : vector<8x16xf32>
    %161 = tpu.matmul %160, %158, %cst_99 {dimension_numbers = #tpu.dot_dimension_numbers<[1], [0], [0], [1], [0, 0, 1, 1], [], []>} : vector<8x4xf32>, vector<4x16xf32>, vector<8x16xf32> -> vector<8x16xf32>
    %162 = arith.addf %157, %161 : vector<8x16xf32>
    %163 = vector.extract_strided_slice %152 {offsets = [0, 2], sizes = [4, 16], strides = [1, 1]} : vector<4x18xf32> to vector<4x16xf32>
    %c5_100 = arith.constant 5 : index
    %c0_101 = arith.constant 0 : index
    %c0_102 = arith.constant 0 : index
    %164 = vector.load %arg3[%c5_100, %c0_101, %c0_102] : memref<9x8x4xf32, #tpu.memory_space<vmem>>, vector<1x8x4xf32>
    %165 = vector.shape_cast %164 : vector<1x8x4xf32> to vector<8x4xf32>
    %cst_103 = arith.constant dense<0.000000e+00> : vector<8x16xf32>
    %166 = tpu.matmul %165, %163, %cst_103 {dimension_numbers = #tpu.dot_dimension_numbers<[1], [0], [0], [1], [0, 0, 1, 1], [], []>} : vector<8x4xf32>, vector<4x16xf32>, vector<8x16xf32> -> vector<8x16xf32>
    %167 = arith.addf %162, %166 : vector<8x16xf32>
    %168 = vector.extract_strided_slice %6 {offsets = [0, 4, 0], sizes = [4, 1, 18], strides = [1, 1, 1]} : vector<4x18x18xf32> to vector<4x1x18xf32>
    %169 = vector.shape_cast %168 : vector<4x1x18xf32> to vector<4x18xf32>
    %170 = vector.extract_strided_slice %169 {offsets = [0, 0], sizes = [4, 16], strides = [1, 1]} : vector<4x18xf32> to vector<4x16xf32>
    %c6_104 = arith.constant 6 : index
    %c0_105 = arith.constant 0 : index
    %c0_106 = arith.constant 0 : index
    %171 = vector.load %arg3[%c6_104, %c0_105, %c0_106] : memref<9x8x4xf32, #tpu.memory_space<vmem>>, vector<1x8x4xf32>
    %172 = vector.shape_cast %171 : vector<1x8x4xf32> to vector<8x4xf32>
    %cst_107 = arith.constant dense<0.000000e+00> : vector<8x16xf32>
    %173 = tpu.matmul %172, %170, %cst_107 {dimension_numbers = #tpu.dot_dimension_numbers<[1], [0], [0], [1], [0, 0, 1, 1], [], []>} : vector<8x4xf32>, vector<4x16xf32>, vector<8x16xf32> -> vector<8x16xf32>
    %174 = arith.addf %167, %173 : vector<8x16xf32>
    %175 = vector.extract_strided_slice %169 {offsets = [0, 1], sizes = [4, 16], strides = [1, 1]} : vector<4x18xf32> to vector<4x16xf32>
    %c7_108 = arith.constant 7 : index
    %c0_109 = arith.constant 0 : index
    %c0_110 = arith.constant 0 : index
    %176 = vector.load %arg3[%c7_108, %c0_109, %c0_110] : memref<9x8x4xf32, #tpu.memory_space<vmem>>, vector<1x8x4xf32>
    %177 = vector.shape_cast %176 : vector<1x8x4xf32> to vector<8x4xf32>
    %cst_111 = arith.constant dense<0.000000e+00> : vector<8x16xf32>
    %178 = tpu.matmul %177, %175, %cst_111 {dimension_numbers = #tpu.dot_dimension_numbers<[1], [0], [0], [1], [0, 0, 1, 1], [], []>} : vector<8x4xf32>, vector<4x16xf32>, vector<8x16xf32> -> vector<8x16xf32>
    %179 = arith.addf %174, %178 : vector<8x16xf32>
    %180 = vector.extract_strided_slice %169 {offsets = [0, 2], sizes = [4, 16], strides = [1, 1]} : vector<4x18xf32> to vector<4x16xf32>
    %c8_112 = arith.constant 8 : index
    %c0_113 = arith.constant 0 : index
    %c0_114 = arith.constant 0 : index
    %181 = vector.load %arg3[%c8_112, %c0_113, %c0_114] : memref<9x8x4xf32, #tpu.memory_space<vmem>>, vector<1x8x4xf32>
    %182 = vector.shape_cast %181 : vector<1x8x4xf32> to vector<8x4xf32>
    %cst_115 = arith.constant dense<0.000000e+00> : vector<8x16xf32>
    %183 = tpu.matmul %182, %180, %cst_115 {dimension_numbers = #tpu.dot_dimension_numbers<[1], [0], [0], [1], [0, 0, 1, 1], [], []>} : vector<8x4xf32>, vector<4x16xf32>, vector<8x16xf32> -> vector<8x16xf32>
    %184 = arith.addf %179, %183 : vector<8x16xf32>
    %c0_116 = arith.constant 0 : index
    %c0_117 = arith.constant 0 : index
    %c32 = arith.constant 32 : index
    %185 = vector.load %arg4[%c0_116, %c0_117, %c32] : memref<1x8x256xf32, #tpu.memory_space<vmem>>, vector<1x8x16xf32>
    %186 = vector.shape_cast %185 : vector<1x8x16xf32> to vector<8x16xf32>
    %187 = vector.shape_cast %184 : vector<8x16xf32> to vector<1x8x16xf32>
    tpu.vector_store %arg4[%c0_116, %c0_117, %c32], %187 {strides = array<i32>} : memref<1x8x256xf32, #tpu.memory_space<vmem>>, vector<1x8x16xf32>,
    %cst_118 = arith.constant dense<0.000000e+00> : vector<8xf32>
    %188 = vector.multi_reduction <add>, %184, %cst_118 [1] : vector<8x16xf32> to vector<8xf32>
    %189 = vector.shape_cast %188 : vector<8xf32> to vector<8x1xf32>
    %190 = arith.addf %128, %189 : vector<8x1xf32>
    %191 = arith.mulf %184, %184 : vector<8x16xf32>
    %cst_119 = arith.constant dense<0.000000e+00> : vector<8xf32>
    %192 = vector.multi_reduction <add>, %191, %cst_119 [1] : vector<8x16xf32> to vector<8xf32>
    %193 = vector.shape_cast %192 : vector<8xf32> to vector<8x1xf32>
    %194 = arith.addf %132, %193 : vector<8x1xf32>
    %cst_120 = arith.constant 0.000000e+00 : f32
    %195 = vector.broadcast %cst_120 : f32 to vector<8x16xf32>
    %196 = vector.extract_strided_slice %6 {offsets = [0, 3, 0], sizes = [4, 1, 18], strides = [1, 1, 1]} : vector<4x18x18xf32> to vector<4x1x18xf32>
    %197 = vector.shape_cast %196 : vector<4x1x18xf32> to vector<4x18xf32>
    %198 = vector.extract_strided_slice %197 {offsets = [0, 0], sizes = [4, 16], strides = [1, 1]} : vector<4x18xf32> to vector<4x16xf32>
    %c0_121 = arith.constant 0 : index
    %c0_122 = arith.constant 0 : index
    %c0_123 = arith.constant 0 : index
    %199 = vector.load %arg3[%c0_121, %c0_122, %c0_123] : memref<9x8x4xf32, #tpu.memory_space<vmem>>, vector<1x8x4xf32>
    %200 = vector.shape_cast %199 : vector<1x8x4xf32> to vector<8x4xf32>
    %cst_124 = arith.constant dense<0.000000e+00> : vector<8x16xf32>
    %201 = tpu.matmul %200, %198, %cst_124 {dimension_numbers = #tpu.dot_dimension_numbers<[1], [0], [0], [1], [0, 0, 1, 1], [], []>} : vector<8x4xf32>, vector<4x16xf32>, vector<8x16xf32> -> vector<8x16xf32>
    %202 = arith.addf %195, %201 : vector<8x16xf32>
    %203 = vector.extract_strided_slice %197 {offsets = [0, 1], sizes = [4, 16], strides = [1, 1]} : vector<4x18xf32> to vector<4x16xf32>
    %c1_125 = arith.constant 1 : index
    %c0_126 = arith.constant 0 : index
    %c0_127 = arith.constant 0 : index
    %204 = vector.load %arg3[%c1_125, %c0_126, %c0_127] : memref<9x8x4xf32, #tpu.memory_space<vmem>>, vector<1x8x4xf32>
    %205 = vector.shape_cast %204 : vector<1x8x4xf32> to vector<8x4xf32>
    %cst_128 = arith.constant dense<0.000000e+00> : vector<8x16xf32>
    %206 = tpu.matmul %205, %203, %cst_128 {dimension_numbers = #tpu.dot_dimension_numbers<[1], [0], [0], [1], [0, 0, 1, 1], [], []>} : vector<8x4xf32>, vector<4x16xf32>, vector<8x16xf32> -> vector<8x16xf32>
    %207 = arith.addf %202, %206 : vector<8x16xf32>
    %208 = vector.extract_strided_slice %197 {offsets = [0, 2], sizes = [4, 16], strides = [1, 1]} : vector<4x18xf32> to vector<4x16xf32>
    %c2_129 = arith.constant 2 : index
    %c0_130 = arith.constant 0 : index
    %c0_131 = arith.constant 0 : index
    %209 = vector.load %arg3[%c2_129, %c0_130, %c0_131] : memref<9x8x4xf32, #tpu.memory_space<vmem>>, vector<1x8x4xf32>
    %210 = vector.shape_cast %209 : vector<1x8x4xf32> to vector<8x4xf32>
    %cst_132 = arith.constant dense<0.000000e+00> : vector<8x16xf32>
    %211 = tpu.matmul %210, %208, %cst_132 {dimension_numbers = #tpu.dot_dimension_numbers<[1], [0], [0], [1], [0, 0, 1, 1], [], []>} : vector<8x4xf32>, vector<4x16xf32>, vector<8x16xf32> -> vector<8x16xf32>
    %212 = arith.addf %207, %211 : vector<8x16xf32>
    %213 = vector.extract_strided_slice %6 {offsets = [0, 4, 0], sizes = [4, 1, 18], strides = [1, 1, 1]} : vector<4x18x18xf32> to vector<4x1x18xf32>
    %214 = vector.shape_cast %213 : vector<4x1x18xf32> to vector<4x18xf32>
    %215 = vector.extract_strided_slice %214 {offsets = [0, 0], sizes = [4, 16], strides = [1, 1]} : vector<4x18xf32> to vector<4x16xf32>
    %c3_133 = arith.constant 3 : index
    %c0_134 = arith.constant 0 : index
    %c0_135 = arith.constant 0 : index
    %216 = vector.load %arg3[%c3_133, %c0_134, %c0_135] : memref<9x8x4xf32, #tpu.memory_space<vmem>>, vector<1x8x4xf32>
    %217 = vector.shape_cast %216 : vector<1x8x4xf32> to vector<8x4xf32>
    %cst_136 = arith.constant dense<0.000000e+00> : vector<8x16xf32>
    %218 = tpu.matmul %217, %215, %cst_136 {dimension_numbers = #tpu.dot_dimension_numbers<[1], [0], [0], [1], [0, 0, 1, 1], [], []>} : vector<8x4xf32>, vector<4x16xf32>, vector<8x16xf32> -> vector<8x16xf32>
    %219 = arith.addf %212, %218 : vector<8x16xf32>
    %220 = vector.extract_strided_slice %214 {offsets = [0, 1], sizes = [4, 16], strides = [1, 1]} : vector<4x18xf32> to vector<4x16xf32>
    %c4_137 = arith.constant 4 : index
    %c0_138 = arith.constant 0 : index
    %c0_139 = arith.constant 0 : index
    %221 = vector.load %arg3[%c4_137, %c0_138, %c0_139] : memref<9x8x4xf32, #tpu.memory_space<vmem>>, vector<1x8x4xf32>
    %222 = vector.shape_cast %221 : vector<1x8x4xf32> to vector<8x4xf32>
    %cst_140 = arith.constant dense<0.000000e+00> : vector<8x16xf32>
    %223 = tpu.matmul %222, %220, %cst_140 {dimension_numbers = #tpu.dot_dimension_numbers<[1], [0], [0], [1], [0, 0, 1, 1], [], []>} : vector<8x4xf32>, vector<4x16xf32>, vector<8x16xf32> -> vector<8x16xf32>
    %224 = arith.addf %219, %223 : vector<8x16xf32>
    %225 = vector.extract_strided_slice %214 {offsets = [0, 2], sizes = [4, 16], strides = [1, 1]} : vector<4x18xf32> to vector<4x16xf32>
    %c5_141 = arith.constant 5 : index
    %c0_142 = arith.constant 0 : index
    %c0_143 = arith.constant 0 : index
    %226 = vector.load %arg3[%c5_141, %c0_142, %c0_143] : memref<9x8x4xf32, #tpu.memory_space<vmem>>, vector<1x8x4xf32>
    %227 = vector.shape_cast %226 : vector<1x8x4xf32> to vector<8x4xf32>
    %cst_144 = arith.constant dense<0.000000e+00> : vector<8x16xf32>
    %228 = tpu.matmul %227, %225, %cst_144 {dimension_numbers = #tpu.dot_dimension_numbers<[1], [0], [0], [1], [0, 0, 1, 1], [], []>} : vector<8x4xf32>, vector<4x16xf32>, vector<8x16xf32> -> vector<8x16xf32>
    %229 = arith.addf %224, %228 : vector<8x16xf32>
    %230 = vector.extract_strided_slice %6 {offsets = [0, 5, 0], sizes = [4, 1, 18], strides = [1, 1, 1]} : vector<4x18x18xf32> to vector<4x1x18xf32>
    %231 = vector.shape_cast %230 : vector<4x1x18xf32> to vector<4x18xf32>
    %232 = vector.extract_strided_slice %231 {offsets = [0, 0], sizes = [4, 16], strides = [1, 1]} : vector<4x18xf32> to vector<4x16xf32>
    %c6_145 = arith.constant 6 : index
    %c0_146 = arith.constant 0 : index
    %c0_147 = arith.constant 0 : index
    %233 = vector.load %arg3[%c6_145, %c0_146, %c0_147] : memref<9x8x4xf32, #tpu.memory_space<vmem>>, vector<1x8x4xf32>
    %234 = vector.shape_cast %233 : vector<1x8x4xf32> to vector<8x4xf32>
    %cst_148 = arith.constant dense<0.000000e+00> : vector<8x16xf32>
    %235 = tpu.matmul %234, %232, %cst_148 {dimension_numbers = #tpu.dot_dimension_numbers<[1], [0], [0], [1], [0, 0, 1, 1], [], []>} : vector<8x4xf32>, vector<4x16xf32>, vector<8x16xf32> -> vector<8x16xf32>
    %236 = arith.addf %229, %235 : vector<8x16xf32>
    %237 = vector.extract_strided_slice %231 {offsets = [0, 1], sizes = [4, 16], strides = [1, 1]} : vector<4x18xf32> to vector<4x16xf32>
    %c7_149 = arith.constant 7 : index
    %c0_150 = arith.constant 0 : index
    %c0_151 = arith.constant 0 : index
    %238 = vector.load %arg3[%c7_149, %c0_150, %c0_151] : memref<9x8x4xf32, #tpu.memory_space<vmem>>, vector<1x8x4xf32>
    %239 = vector.shape_cast %238 : vector<1x8x4xf32> to vector<8x4xf32>
    %cst_152 = arith.constant dense<0.000000e+00> : vector<8x16xf32>
    %240 = tpu.matmul %239, %237, %cst_152 {dimension_numbers = #tpu.dot_dimension_numbers<[1], [0], [0], [1], [0, 0, 1, 1], [], []>} : vector<8x4xf32>, vector<4x16xf32>, vector<8x16xf32> -> vector<8x16xf32>
    %241 = arith.addf %236, %240 : vector<8x16xf32>
    %242 = vector.extract_strided_slice %231 {offsets = [0, 2], sizes = [4, 16], strides = [1, 1]} : vector<4x18xf32> to vector<4x16xf32>
    %c8_153 = arith.constant 8 : index
    %c0_154 = arith.constant 0 : index
    %c0_155 = arith.constant 0 : index
    %243 = vector.load %arg3[%c8_153, %c0_154, %c0_155] : memref<9x8x4xf32, #tpu.memory_space<vmem>>, vector<1x8x4xf32>
    %244 = vector.shape_cast %243 : vector<1x8x4xf32> to vector<8x4xf32>
    %cst_156 = arith.constant dense<0.000000e+00> : vector<8x16xf32>
    %245 = tpu.matmul %244, %242, %cst_156 {dimension_numbers = #tpu.dot_dimension_numbers<[1], [0], [0], [1], [0, 0, 1, 1], [], []>} : vector<8x4xf32>, vector<4x16xf32>, vector<8x16xf32> -> vector<8x16xf32>
    %246 = arith.addf %241, %245 : vector<8x16xf32>
    %c0_157 = arith.constant 0 : index
    %c0_158 = arith.constant 0 : index
    %c48 = arith.constant 48 : index
    %247 = vector.load %arg4[%c0_157, %c0_158, %c48] : memref<1x8x256xf32, #tpu.memory_space<vmem>>, vector<1x8x16xf32>
    %248 = vector.shape_cast %247 : vector<1x8x16xf32> to vector<8x16xf32>
    %249 = vector.shape_cast %246 : vector<8x16xf32> to vector<1x8x16xf32>
    tpu.vector_store %arg4[%c0_157, %c0_158, %c48], %249 {strides = array<i32>} : memref<1x8x256xf32, #tpu.memory_space<vmem>>, vector<1x8x16xf32>,
    %cst_159 = arith.constant dense<0.000000e+00> : vector<8xf32>
    %250 = vector.multi_reduction <add>, %246, %cst_159 [1] : vector<8x16xf32> to vector<8xf32>
    %251 = vector.shape_cast %250 : vector<8xf32> to vector<8x1xf32>
    %252 = arith.addf %190, %251 : vector<8x1xf32>
    %253 = arith.mulf %246, %246 : vector<8x16xf32>
    %cst_160 = arith.constant dense<0.000000e+00> : vector<8xf32>
    %254 = vector.multi_reduction <add>, %253, %cst_160 [1] : vector<8x16xf32> to vector<8xf32>
    %255 = vector.shape_cast %254 : vector<8xf32> to vector<8x1xf32>
    %256 = arith.addf %194, %255 : vector<8x1xf32>
    %cst_161 = arith.constant 0.000000e+00 : f32
    %257 = vector.broadcast %cst_161 : f32 to vector<8x16xf32>
    %258 = vector.extract_strided_slice %6 {offsets = [0, 4, 0], sizes = [4, 1, 18], strides = [1, 1, 1]} : vector<4x18x18xf32> to vector<4x1x18xf32>
    %259 = vector.shape_cast %258 : vector<4x1x18xf32> to vector<4x18xf32>
    %260 = vector.extract_strided_slice %259 {offsets = [0, 0], sizes = [4, 16], strides = [1, 1]} : vector<4x18xf32> to vector<4x16xf32>
    %c0_162 = arith.constant 0 : index
    %c0_163 = arith.constant 0 : index
    %c0_164 = arith.constant 0 : index
    %261 = vector.load %arg3[%c0_162, %c0_163, %c0_164] : memref<9x8x4xf32, #tpu.memory_space<vmem>>, vector<1x8x4xf32>
    %262 = vector.shape_cast %261 : vector<1x8x4xf32> to vector<8x4xf32>
    %cst_165 = arith.constant dense<0.000000e+00> : vector<8x16xf32>
    %263 = tpu.matmul %262, %260, %cst_165 {dimension_numbers = #tpu.dot_dimension_numbers<[1], [0], [0], [1], [0, 0, 1, 1], [], []>} : vector<8x4xf32>, vector<4x16xf32>, vector<8x16xf32> -> vector<8x16xf32>
    %264 = arith.addf %257, %263 : vector<8x16xf32>
    %265 = vector.extract_strided_slice %259 {offsets = [0, 1], sizes = [4, 16], strides = [1, 1]} : vector<4x18xf32> to vector<4x16xf32>
    %c1_166 = arith.constant 1 : index
    %c0_167 = arith.constant 0 : index
    %c0_168 = arith.constant 0 : index
    %266 = vector.load %arg3[%c1_166, %c0_167, %c0_168] : memref<9x8x4xf32, #tpu.memory_space<vmem>>, vector<1x8x4xf32>
    %267 = vector.shape_cast %266 : vector<1x8x4xf32> to vector<8x4xf32>
    %cst_169 = arith.constant dense<0.000000e+00> : vector<8x16xf32>
    %268 = tpu.matmul %267, %265, %cst_169 {dimension_numbers = #tpu.dot_dimension_numbers<[1], [0], [0], [1], [0, 0, 1, 1], [], []>} : vector<8x4xf32>, vector<4x16xf32>, vector<8x16xf32> -> vector<8x16xf32>
    %269 = arith.addf %264, %268 : vector<8x16xf32>
    %270 = vector.extract_strided_slice %259 {offsets = [0, 2], sizes = [4, 16], strides = [1, 1]} : vector<4x18xf32> to vector<4x16xf32>
    %c2_170 = arith.constant 2 : index
    %c0_171 = arith.constant 0 : index
    %c0_172 = arith.constant 0 : index
    %271 = vector.load %arg3[%c2_170, %c0_171, %c0_172] : memref<9x8x4xf32, #tpu.memory_space<vmem>>, vector<1x8x4xf32>
    %272 = vector.shape_cast %271 : vector<1x8x4xf32> to vector<8x4xf32>
    %cst_173 = arith.constant dense<0.000000e+00> : vector<8x16xf32>
    %273 = tpu.matmul %272, %270, %cst_173 {dimension_numbers = #tpu.dot_dimension_numbers<[1], [0], [0], [1], [0, 0, 1, 1], [], []>} : vector<8x4xf32>, vector<4x16xf32>, vector<8x16xf32> -> vector<8x16xf32>
    %274 = arith.addf %269, %273 : vector<8x16xf32>
    %275 = vector.extract_strided_slice %6 {offsets = [0, 5, 0], sizes = [4, 1, 18], strides = [1, 1, 1]} : vector<4x18x18xf32> to vector<4x1x18xf32>
    %276 = vector.shape_cast %275 : vector<4x1x18xf32> to vector<4x18xf32>
    %277 = vector.extract_strided_slice %276 {offsets = [0, 0], sizes = [4, 16], strides = [1, 1]} : vector<4x18xf32> to vector<4x16xf32>
    %c3_174 = arith.constant 3 : index
    %c0_175 = arith.constant 0 : index
    %c0_176 = arith.constant 0 : index
    %278 = vector.load %arg3[%c3_174, %c0_175, %c0_176] : memref<9x8x4xf32, #tpu.memory_space<vmem>>, vector<1x8x4xf32>
    %279 = vector.shape_cast %278 : vector<1x8x4xf32> to vector<8x4xf32>
    %cst_177 = arith.constant dense<0.000000e+00> : vector<8x16xf32>
    %280 = tpu.matmul %279, %277, %cst_177 {dimension_numbers = #tpu.dot_dimension_numbers<[1], [0], [0], [1], [0, 0, 1, 1], [], []>} : vector<8x4xf32>, vector<4x16xf32>, vector<8x16xf32> -> vector<8x16xf32>
    %281 = arith.addf %274, %280 : vector<8x16xf32>
    %282 = vector.extract_strided_slice %276 {offsets = [0, 1], sizes = [4, 16], strides = [1, 1]} : vector<4x18xf32> to vector<4x16xf32>
    %c4_178 = arith.constant 4 : index
    %c0_179 = arith.constant 0 : index
    %c0_180 = arith.constant 0 : index
    %283 = vector.load %arg3[%c4_178, %c0_179, %c0_180] : memref<9x8x4xf32, #tpu.memory_space<vmem>>, vector<1x8x4xf32>
    %284 = vector.shape_cast %283 : vector<1x8x4xf32> to vector<8x4xf32>
    %cst_181 = arith.constant dense<0.000000e+00> : vector<8x16xf32>
    %285 = tpu.matmul %284, %282, %cst_181 {dimension_numbers = #tpu.dot_dimension_numbers<[1], [0], [0], [1], [0, 0, 1, 1], [], []>} : vector<8x4xf32>, vector<4x16xf32>, vector<8x16xf32> -> vector<8x16xf32>
    %286 = arith.addf %281, %285 : vector<8x16xf32>
    %287 = vector.extract_strided_slice %276 {offsets = [0, 2], sizes = [4, 16], strides = [1, 1]} : vector<4x18xf32> to vector<4x16xf32>
    %c5_182 = arith.constant 5 : index
    %c0_183 = arith.constant 0 : index
    %c0_184 = arith.constant 0 : index
    %288 = vector.load %arg3[%c5_182, %c0_183, %c0_184] : memref<9x8x4xf32, #tpu.memory_space<vmem>>, vector<1x8x4xf32>
    %289 = vector.shape_cast %288 : vector<1x8x4xf32> to vector<8x4xf32>
    %cst_185 = arith.constant dense<0.000000e+00> : vector<8x16xf32>
    %290 = tpu.matmul %289, %287, %cst_185 {dimension_numbers = #tpu.dot_dimension_numbers<[1], [0], [0], [1], [0, 0, 1, 1], [], []>} : vector<8x4xf32>, vector<4x16xf32>, vector<8x16xf32> -> vector<8x16xf32>
    %291 = arith.addf %286, %290 : vector<8x16xf32>
    %292 = vector.extract_strided_slice %6 {offsets = [0, 6, 0], sizes = [4, 1, 18], strides = [1, 1, 1]} : vector<4x18x18xf32> to vector<4x1x18xf32>
    %293 = vector.shape_cast %292 : vector<4x1x18xf32> to vector<4x18xf32>
    %294 = vector.extract_strided_slice %293 {offsets = [0, 0], sizes = [4, 16], strides = [1, 1]} : vector<4x18xf32> to vector<4x16xf32>
    %c6_186 = arith.constant 6 : index
    %c0_187 = arith.constant 0 : index
    %c0_188 = arith.constant 0 : index
    %295 = vector.load %arg3[%c6_186, %c0_187, %c0_188] : memref<9x8x4xf32, #tpu.memory_space<vmem>>, vector<1x8x4xf32>
    %296 = vector.shape_cast %295 : vector<1x8x4xf32> to vector<8x4xf32>
    %cst_189 = arith.constant dense<0.000000e+00> : vector<8x16xf32>
    %297 = tpu.matmul %296, %294, %cst_189 {dimension_numbers = #tpu.dot_dimension_numbers<[1], [0], [0], [1], [0, 0, 1, 1], [], []>} : vector<8x4xf32>, vector<4x16xf32>, vector<8x16xf32> -> vector<8x16xf32>
    %298 = arith.addf %291, %297 : vector<8x16xf32>
    %299 = vector.extract_strided_slice %293 {offsets = [0, 1], sizes = [4, 16], strides = [1, 1]} : vector<4x18xf32> to vector<4x16xf32>
    %c7_190 = arith.constant 7 : index
    %c0_191 = arith.constant 0 : index
    %c0_192 = arith.constant 0 : index
    %300 = vector.load %arg3[%c7_190, %c0_191, %c0_192] : memref<9x8x4xf32, #tpu.memory_space<vmem>>, vector<1x8x4xf32>
    %301 = vector.shape_cast %300 : vector<1x8x4xf32> to vector<8x4xf32>
    %cst_193 = arith.constant dense<0.000000e+00> : vector<8x16xf32>
    %302 = tpu.matmul %301, %299, %cst_193 {dimension_numbers = #tpu.dot_dimension_numbers<[1], [0], [0], [1], [0, 0, 1, 1], [], []>} : vector<8x4xf32>, vector<4x16xf32>, vector<8x16xf32> -> vector<8x16xf32>
    %303 = arith.addf %298, %302 : vector<8x16xf32>
    %304 = vector.extract_strided_slice %293 {offsets = [0, 2], sizes = [4, 16], strides = [1, 1]} : vector<4x18xf32> to vector<4x16xf32>
    %c8_194 = arith.constant 8 : index
    %c0_195 = arith.constant 0 : index
    %c0_196 = arith.constant 0 : index
    %305 = vector.load %arg3[%c8_194, %c0_195, %c0_196] : memref<9x8x4xf32, #tpu.memory_space<vmem>>, vector<1x8x4xf32>
    %306 = vector.shape_cast %305 : vector<1x8x4xf32> to vector<8x4xf32>
    %cst_197 = arith.constant dense<0.000000e+00> : vector<8x16xf32>
    %307 = tpu.matmul %306, %304, %cst_197 {dimension_numbers = #tpu.dot_dimension_numbers<[1], [0], [0], [1], [0, 0, 1, 1], [], []>} : vector<8x4xf32>, vector<4x16xf32>, vector<8x16xf32> -> vector<8x16xf32>
    %308 = arith.addf %303, %307 : vector<8x16xf32>
    %c0_198 = arith.constant 0 : index
    %c0_199 = arith.constant 0 : index
    %c64 = arith.constant 64 : index
    %309 = vector.load %arg4[%c0_198, %c0_199, %c64] : memref<1x8x256xf32, #tpu.memory_space<vmem>>, vector<1x8x16xf32>
    %310 = vector.shape_cast %309 : vector<1x8x16xf32> to vector<8x16xf32>
    %311 = vector.shape_cast %308 : vector<8x16xf32> to vector<1x8x16xf32>
    tpu.vector_store %arg4[%c0_198, %c0_199, %c64], %311 {strides = array<i32>} : memref<1x8x256xf32, #tpu.memory_space<vmem>>, vector<1x8x16xf32>,
    %cst_200 = arith.constant dense<0.000000e+00> : vector<8xf32>
    %312 = vector.multi_reduction <add>, %308, %cst_200 [1] : vector<8x16xf32> to vector<8xf32>
    %313 = vector.shape_cast %312 : vector<8xf32> to vector<8x1xf32>
    %314 = arith.addf %252, %313 : vector<8x1xf32>
    %315 = arith.mulf %308, %308 : vector<8x16xf32>
    %cst_201 = arith.constant dense<0.000000e+00> : vector<8xf32>
    %316 = vector.multi_reduction <add>, %315, %cst_201 [1] : vector<8x16xf32> to vector<8xf32>
    %317 = vector.shape_cast %316 : vector<8xf32> to vector<8x1xf32>
    %318 = arith.addf %256, %317 : vector<8x1xf32>
    %cst_202 = arith.constant 0.000000e+00 : f32
    %319 = vector.broadcast %cst_202 : f32 to vector<8x16xf32>
    %320 = vector.extract_strided_slice %6 {offsets = [0, 5, 0], sizes = [4, 1, 18], strides = [1, 1, 1]} : vector<4x18x18xf32> to vector<4x1x18xf32>
    %321 = vector.shape_cast %320 : vector<4x1x18xf32> to vector<4x18xf32>
    %322 = vector.extract_strided_slice %321 {offsets = [0, 0], sizes = [4, 16], strides = [1, 1]} : vector<4x18xf32> to vector<4x16xf32>
    %c0_203 = arith.constant 0 : index
    %c0_204 = arith.constant 0 : index
    %c0_205 = arith.constant 0 : index
    %323 = vector.load %arg3[%c0_203, %c0_204, %c0_205] : memref<9x8x4xf32, #tpu.memory_space<vmem>>, vector<1x8x4xf32>
    %324 = vector.shape_cast %323 : vector<1x8x4xf32> to vector<8x4xf32>
    %cst_206 = arith.constant dense<0.000000e+00> : vector<8x16xf32>
    %325 = tpu.matmul %324, %322, %cst_206 {dimension_numbers = #tpu.dot_dimension_numbers<[1], [0], [0], [1], [0, 0, 1, 1], [], []>} : vector<8x4xf32>, vector<4x16xf32>, vector<8x16xf32> -> vector<8x16xf32>
    %326 = arith.addf %319, %325 : vector<8x16xf32>
    %327 = vector.extract_strided_slice %321 {offsets = [0, 1], sizes = [4, 16], strides = [1, 1]} : vector<4x18xf32> to vector<4x16xf32>
    %c1_207 = arith.constant 1 : index
    %c0_208 = arith.constant 0 : index
    %c0_209 = arith.constant 0 : index
    %328 = vector.load %arg3[%c1_207, %c0_208, %c0_209] : memref<9x8x4xf32, #tpu.memory_space<vmem>>, vector<1x8x4xf32>
    %329 = vector.shape_cast %328 : vector<1x8x4xf32> to vector<8x4xf32>
    %cst_210 = arith.constant dense<0.000000e+00> : vector<8x16xf32>
    %330 = tpu.matmul %329, %327, %cst_210 {dimension_numbers = #tpu.dot_dimension_numbers<[1], [0], [0], [1], [0, 0, 1, 1], [], []>} : vector<8x4xf32>, vector<4x16xf32>, vector<8x16xf32> -> vector<8x16xf32>
    %331 = arith.addf %326, %330 : vector<8x16xf32>
    %332 = vector.extract_strided_slice %321 {offsets = [0, 2], sizes = [4, 16], strides = [1, 1]} : vector<4x18xf32> to vector<4x16xf32>
    %c2_211 = arith.constant 2 : index
    %c0_212 = arith.constant 0 : index
    %c0_213 = arith.constant 0 : index
    %333 = vector.load %arg3[%c2_211, %c0_212, %c0_213] : memref<9x8x4xf32, #tpu.memory_space<vmem>>, vector<1x8x4xf32>
    %334 = vector.shape_cast %333 : vector<1x8x4xf32> to vector<8x4xf32>
    %cst_214 = arith.constant dense<0.000000e+00> : vector<8x16xf32>
    %335 = tpu.matmul %334, %332, %cst_214 {dimension_numbers = #tpu.dot_dimension_numbers<[1], [0], [0], [1], [0, 0, 1, 1], [], []>} : vector<8x4xf32>, vector<4x16xf32>, vector<8x16xf32> -> vector<8x16xf32>
    %336 = arith.addf %331, %335 : vector<8x16xf32>
    %337 = vector.extract_strided_slice %6 {offsets = [0, 6, 0], sizes = [4, 1, 18], strides = [1, 1, 1]} : vector<4x18x18xf32> to vector<4x1x18xf32>
    %338 = vector.shape_cast %337 : vector<4x1x18xf32> to vector<4x18xf32>
    %339 = vector.extract_strided_slice %338 {offsets = [0, 0], sizes = [4, 16], strides = [1, 1]} : vector<4x18xf32> to vector<4x16xf32>
    %c3_215 = arith.constant 3 : index
    %c0_216 = arith.constant 0 : index
    %c0_217 = arith.constant 0 : index
    %340 = vector.load %arg3[%c3_215, %c0_216, %c0_217] : memref<9x8x4xf32, #tpu.memory_space<vmem>>, vector<1x8x4xf32>
    %341 = vector.shape_cast %340 : vector<1x8x4xf32> to vector<8x4xf32>
    %cst_218 = arith.constant dense<0.000000e+00> : vector<8x16xf32>
    %342 = tpu.matmul %341, %339, %cst_218 {dimension_numbers = #tpu.dot_dimension_numbers<[1], [0], [0], [1], [0, 0, 1, 1], [], []>} : vector<8x4xf32>, vector<4x16xf32>, vector<8x16xf32> -> vector<8x16xf32>
    %343 = arith.addf %336, %342 : vector<8x16xf32>
    %344 = vector.extract_strided_slice %338 {offsets = [0, 1], sizes = [4, 16], strides = [1, 1]} : vector<4x18xf32> to vector<4x16xf32>
    %c4_219 = arith.constant 4 : index
    %c0_220 = arith.constant 0 : index
    %c0_221 = arith.constant 0 : index
    %345 = vector.load %arg3[%c4_219, %c0_220, %c0_221] : memref<9x8x4xf32, #tpu.memory_space<vmem>>, vector<1x8x4xf32>
    %346 = vector.shape_cast %345 : vector<1x8x4xf32> to vector<8x4xf32>
    %cst_222 = arith.constant dense<0.000000e+00> : vector<8x16xf32>
    %347 = tpu.matmul %346, %344, %cst_222 {dimension_numbers = #tpu.dot_dimension_numbers<[1], [0], [0], [1], [0, 0, 1, 1], [], []>} : vector<8x4xf32>, vector<4x16xf32>, vector<8x16xf32> -> vector<8x16xf32>
    %348 = arith.addf %343, %347 : vector<8x16xf32>
    %349 = vector.extract_strided_slice %338 {offsets = [0, 2], sizes = [4, 16], strides = [1, 1]} : vector<4x18xf32> to vector<4x16xf32>
    %c5_223 = arith.constant 5 : index
    %c0_224 = arith.constant 0 : index
    %c0_225 = arith.constant 0 : index
    %350 = vector.load %arg3[%c5_223, %c0_224, %c0_225] : memref<9x8x4xf32, #tpu.memory_space<vmem>>, vector<1x8x4xf32>
    %351 = vector.shape_cast %350 : vector<1x8x4xf32> to vector<8x4xf32>
    %cst_226 = arith.constant dense<0.000000e+00> : vector<8x16xf32>
    %352 = tpu.matmul %351, %349, %cst_226 {dimension_numbers = #tpu.dot_dimension_numbers<[1], [0], [0], [1], [0, 0, 1, 1], [], []>} : vector<8x4xf32>, vector<4x16xf32>, vector<8x16xf32> -> vector<8x16xf32>
    %353 = arith.addf %348, %352 : vector<8x16xf32>
    %354 = vector.extract_strided_slice %6 {offsets = [0, 7, 0], sizes = [4, 1, 18], strides = [1, 1, 1]} : vector<4x18x18xf32> to vector<4x1x18xf32>
    %355 = vector.shape_cast %354 : vector<4x1x18xf32> to vector<4x18xf32>
    %356 = vector.extract_strided_slice %355 {offsets = [0, 0], sizes = [4, 16], strides = [1, 1]} : vector<4x18xf32> to vector<4x16xf32>
    %c6_227 = arith.constant 6 : index
    %c0_228 = arith.constant 0 : index
    %c0_229 = arith.constant 0 : index
    %357 = vector.load %arg3[%c6_227, %c0_228, %c0_229] : memref<9x8x4xf32, #tpu.memory_space<vmem>>, vector<1x8x4xf32>
    %358 = vector.shape_cast %357 : vector<1x8x4xf32> to vector<8x4xf32>
    %cst_230 = arith.constant dense<0.000000e+00> : vector<8x16xf32>
    %359 = tpu.matmul %358, %356, %cst_230 {dimension_numbers = #tpu.dot_dimension_numbers<[1], [0], [0], [1], [0, 0, 1, 1], [], []>} : vector<8x4xf32>, vector<4x16xf32>, vector<8x16xf32> -> vector<8x16xf32>
    %360 = arith.addf %353, %359 : vector<8x16xf32>
    %361 = vector.extract_strided_slice %355 {offsets = [0, 1], sizes = [4, 16], strides = [1, 1]} : vector<4x18xf32> to vector<4x16xf32>
    %c7_231 = arith.constant 7 : index
    %c0_232 = arith.constant 0 : index
    %c0_233 = arith.constant 0 : index
    %362 = vector.load %arg3[%c7_231, %c0_232, %c0_233] : memref<9x8x4xf32, #tpu.memory_space<vmem>>, vector<1x8x4xf32>
    %363 = vector.shape_cast %362 : vector<1x8x4xf32> to vector<8x4xf32>
    %cst_234 = arith.constant dense<0.000000e+00> : vector<8x16xf32>
    %364 = tpu.matmul %363, %361, %cst_234 {dimension_numbers = #tpu.dot_dimension_numbers<[1], [0], [0], [1], [0, 0, 1, 1], [], []>} : vector<8x4xf32>, vector<4x16xf32>, vector<8x16xf32> -> vector<8x16xf32>
    %365 = arith.addf %360, %364 : vector<8x16xf32>
    %366 = vector.extract_strided_slice %355 {offsets = [0, 2], sizes = [4, 16], strides = [1, 1]} : vector<4x18xf32> to vector<4x16xf32>
    %c8_235 = arith.constant 8 : index
    %c0_236 = arith.constant 0 : index
    %c0_237 = arith.constant 0 : index
    %367 = vector.load %arg3[%c8_235, %c0_236, %c0_237] : memref<9x8x4xf32, #tpu.memory_space<vmem>>, vector<1x8x4xf32>
    %368 = vector.shape_cast %367 : vector<1x8x4xf32> to vector<8x4xf32>
    %cst_238 = arith.constant dense<0.000000e+00> : vector<8x16xf32>
    %369 = tpu.matmul %368, %366, %cst_238 {dimension_numbers = #tpu.dot_dimension_numbers<[1], [0], [0], [1], [0, 0, 1, 1], [], []>} : vector<8x4xf32>, vector<4x16xf32>, vector<8x16xf32> -> vector<8x16xf32>
    %370 = arith.addf %365, %369 : vector<8x16xf32>
    %c0_239 = arith.constant 0 : index
    %c0_240 = arith.constant 0 : index
    %c80 = arith.constant 80 : index
    %371 = vector.load %arg4[%c0_239, %c0_240, %c80] : memref<1x8x256xf32, #tpu.memory_space<vmem>>, vector<1x8x16xf32>
    %372 = vector.shape_cast %371 : vector<1x8x16xf32> to vector<8x16xf32>
    %373 = vector.shape_cast %370 : vector<8x16xf32> to vector<1x8x16xf32>
    tpu.vector_store %arg4[%c0_239, %c0_240, %c80], %373 {strides = array<i32>} : memref<1x8x256xf32, #tpu.memory_space<vmem>>, vector<1x8x16xf32>,
    %cst_241 = arith.constant dense<0.000000e+00> : vector<8xf32>
    %374 = vector.multi_reduction <add>, %370, %cst_241 [1] : vector<8x16xf32> to vector<8xf32>
    %375 = vector.shape_cast %374 : vector<8xf32> to vector<8x1xf32>
    %376 = arith.addf %314, %375 : vector<8x1xf32>
    %377 = arith.mulf %370, %370 : vector<8x16xf32>
    %cst_242 = arith.constant dense<0.000000e+00> : vector<8xf32>
    %378 = vector.multi_reduction <add>, %377, %cst_242 [1] : vector<8x16xf32> to vector<8xf32>
    %379 = vector.shape_cast %378 : vector<8xf32> to vector<8x1xf32>
    %380 = arith.addf %318, %379 : vector<8x1xf32>
    %cst_243 = arith.constant 0.000000e+00 : f32
    %381 = vector.broadcast %cst_243 : f32 to vector<8x16xf32>
    %382 = vector.extract_strided_slice %6 {offsets = [0, 6, 0], sizes = [4, 1, 18], strides = [1, 1, 1]} : vector<4x18x18xf32> to vector<4x1x18xf32>
    %383 = vector.shape_cast %382 : vector<4x1x18xf32> to vector<4x18xf32>
    %384 = vector.extract_strided_slice %383 {offsets = [0, 0], sizes = [4, 16], strides = [1, 1]} : vector<4x18xf32> to vector<4x16xf32>
    %c0_244 = arith.constant 0 : index
    %c0_245 = arith.constant 0 : index
    %c0_246 = arith.constant 0 : index
    %385 = vector.load %arg3[%c0_244, %c0_245, %c0_246] : memref<9x8x4xf32, #tpu.memory_space<vmem>>, vector<1x8x4xf32>
    %386 = vector.shape_cast %385 : vector<1x8x4xf32> to vector<8x4xf32>
    %cst_247 = arith.constant dense<0.000000e+00> : vector<8x16xf32>
    %387 = tpu.matmul %386, %384, %cst_247 {dimension_numbers = #tpu.dot_dimension_numbers<[1], [0], [0], [1], [0, 0, 1, 1], [], []>} : vector<8x4xf32>, vector<4x16xf32>, vector<8x16xf32> -> vector<8x16xf32>
    %388 = arith.addf %381, %387 : vector<8x16xf32>
    %389 = vector.extract_strided_slice %383 {offsets = [0, 1], sizes = [4, 16], strides = [1, 1]} : vector<4x18xf32> to vector<4x16xf32>
    %c1_248 = arith.constant 1 : index
    %c0_249 = arith.constant 0 : index
    %c0_250 = arith.constant 0 : index
    %390 = vector.load %arg3[%c1_248, %c0_249, %c0_250] : memref<9x8x4xf32, #tpu.memory_space<vmem>>, vector<1x8x4xf32>
    %391 = vector.shape_cast %390 : vector<1x8x4xf32> to vector<8x4xf32>
    %cst_251 = arith.constant dense<0.000000e+00> : vector<8x16xf32>
    %392 = tpu.matmul %391, %389, %cst_251 {dimension_numbers = #tpu.dot_dimension_numbers<[1], [0], [0], [1], [0, 0, 1, 1], [], []>} : vector<8x4xf32>, vector<4x16xf32>, vector<8x16xf32> -> vector<8x16xf32>
    %393 = arith.addf %388, %392 : vector<8x16xf32>
    %394 = vector.extract_strided_slice %383 {offsets = [0, 2], sizes = [4, 16], strides = [1, 1]} : vector<4x18xf32> to vector<4x16xf32>
    %c2_252 = arith.constant 2 : index
    %c0_253 = arith.constant 0 : index
    %c0_254 = arith.constant 0 : index
    %395 = vector.load %arg3[%c2_252, %c0_253, %c0_254] : memref<9x8x4xf32, #tpu.memory_space<vmem>>, vector<1x8x4xf32>
    %396 = vector.shape_cast %395 : vector<1x8x4xf32> to vector<8x4xf32>
    %cst_255 = arith.constant dense<0.000000e+00> : vector<8x16xf32>
    %397 = tpu.matmul %396, %394, %cst_255 {dimension_numbers = #tpu.dot_dimension_numbers<[1], [0], [0], [1], [0, 0, 1, 1], [], []>} : vector<8x4xf32>, vector<4x16xf32>, vector<8x16xf32> -> vector<8x16xf32>
    %398 = arith.addf %393, %397 : vector<8x16xf32>
    %399 = vector.extract_strided_slice %6 {offsets = [0, 7, 0], sizes = [4, 1, 18], strides = [1, 1, 1]} : vector<4x18x18xf32> to vector<4x1x18xf32>
    %400 = vector.shape_cast %399 : vector<4x1x18xf32> to vector<4x18xf32>
    %401 = vector.extract_strided_slice %400 {offsets = [0, 0], sizes = [4, 16], strides = [1, 1]} : vector<4x18xf32> to vector<4x16xf32>
    %c3_256 = arith.constant 3 : index
    %c0_257 = arith.constant 0 : index
    %c0_258 = arith.constant 0 : index
    %402 = vector.load %arg3[%c3_256, %c0_257, %c0_258] : memref<9x8x4xf32, #tpu.memory_space<vmem>>, vector<1x8x4xf32>
    %403 = vector.shape_cast %402 : vector<1x8x4xf32> to vector<8x4xf32>
    %cst_259 = arith.constant dense<0.000000e+00> : vector<8x16xf32>
    %404 = tpu.matmul %403, %401, %cst_259 {dimension_numbers = #tpu.dot_dimension_numbers<[1], [0], [0], [1], [0, 0, 1, 1], [], []>} : vector<8x4xf32>, vector<4x16xf32>, vector<8x16xf32> -> vector<8x16xf32>
    %405 = arith.addf %398, %404 : vector<8x16xf32>
    %406 = vector.extract_strided_slice %400 {offsets = [0, 1], sizes = [4, 16], strides = [1, 1]} : vector<4x18xf32> to vector<4x16xf32>
    %c4_260 = arith.constant 4 : index
    %c0_261 = arith.constant 0 : index
    %c0_262 = arith.constant 0 : index
    %407 = vector.load %arg3[%c4_260, %c0_261, %c0_262] : memref<9x8x4xf32, #tpu.memory_space<vmem>>, vector<1x8x4xf32>
    %408 = vector.shape_cast %407 : vector<1x8x4xf32> to vector<8x4xf32>
    %cst_263 = arith.constant dense<0.000000e+00> : vector<8x16xf32>
    %409 = tpu.matmul %408, %406, %cst_263 {dimension_numbers = #tpu.dot_dimension_numbers<[1], [0], [0], [1], [0, 0, 1, 1], [], []>} : vector<8x4xf32>, vector<4x16xf32>, vector<8x16xf32> -> vector<8x16xf32>
    %410 = arith.addf %405, %409 : vector<8x16xf32>
    %411 = vector.extract_strided_slice %400 {offsets = [0, 2], sizes = [4, 16], strides = [1, 1]} : vector<4x18xf32> to vector<4x16xf32>
    %c5_264 = arith.constant 5 : index
    %c0_265 = arith.constant 0 : index
    %c0_266 = arith.constant 0 : index
    %412 = vector.load %arg3[%c5_264, %c0_265, %c0_266] : memref<9x8x4xf32, #tpu.memory_space<vmem>>, vector<1x8x4xf32>
    %413 = vector.shape_cast %412 : vector<1x8x4xf32> to vector<8x4xf32>
    %cst_267 = arith.constant dense<0.000000e+00> : vector<8x16xf32>
    %414 = tpu.matmul %413, %411, %cst_267 {dimension_numbers = #tpu.dot_dimension_numbers<[1], [0], [0], [1], [0, 0, 1, 1], [], []>} : vector<8x4xf32>, vector<4x16xf32>, vector<8x16xf32> -> vector<8x16xf32>
    %415 = arith.addf %410, %414 : vector<8x16xf32>
    %416 = vector.extract_strided_slice %6 {offsets = [0, 8, 0], sizes = [4, 1, 18], strides = [1, 1, 1]} : vector<4x18x18xf32> to vector<4x1x18xf32>
    %417 = vector.shape_cast %416 : vector<4x1x18xf32> to vector<4x18xf32>
    %418 = vector.extract_strided_slice %417 {offsets = [0, 0], sizes = [4, 16], strides = [1, 1]} : vector<4x18xf32> to vector<4x16xf32>
    %c6_268 = arith.constant 6 : index
    %c0_269 = arith.constant 0 : index
    %c0_270 = arith.constant 0 : index
    %419 = vector.load %arg3[%c6_268, %c0_269, %c0_270] : memref<9x8x4xf32, #tpu.memory_space<vmem>>, vector<1x8x4xf32>
    %420 = vector.shape_cast %419 : vector<1x8x4xf32> to vector<8x4xf32>
    %cst_271 = arith.constant dense<0.000000e+00> : vector<8x16xf32>
    %421 = tpu.matmul %420, %418, %cst_271 {dimension_numbers = #tpu.dot_dimension_numbers<[1], [0], [0], [1], [0, 0, 1, 1], [], []>} : vector<8x4xf32>, vector<4x16xf32>, vector<8x16xf32> -> vector<8x16xf32>
    %422 = arith.addf %415, %421 : vector<8x16xf32>
    %423 = vector.extract_strided_slice %417 {offsets = [0, 1], sizes = [4, 16], strides = [1, 1]} : vector<4x18xf32> to vector<4x16xf32>
    %c7_272 = arith.constant 7 : index
    %c0_273 = arith.constant 0 : index
    %c0_274 = arith.constant 0 : index
    %424 = vector.load %arg3[%c7_272, %c0_273, %c0_274] : memref<9x8x4xf32, #tpu.memory_space<vmem>>, vector<1x8x4xf32>
    %425 = vector.shape_cast %424 : vector<1x8x4xf32> to vector<8x4xf32>
    %cst_275 = arith.constant dense<0.000000e+00> : vector<8x16xf32>
    %426 = tpu.matmul %425, %423, %cst_275 {dimension_numbers = #tpu.dot_dimension_numbers<[1], [0], [0], [1], [0, 0, 1, 1], [], []>} : vector<8x4xf32>, vector<4x16xf32>, vector<8x16xf32> -> vector<8x16xf32>
    %427 = arith.addf %422, %426 : vector<8x16xf32>
    %428 = vector.extract_strided_slice %417 {offsets = [0, 2], sizes = [4, 16], strides = [1, 1]} : vector<4x18xf32> to vector<4x16xf32>
    %c8_276 = arith.constant 8 : index
    %c0_277 = arith.constant 0 : index
    %c0_278 = arith.constant 0 : index
    %429 = vector.load %arg3[%c8_276, %c0_277, %c0_278] : memref<9x8x4xf32, #tpu.memory_space<vmem>>, vector<1x8x4xf32>
    %430 = vector.shape_cast %429 : vector<1x8x4xf32> to vector<8x4xf32>
    %cst_279 = arith.constant dense<0.000000e+00> : vector<8x16xf32>
    %431 = tpu.matmul %430, %428, %cst_279 {dimension_numbers = #tpu.dot_dimension_numbers<[1], [0], [0], [1], [0, 0, 1, 1], [], []>} : vector<8x4xf32>, vector<4x16xf32>, vector<8x16xf32> -> vector<8x16xf32>
    %432 = arith.addf %427, %431 : vector<8x16xf32>
    %c0_280 = arith.constant 0 : index
    %c0_281 = arith.constant 0 : index
    %c96 = arith.constant 96 : index
    %433 = vector.load %arg4[%c0_280, %c0_281, %c96] : memref<1x8x256xf32, #tpu.memory_space<vmem>>, vector<1x8x16xf32>
    %434 = vector.shape_cast %433 : vector<1x8x16xf32> to vector<8x16xf32>
    %435 = vector.shape_cast %432 : vector<8x16xf32> to vector<1x8x16xf32>
    tpu.vector_store %arg4[%c0_280, %c0_281, %c96], %435 {strides = array<i32>} : memref<1x8x256xf32, #tpu.memory_space<vmem>>, vector<1x8x16xf32>,
    %cst_282 = arith.constant dense<0.000000e+00> : vector<8xf32>
    %436 = vector.multi_reduction <add>, %432, %cst_282 [1] : vector<8x16xf32> to vector<8xf32>
    %437 = vector.shape_cast %436 : vector<8xf32> to vector<8x1xf32>
    %438 = arith.addf %376, %437 : vector<8x1xf32>
    %439 = arith.mulf %432, %432 : vector<8x16xf32>
    %cst_283 = arith.constant dense<0.000000e+00> : vector<8xf32>
    %440 = vector.multi_reduction <add>, %439, %cst_283 [1] : vector<8x16xf32> to vector<8xf32>
    %441 = vector.shape_cast %440 : vector<8xf32> to vector<8x1xf32>
    %442 = arith.addf %380, %441 : vector<8x1xf32>
    %cst_284 = arith.constant 0.000000e+00 : f32
    %443 = vector.broadcast %cst_284 : f32 to vector<8x16xf32>
    %444 = vector.extract_strided_slice %6 {offsets = [0, 7, 0], sizes = [4, 1, 18], strides = [1, 1, 1]} : vector<4x18x18xf32> to vector<4x1x18xf32>
    %445 = vector.shape_cast %444 : vector<4x1x18xf32> to vector<4x18xf32>
    %446 = vector.extract_strided_slice %445 {offsets = [0, 0], sizes = [4, 16], strides = [1, 1]} : vector<4x18xf32> to vector<4x16xf32>
    %c0_285 = arith.constant 0 : index
    %c0_286 = arith.constant 0 : index
    %c0_287 = arith.constant 0 : index
    %447 = vector.load %arg3[%c0_285, %c0_286, %c0_287] : memref<9x8x4xf32, #tpu.memory_space<vmem>>, vector<1x8x4xf32>
    %448 = vector.shape_cast %447 : vector<1x8x4xf32> to vector<8x4xf32>
    %cst_288 = arith.constant dense<0.000000e+00> : vector<8x16xf32>
    %449 = tpu.matmul %448, %446, %cst_288 {dimension_numbers = #tpu.dot_dimension_numbers<[1], [0], [0], [1], [0, 0, 1, 1], [], []>} : vector<8x4xf32>, vector<4x16xf32>, vector<8x16xf32> -> vector<8x16xf32>
    %450 = arith.addf %443, %449 : vector<8x16xf32>
    %451 = vector.extract_strided_slice %445 {offsets = [0, 1], sizes = [4, 16], strides = [1, 1]} : vector<4x18xf32> to vector<4x16xf32>
    %c1_289 = arith.constant 1 : index
    %c0_290 = arith.constant 0 : index
    %c0_291 = arith.constant 0 : index
    %452 = vector.load %arg3[%c1_289, %c0_290, %c0_291] : memref<9x8x4xf32, #tpu.memory_space<vmem>>, vector<1x8x4xf32>
    %453 = vector.shape_cast %452 : vector<1x8x4xf32> to vector<8x4xf32>
    %cst_292 = arith.constant dense<0.000000e+00> : vector<8x16xf32>
    %454 = tpu.matmul %453, %451, %cst_292 {dimension_numbers = #tpu.dot_dimension_numbers<[1], [0], [0], [1], [0, 0, 1, 1], [], []>} : vector<8x4xf32>, vector<4x16xf32>, vector<8x16xf32> -> vector<8x16xf32>
    %455 = arith.addf %450, %454 : vector<8x16xf32>
    %456 = vector.extract_strided_slice %445 {offsets = [0, 2], sizes = [4, 16], strides = [1, 1]} : vector<4x18xf32> to vector<4x16xf32>
    %c2_293 = arith.constant 2 : index
    %c0_294 = arith.constant 0 : index
    %c0_295 = arith.constant 0 : index
    %457 = vector.load %arg3[%c2_293, %c0_294, %c0_295] : memref<9x8x4xf32, #tpu.memory_space<vmem>>, vector<1x8x4xf32>
    %458 = vector.shape_cast %457 : vector<1x8x4xf32> to vector<8x4xf32>
    %cst_296 = arith.constant dense<0.000000e+00> : vector<8x16xf32>
    %459 = tpu.matmul %458, %456, %cst_296 {dimension_numbers = #tpu.dot_dimension_numbers<[1], [0], [0], [1], [0, 0, 1, 1], [], []>} : vector<8x4xf32>, vector<4x16xf32>, vector<8x16xf32> -> vector<8x16xf32>
    %460 = arith.addf %455, %459 : vector<8x16xf32>
    %461 = vector.extract_strided_slice %6 {offsets = [0, 8, 0], sizes = [4, 1, 18], strides = [1, 1, 1]} : vector<4x18x18xf32> to vector<4x1x18xf32>
    %462 = vector.shape_cast %461 : vector<4x1x18xf32> to vector<4x18xf32>
    %463 = vector.extract_strided_slice %462 {offsets = [0, 0], sizes = [4, 16], strides = [1, 1]} : vector<4x18xf32> to vector<4x16xf32>
    %c3_297 = arith.constant 3 : index
    %c0_298 = arith.constant 0 : index
    %c0_299 = arith.constant 0 : index
    %464 = vector.load %arg3[%c3_297, %c0_298, %c0_299] : memref<9x8x4xf32, #tpu.memory_space<vmem>>, vector<1x8x4xf32>
    %465 = vector.shape_cast %464 : vector<1x8x4xf32> to vector<8x4xf32>
    %cst_300 = arith.constant dense<0.000000e+00> : vector<8x16xf32>
    %466 = tpu.matmul %465, %463, %cst_300 {dimension_numbers = #tpu.dot_dimension_numbers<[1], [0], [0], [1], [0, 0, 1, 1], [], []>} : vector<8x4xf32>, vector<4x16xf32>, vector<8x16xf32> -> vector<8x16xf32>
    %467 = arith.addf %460, %466 : vector<8x16xf32>
    %468 = vector.extract_strided_slice %462 {offsets = [0, 1], sizes = [4, 16], strides = [1, 1]} : vector<4x18xf32> to vector<4x16xf32>
    %c4_301 = arith.constant 4 : index
    %c0_302 = arith.constant 0 : index
    %c0_303 = arith.constant 0 : index
    %469 = vector.load %arg3[%c4_301, %c0_302, %c0_303] : memref<9x8x4xf32, #tpu.memory_space<vmem>>, vector<1x8x4xf32>
    %470 = vector.shape_cast %469 : vector<1x8x4xf32> to vector<8x4xf32>
    %cst_304 = arith.constant dense<0.000000e+00> : vector<8x16xf32>
    %471 = tpu.matmul %470, %468, %cst_304 {dimension_numbers = #tpu.dot_dimension_numbers<[1], [0], [0], [1], [0, 0, 1, 1], [], []>} : vector<8x4xf32>, vector<4x16xf32>, vector<8x16xf32> -> vector<8x16xf32>
    %472 = arith.addf %467, %471 : vector<8x16xf32>
    %473 = vector.extract_strided_slice %462 {offsets = [0, 2], sizes = [4, 16], strides = [1, 1]} : vector<4x18xf32> to vector<4x16xf32>
    %c5_305 = arith.constant 5 : index
    %c0_306 = arith.constant 0 : index
    %c0_307 = arith.constant 0 : index
    %474 = vector.load %arg3[%c5_305, %c0_306, %c0_307] : memref<9x8x4xf32, #tpu.memory_space<vmem>>, vector<1x8x4xf32>
    %475 = vector.shape_cast %474 : vector<1x8x4xf32> to vector<8x4xf32>
    %cst_308 = arith.constant dense<0.000000e+00> : vector<8x16xf32>
    %476 = tpu.matmul %475, %473, %cst_308 {dimension_numbers = #tpu.dot_dimension_numbers<[1], [0], [0], [1], [0, 0, 1, 1], [], []>} : vector<8x4xf32>, vector<4x16xf32>, vector<8x16xf32> -> vector<8x16xf32>
    %477 = arith.addf %472, %476 : vector<8x16xf32>
    %478 = vector.extract_strided_slice %6 {offsets = [0, 9, 0], sizes = [4, 1, 18], strides = [1, 1, 1]} : vector<4x18x18xf32> to vector<4x1x18xf32>
    %479 = vector.shape_cast %478 : vector<4x1x18xf32> to vector<4x18xf32>
    %480 = vector.extract_strided_slice %479 {offsets = [0, 0], sizes = [4, 16], strides = [1, 1]} : vector<4x18xf32> to vector<4x16xf32>
    %c6_309 = arith.constant 6 : index
    %c0_310 = arith.constant 0 : index
    %c0_311 = arith.constant 0 : index
    %481 = vector.load %arg3[%c6_309, %c0_310, %c0_311] : memref<9x8x4xf32, #tpu.memory_space<vmem>>, vector<1x8x4xf32>
    %482 = vector.shape_cast %481 : vector<1x8x4xf32> to vector<8x4xf32>
    %cst_312 = arith.constant dense<0.000000e+00> : vector<8x16xf32>
    %483 = tpu.matmul %482, %480, %cst_312 {dimension_numbers = #tpu.dot_dimension_numbers<[1], [0], [0], [1], [0, 0, 1, 1], [], []>} : vector<8x4xf32>, vector<4x16xf32>, vector<8x16xf32> -> vector<8x16xf32>
    %484 = arith.addf %477, %483 : vector<8x16xf32>
    %485 = vector.extract_strided_slice %479 {offsets = [0, 1], sizes = [4, 16], strides = [1, 1]} : vector<4x18xf32> to vector<4x16xf32>
    %c7_313 = arith.constant 7 : index
    %c0_314 = arith.constant 0 : index
    %c0_315 = arith.constant 0 : index
    %486 = vector.load %arg3[%c7_313, %c0_314, %c0_315] : memref<9x8x4xf32, #tpu.memory_space<vmem>>, vector<1x8x4xf32>
    %487 = vector.shape_cast %486 : vector<1x8x4xf32> to vector<8x4xf32>
    %cst_316 = arith.constant dense<0.000000e+00> : vector<8x16xf32>
    %488 = tpu.matmul %487, %485, %cst_316 {dimension_numbers = #tpu.dot_dimension_numbers<[1], [0], [0], [1], [0, 0, 1, 1], [], []>} : vector<8x4xf32>, vector<4x16xf32>, vector<8x16xf32> -> vector<8x16xf32>
    %489 = arith.addf %484, %488 : vector<8x16xf32>
    %490 = vector.extract_strided_slice %479 {offsets = [0, 2], sizes = [4, 16], strides = [1, 1]} : vector<4x18xf32> to vector<4x16xf32>
    %c8_317 = arith.constant 8 : index
    %c0_318 = arith.constant 0 : index
    %c0_319 = arith.constant 0 : index
    %491 = vector.load %arg3[%c8_317, %c0_318, %c0_319] : memref<9x8x4xf32, #tpu.memory_space<vmem>>, vector<1x8x4xf32>
    %492 = vector.shape_cast %491 : vector<1x8x4xf32> to vector<8x4xf32>
    %cst_320 = arith.constant dense<0.000000e+00> : vector<8x16xf32>
    %493 = tpu.matmul %492, %490, %cst_320 {dimension_numbers = #tpu.dot_dimension_numbers<[1], [0], [0], [1], [0, 0, 1, 1], [], []>} : vector<8x4xf32>, vector<4x16xf32>, vector<8x16xf32> -> vector<8x16xf32>
    %494 = arith.addf %489, %493 : vector<8x16xf32>
    %c0_321 = arith.constant 0 : index
    %c0_322 = arith.constant 0 : index
    %c112 = arith.constant 112 : index
    %495 = vector.load %arg4[%c0_321, %c0_322, %c112] : memref<1x8x256xf32, #tpu.memory_space<vmem>>, vector<1x8x16xf32>
    %496 = vector.shape_cast %495 : vector<1x8x16xf32> to vector<8x16xf32>
    %497 = vector.shape_cast %494 : vector<8x16xf32> to vector<1x8x16xf32>
    tpu.vector_store %arg4[%c0_321, %c0_322, %c112], %497 {strides = array<i32>} : memref<1x8x256xf32, #tpu.memory_space<vmem>>, vector<1x8x16xf32>,
    %cst_323 = arith.constant dense<0.000000e+00> : vector<8xf32>
    %498 = vector.multi_reduction <add>, %494, %cst_323 [1] : vector<8x16xf32> to vector<8xf32>
    %499 = vector.shape_cast %498 : vector<8xf32> to vector<8x1xf32>
    %500 = arith.addf %438, %499 : vector<8x1xf32>
    %501 = arith.mulf %494, %494 : vector<8x16xf32>
    %cst_324 = arith.constant dense<0.000000e+00> : vector<8xf32>
    %502 = vector.multi_reduction <add>, %501, %cst_324 [1] : vector<8x16xf32> to vector<8xf32>
    %503 = vector.shape_cast %502 : vector<8xf32> to vector<8x1xf32>
    %504 = arith.addf %442, %503 : vector<8x1xf32>
    %cst_325 = arith.constant 0.000000e+00 : f32
    %505 = vector.broadcast %cst_325 : f32 to vector<8x16xf32>
    %506 = vector.extract_strided_slice %6 {offsets = [0, 8, 0], sizes = [4, 1, 18], strides = [1, 1, 1]} : vector<4x18x18xf32> to vector<4x1x18xf32>
    %507 = vector.shape_cast %506 : vector<4x1x18xf32> to vector<4x18xf32>
    %508 = vector.extract_strided_slice %507 {offsets = [0, 0], sizes = [4, 16], strides = [1, 1]} : vector<4x18xf32> to vector<4x16xf32>
    %c0_326 = arith.constant 0 : index
    %c0_327 = arith.constant 0 : index
    %c0_328 = arith.constant 0 : index
    %509 = vector.load %arg3[%c0_326, %c0_327, %c0_328] : memref<9x8x4xf32, #tpu.memory_space<vmem>>, vector<1x8x4xf32>
    %510 = vector.shape_cast %509 : vector<1x8x4xf32> to vector<8x4xf32>
    %cst_329 = arith.constant dense<0.000000e+00> : vector<8x16xf32>
    %511 = tpu.matmul %510, %508, %cst_329 {dimension_numbers = #tpu.dot_dimension_numbers<[1], [0], [0], [1], [0, 0, 1, 1], [], []>} : vector<8x4xf32>, vector<4x16xf32>, vector<8x16xf32> -> vector<8x16xf32>
    %512 = arith.addf %505, %511 : vector<8x16xf32>
    %513 = vector.extract_strided_slice %507 {offsets = [0, 1], sizes = [4, 16], strides = [1, 1]} : vector<4x18xf32> to vector<4x16xf32>
    %c1_330 = arith.constant 1 : index
    %c0_331 = arith.constant 0 : index
    %c0_332 = arith.constant 0 : index
    %514 = vector.load %arg3[%c1_330, %c0_331, %c0_332] : memref<9x8x4xf32, #tpu.memory_space<vmem>>, vector<1x8x4xf32>
    %515 = vector.shape_cast %514 : vector<1x8x4xf32> to vector<8x4xf32>
    %cst_333 = arith.constant dense<0.000000e+00> : vector<8x16xf32>
    %516 = tpu.matmul %515, %513, %cst_333 {dimension_numbers = #tpu.dot_dimension_numbers<[1], [0], [0], [1], [0, 0, 1, 1], [], []>} : vector<8x4xf32>, vector<4x16xf32>, vector<8x16xf32> -> vector<8x16xf32>
    %517 = arith.addf %512, %516 : vector<8x16xf32>
    %518 = vector.extract_strided_slice %507 {offsets = [0, 2], sizes = [4, 16], strides = [1, 1]} : vector<4x18xf32> to vector<4x16xf32>
    %c2_334 = arith.constant 2 : index
    %c0_335 = arith.constant 0 : index
    %c0_336 = arith.constant 0 : index
    %519 = vector.load %arg3[%c2_334, %c0_335, %c0_336] : memref<9x8x4xf32, #tpu.memory_space<vmem>>, vector<1x8x4xf32>
    %520 = vector.shape_cast %519 : vector<1x8x4xf32> to vector<8x4xf32>
    %cst_337 = arith.constant dense<0.000000e+00> : vector<8x16xf32>
    %521 = tpu.matmul %520, %518, %cst_337 {dimension_numbers = #tpu.dot_dimension_numbers<[1], [0], [0], [1], [0, 0, 1, 1], [], []>} : vector<8x4xf32>, vector<4x16xf32>, vector<8x16xf32> -> vector<8x16xf32>
    %522 = arith.addf %517, %521 : vector<8x16xf32>
    %523 = vector.extract_strided_slice %6 {offsets = [0, 9, 0], sizes = [4, 1, 18], strides = [1, 1, 1]} : vector<4x18x18xf32> to vector<4x1x18xf32>
    %524 = vector.shape_cast %523 : vector<4x1x18xf32> to vector<4x18xf32>
    %525 = vector.extract_strided_slice %524 {offsets = [0, 0], sizes = [4, 16], strides = [1, 1]} : vector<4x18xf32> to vector<4x16xf32>
    %c3_338 = arith.constant 3 : index
    %c0_339 = arith.constant 0 : index
    %c0_340 = arith.constant 0 : index
    %526 = vector.load %arg3[%c3_338, %c0_339, %c0_340] : memref<9x8x4xf32, #tpu.memory_space<vmem>>, vector<1x8x4xf32>
    %527 = vector.shape_cast %526 : vector<1x8x4xf32> to vector<8x4xf32>
    %cst_341 = arith.constant dense<0.000000e+00> : vector<8x16xf32>
    %528 = tpu.matmul %527, %525, %cst_341 {dimension_numbers = #tpu.dot_dimension_numbers<[1], [0], [0], [1], [0, 0, 1, 1], [], []>} : vector<8x4xf32>, vector<4x16xf32>, vector<8x16xf32> -> vector<8x16xf32>
    %529 = arith.addf %522, %528 : vector<8x16xf32>
    %530 = vector.extract_strided_slice %524 {offsets = [0, 1], sizes = [4, 16], strides = [1, 1]} : vector<4x18xf32> to vector<4x16xf32>
    %c4_342 = arith.constant 4 : index
    %c0_343 = arith.constant 0 : index
    %c0_344 = arith.constant 0 : index
    %531 = vector.load %arg3[%c4_342, %c0_343, %c0_344] : memref<9x8x4xf32, #tpu.memory_space<vmem>>, vector<1x8x4xf32>
    %532 = vector.shape_cast %531 : vector<1x8x4xf32> to vector<8x4xf32>
    %cst_345 = arith.constant dense<0.000000e+00> : vector<8x16xf32>
    %533 = tpu.matmul %532, %530, %cst_345 {dimension_numbers = #tpu.dot_dimension_numbers<[1], [0], [0], [1], [0, 0, 1, 1], [], []>} : vector<8x4xf32>, vector<4x16xf32>, vector<8x16xf32> -> vector<8x16xf32>
    %534 = arith.addf %529, %533 : vector<8x16xf32>
    %535 = vector.extract_strided_slice %524 {offsets = [0, 2], sizes = [4, 16], strides = [1, 1]} : vector<4x18xf32> to vector<4x16xf32>
    %c5_346 = arith.constant 5 : index
    %c0_347 = arith.constant 0 : index
    %c0_348 = arith.constant 0 : index
    %536 = vector.load %arg3[%c5_346, %c0_347, %c0_348] : memref<9x8x4xf32, #tpu.memory_space<vmem>>, vector<1x8x4xf32>
    %537 = vector.shape_cast %536 : vector<1x8x4xf32> to vector<8x4xf32>
    %cst_349 = arith.constant dense<0.000000e+00> : vector<8x16xf32>
    %538 = tpu.matmul %537, %535, %cst_349 {dimension_numbers = #tpu.dot_dimension_numbers<[1], [0], [0], [1], [0, 0, 1, 1], [], []>} : vector<8x4xf32>, vector<4x16xf32>, vector<8x16xf32> -> vector<8x16xf32>
    %539 = arith.addf %534, %538 : vector<8x16xf32>
    %540 = vector.extract_strided_slice %6 {offsets = [0, 10, 0], sizes = [4, 1, 18], strides = [1, 1, 1]} : vector<4x18x18xf32> to vector<4x1x18xf32>
    %541 = vector.shape_cast %540 : vector<4x1x18xf32> to vector<4x18xf32>
    %542 = vector.extract_strided_slice %541 {offsets = [0, 0], sizes = [4, 16], strides = [1, 1]} : vector<4x18xf32> to vector<4x16xf32>
    %c6_350 = arith.constant 6 : index
    %c0_351 = arith.constant 0 : index
    %c0_352 = arith.constant 0 : index
    %543 = vector.load %arg3[%c6_350, %c0_351, %c0_352] : memref<9x8x4xf32, #tpu.memory_space<vmem>>, vector<1x8x4xf32>
    %544 = vector.shape_cast %543 : vector<1x8x4xf32> to vector<8x4xf32>
    %cst_353 = arith.constant dense<0.000000e+00> : vector<8x16xf32>
    %545 = tpu.matmul %544, %542, %cst_353 {dimension_numbers = #tpu.dot_dimension_numbers<[1], [0], [0], [1], [0, 0, 1, 1], [], []>} : vector<8x4xf32>, vector<4x16xf32>, vector<8x16xf32> -> vector<8x16xf32>
    %546 = arith.addf %539, %545 : vector<8x16xf32>
    %547 = vector.extract_strided_slice %541 {offsets = [0, 1], sizes = [4, 16], strides = [1, 1]} : vector<4x18xf32> to vector<4x16xf32>
    %c7_354 = arith.constant 7 : index
    %c0_355 = arith.constant 0 : index
    %c0_356 = arith.constant 0 : index
    %548 = vector.load %arg3[%c7_354, %c0_355, %c0_356] : memref<9x8x4xf32, #tpu.memory_space<vmem>>, vector<1x8x4xf32>
    %549 = vector.shape_cast %548 : vector<1x8x4xf32> to vector<8x4xf32>
    %cst_357 = arith.constant dense<0.000000e+00> : vector<8x16xf32>
    %550 = tpu.matmul %549, %547, %cst_357 {dimension_numbers = #tpu.dot_dimension_numbers<[1], [0], [0], [1], [0, 0, 1, 1], [], []>} : vector<8x4xf32>, vector<4x16xf32>, vector<8x16xf32> -> vector<8x16xf32>
    %551 = arith.addf %546, %550 : vector<8x16xf32>
    %552 = vector.extract_strided_slice %541 {offsets = [0, 2], sizes = [4, 16], strides = [1, 1]} : vector<4x18xf32> to vector<4x16xf32>
    %c8_358 = arith.constant 8 : index
    %c0_359 = arith.constant 0 : index
    %c0_360 = arith.constant 0 : index
    %553 = vector.load %arg3[%c8_358, %c0_359, %c0_360] : memref<9x8x4xf32, #tpu.memory_space<vmem>>, vector<1x8x4xf32>
    %554 = vector.shape_cast %553 : vector<1x8x4xf32> to vector<8x4xf32>
    %cst_361 = arith.constant dense<0.000000e+00> : vector<8x16xf32>
    %555 = tpu.matmul %554, %552, %cst_361 {dimension_numbers = #tpu.dot_dimension_numbers<[1], [0], [0], [1], [0, 0, 1, 1], [], []>} : vector<8x4xf32>, vector<4x16xf32>, vector<8x16xf32> -> vector<8x16xf32>
    %556 = arith.addf %551, %555 : vector<8x16xf32>
    %c0_362 = arith.constant 0 : index
    %c0_363 = arith.constant 0 : index
    %c128 = arith.constant 128 : index
    %557 = vector.load %arg4[%c0_362, %c0_363, %c128] : memref<1x8x256xf32, #tpu.memory_space<vmem>>, vector<1x8x16xf32>
    %558 = vector.shape_cast %557 : vector<1x8x16xf32> to vector<8x16xf32>
    %559 = vector.shape_cast %556 : vector<8x16xf32> to vector<1x8x16xf32>
    tpu.vector_store %arg4[%c0_362, %c0_363, %c128], %559 {strides = array<i32>} : memref<1x8x256xf32, #tpu.memory_space<vmem>>, vector<1x8x16xf32>,
    %cst_364 = arith.constant dense<0.000000e+00> : vector<8xf32>
    %560 = vector.multi_reduction <add>, %556, %cst_364 [1] : vector<8x16xf32> to vector<8xf32>
    %561 = vector.shape_cast %560 : vector<8xf32> to vector<8x1xf32>
    %562 = arith.addf %500, %561 : vector<8x1xf32>
    %563 = arith.mulf %556, %556 : vector<8x16xf32>
    %cst_365 = arith.constant dense<0.000000e+00> : vector<8xf32>
    %564 = vector.multi_reduction <add>, %563, %cst_365 [1] : vector<8x16xf32> to vector<8xf32>
    %565 = vector.shape_cast %564 : vector<8xf32> to vector<8x1xf32>
    %566 = arith.addf %504, %565 : vector<8x1xf32>
    %cst_366 = arith.constant 0.000000e+00 : f32
    %567 = vector.broadcast %cst_366 : f32 to vector<8x16xf32>
    %568 = vector.extract_strided_slice %6 {offsets = [0, 9, 0], sizes = [4, 1, 18], strides = [1, 1, 1]} : vector<4x18x18xf32> to vector<4x1x18xf32>
    %569 = vector.shape_cast %568 : vector<4x1x18xf32> to vector<4x18xf32>
    %570 = vector.extract_strided_slice %569 {offsets = [0, 0], sizes = [4, 16], strides = [1, 1]} : vector<4x18xf32> to vector<4x16xf32>
    %c0_367 = arith.constant 0 : index
    %c0_368 = arith.constant 0 : index
    %c0_369 = arith.constant 0 : index
    %571 = vector.load %arg3[%c0_367, %c0_368, %c0_369] : memref<9x8x4xf32, #tpu.memory_space<vmem>>, vector<1x8x4xf32>
    %572 = vector.shape_cast %571 : vector<1x8x4xf32> to vector<8x4xf32>
    %cst_370 = arith.constant dense<0.000000e+00> : vector<8x16xf32>
    %573 = tpu.matmul %572, %570, %cst_370 {dimension_numbers = #tpu.dot_dimension_numbers<[1], [0], [0], [1], [0, 0, 1, 1], [], []>} : vector<8x4xf32>, vector<4x16xf32>, vector<8x16xf32> -> vector<8x16xf32>
    %574 = arith.addf %567, %573 : vector<8x16xf32>
    %575 = vector.extract_strided_slice %569 {offsets = [0, 1], sizes = [4, 16], strides = [1, 1]} : vector<4x18xf32> to vector<4x16xf32>
    %c1_371 = arith.constant 1 : index
    %c0_372 = arith.constant 0 : index
    %c0_373 = arith.constant 0 : index
    %576 = vector.load %arg3[%c1_371, %c0_372, %c0_373] : memref<9x8x4xf32, #tpu.memory_space<vmem>>, vector<1x8x4xf32>
    %577 = vector.shape_cast %576 : vector<1x8x4xf32> to vector<8x4xf32>
    %cst_374 = arith.constant dense<0.000000e+00> : vector<8x16xf32>
    %578 = tpu.matmul %577, %575, %cst_374 {dimension_numbers = #tpu.dot_dimension_numbers<[1], [0], [0], [1], [0, 0, 1, 1], [], []>} : vector<8x4xf32>, vector<4x16xf32>, vector<8x16xf32> -> vector<8x16xf32>
    %579 = arith.addf %574, %578 : vector<8x16xf32>
    %580 = vector.extract_strided_slice %569 {offsets = [0, 2], sizes = [4, 16], strides = [1, 1]} : vector<4x18xf32> to vector<4x16xf32>
    %c2_375 = arith.constant 2 : index
    %c0_376 = arith.constant 0 : index
    %c0_377 = arith.constant 0 : index
    %581 = vector.load %arg3[%c2_375, %c0_376, %c0_377] : memref<9x8x4xf32, #tpu.memory_space<vmem>>, vector<1x8x4xf32>
    %582 = vector.shape_cast %581 : vector<1x8x4xf32> to vector<8x4xf32>
    %cst_378 = arith.constant dense<0.000000e+00> : vector<8x16xf32>
    %583 = tpu.matmul %582, %580, %cst_378 {dimension_numbers = #tpu.dot_dimension_numbers<[1], [0], [0], [1], [0, 0, 1, 1], [], []>} : vector<8x4xf32>, vector<4x16xf32>, vector<8x16xf32> -> vector<8x16xf32>
    %584 = arith.addf %579, %583 : vector<8x16xf32>
    %585 = vector.extract_strided_slice %6 {offsets = [0, 10, 0], sizes = [4, 1, 18], strides = [1, 1, 1]} : vector<4x18x18xf32> to vector<4x1x18xf32>
    %586 = vector.shape_cast %585 : vector<4x1x18xf32> to vector<4x18xf32>
    %587 = vector.extract_strided_slice %586 {offsets = [0, 0], sizes = [4, 16], strides = [1, 1]} : vector<4x18xf32> to vector<4x16xf32>
    %c3_379 = arith.constant 3 : index
    %c0_380 = arith.constant 0 : index
    %c0_381 = arith.constant 0 : index
    %588 = vector.load %arg3[%c3_379, %c0_380, %c0_381] : memref<9x8x4xf32, #tpu.memory_space<vmem>>, vector<1x8x4xf32>
    %589 = vector.shape_cast %588 : vector<1x8x4xf32> to vector<8x4xf32>
    %cst_382 = arith.constant dense<0.000000e+00> : vector<8x16xf32>
    %590 = tpu.matmul %589, %587, %cst_382 {dimension_numbers = #tpu.dot_dimension_numbers<[1], [0], [0], [1], [0, 0, 1, 1], [], []>} : vector<8x4xf32>, vector<4x16xf32>, vector<8x16xf32> -> vector<8x16xf32>
    %591 = arith.addf %584, %590 : vector<8x16xf32>
    %592 = vector.extract_strided_slice %586 {offsets = [0, 1], sizes = [4, 16], strides = [1, 1]} : vector<4x18xf32> to vector<4x16xf32>
    %c4_383 = arith.constant 4 : index
    %c0_384 = arith.constant 0 : index
    %c0_385 = arith.constant 0 : index
    %593 = vector.load %arg3[%c4_383, %c0_384, %c0_385] : memref<9x8x4xf32, #tpu.memory_space<vmem>>, vector<1x8x4xf32>
    %594 = vector.shape_cast %593 : vector<1x8x4xf32> to vector<8x4xf32>
    %cst_386 = arith.constant dense<0.000000e+00> : vector<8x16xf32>
    %595 = tpu.matmul %594, %592, %cst_386 {dimension_numbers = #tpu.dot_dimension_numbers<[1], [0], [0], [1], [0, 0, 1, 1], [], []>} : vector<8x4xf32>, vector<4x16xf32>, vector<8x16xf32> -> vector<8x16xf32>
    %596 = arith.addf %591, %595 : vector<8x16xf32>
    %597 = vector.extract_strided_slice %586 {offsets = [0, 2], sizes = [4, 16], strides = [1, 1]} : vector<4x18xf32> to vector<4x16xf32>
    %c5_387 = arith.constant 5 : index
    %c0_388 = arith.constant 0 : index
    %c0_389 = arith.constant 0 : index
    %598 = vector.load %arg3[%c5_387, %c0_388, %c0_389] : memref<9x8x4xf32, #tpu.memory_space<vmem>>, vector<1x8x4xf32>
    %599 = vector.shape_cast %598 : vector<1x8x4xf32> to vector<8x4xf32>
    %cst_390 = arith.constant dense<0.000000e+00> : vector<8x16xf32>
    %600 = tpu.matmul %599, %597, %cst_390 {dimension_numbers = #tpu.dot_dimension_numbers<[1], [0], [0], [1], [0, 0, 1, 1], [], []>} : vector<8x4xf32>, vector<4x16xf32>, vector<8x16xf32> -> vector<8x16xf32>
    %601 = arith.addf %596, %600 : vector<8x16xf32>
    %602 = vector.extract_strided_slice %6 {offsets = [0, 11, 0], sizes = [4, 1, 18], strides = [1, 1, 1]} : vector<4x18x18xf32> to vector<4x1x18xf32>
    %603 = vector.shape_cast %602 : vector<4x1x18xf32> to vector<4x18xf32>
    %604 = vector.extract_strided_slice %603 {offsets = [0, 0], sizes = [4, 16], strides = [1, 1]} : vector<4x18xf32> to vector<4x16xf32>
    %c6_391 = arith.constant 6 : index
    %c0_392 = arith.constant 0 : index
    %c0_393 = arith.constant 0 : index
    %605 = vector.load %arg3[%c6_391, %c0_392, %c0_393] : memref<9x8x4xf32, #tpu.memory_space<vmem>>, vector<1x8x4xf32>
    %606 = vector.shape_cast %605 : vector<1x8x4xf32> to vector<8x4xf32>
    %cst_394 = arith.constant dense<0.000000e+00> : vector<8x16xf32>
    %607 = tpu.matmul %606, %604, %cst_394 {dimension_numbers = #tpu.dot_dimension_numbers<[1], [0], [0], [1], [0, 0, 1, 1], [], []>} : vector<8x4xf32>, vector<4x16xf32>, vector<8x16xf32> -> vector<8x16xf32>
    %608 = arith.addf %601, %607 : vector<8x16xf32>
    %609 = vector.extract_strided_slice %603 {offsets = [0, 1], sizes = [4, 16], strides = [1, 1]} : vector<4x18xf32> to vector<4x16xf32>
    %c7_395 = arith.constant 7 : index
    %c0_396 = arith.constant 0 : index
    %c0_397 = arith.constant 0 : index
    %610 = vector.load %arg3[%c7_395, %c0_396, %c0_397] : memref<9x8x4xf32, #tpu.memory_space<vmem>>, vector<1x8x4xf32>
    %611 = vector.shape_cast %610 : vector<1x8x4xf32> to vector<8x4xf32>
    %cst_398 = arith.constant dense<0.000000e+00> : vector<8x16xf32>
    %612 = tpu.matmul %611, %609, %cst_398 {dimension_numbers = #tpu.dot_dimension_numbers<[1], [0], [0], [1], [0, 0, 1, 1], [], []>} : vector<8x4xf32>, vector<4x16xf32>, vector<8x16xf32> -> vector<8x16xf32>
    %613 = arith.addf %608, %612 : vector<8x16xf32>
    %614 = vector.extract_strided_slice %603 {offsets = [0, 2], sizes = [4, 16], strides = [1, 1]} : vector<4x18xf32> to vector<4x16xf32>
    %c8_399 = arith.constant 8 : index
    %c0_400 = arith.constant 0 : index
    %c0_401 = arith.constant 0 : index
    %615 = vector.load %arg3[%c8_399, %c0_400, %c0_401] : memref<9x8x4xf32, #tpu.memory_space<vmem>>, vector<1x8x4xf32>
    %616 = vector.shape_cast %615 : vector<1x8x4xf32> to vector<8x4xf32>
    %cst_402 = arith.constant dense<0.000000e+00> : vector<8x16xf32>
    %617 = tpu.matmul %616, %614, %cst_402 {dimension_numbers = #tpu.dot_dimension_numbers<[1], [0], [0], [1], [0, 0, 1, 1], [], []>} : vector<8x4xf32>, vector<4x16xf32>, vector<8x16xf32> -> vector<8x16xf32>
    %618 = arith.addf %613, %617 : vector<8x16xf32>
    %c0_403 = arith.constant 0 : index
    %c0_404 = arith.constant 0 : index
    %c144 = arith.constant 144 : index
    %619 = vector.load %arg4[%c0_403, %c0_404, %c144] : memref<1x8x256xf32, #tpu.memory_space<vmem>>, vector<1x8x16xf32>
    %620 = vector.shape_cast %619 : vector<1x8x16xf32> to vector<8x16xf32>
    %621 = vector.shape_cast %618 : vector<8x16xf32> to vector<1x8x16xf32>
    tpu.vector_store %arg4[%c0_403, %c0_404, %c144], %621 {strides = array<i32>} : memref<1x8x256xf32, #tpu.memory_space<vmem>>, vector<1x8x16xf32>,
    %cst_405 = arith.constant dense<0.000000e+00> : vector<8xf32>
    %622 = vector.multi_reduction <add>, %618, %cst_405 [1] : vector<8x16xf32> to vector<8xf32>
    %623 = vector.shape_cast %622 : vector<8xf32> to vector<8x1xf32>
    %624 = arith.addf %562, %623 : vector<8x1xf32>
    %625 = arith.mulf %618, %618 : vector<8x16xf32>
    %cst_406 = arith.constant dense<0.000000e+00> : vector<8xf32>
    %626 = vector.multi_reduction <add>, %625, %cst_406 [1] : vector<8x16xf32> to vector<8xf32>
    %627 = vector.shape_cast %626 : vector<8xf32> to vector<8x1xf32>
    %628 = arith.addf %566, %627 : vector<8x1xf32>
    %cst_407 = arith.constant 0.000000e+00 : f32
    %629 = vector.broadcast %cst_407 : f32 to vector<8x16xf32>
    %630 = vector.extract_strided_slice %6 {offsets = [0, 10, 0], sizes = [4, 1, 18], strides = [1, 1, 1]} : vector<4x18x18xf32> to vector<4x1x18xf32>
    %631 = vector.shape_cast %630 : vector<4x1x18xf32> to vector<4x18xf32>
    %632 = vector.extract_strided_slice %631 {offsets = [0, 0], sizes = [4, 16], strides = [1, 1]} : vector<4x18xf32> to vector<4x16xf32>
    %c0_408 = arith.constant 0 : index
    %c0_409 = arith.constant 0 : index
    %c0_410 = arith.constant 0 : index
    %633 = vector.load %arg3[%c0_408, %c0_409, %c0_410] : memref<9x8x4xf32, #tpu.memory_space<vmem>>, vector<1x8x4xf32>
    %634 = vector.shape_cast %633 : vector<1x8x4xf32> to vector<8x4xf32>
    %cst_411 = arith.constant dense<0.000000e+00> : vector<8x16xf32>
    %635 = tpu.matmul %634, %632, %cst_411 {dimension_numbers = #tpu.dot_dimension_numbers<[1], [0], [0], [1], [0, 0, 1, 1], [], []>} : vector<8x4xf32>, vector<4x16xf32>, vector<8x16xf32> -> vector<8x16xf32>
    %636 = arith.addf %629, %635 : vector<8x16xf32>
    %637 = vector.extract_strided_slice %631 {offsets = [0, 1], sizes = [4, 16], strides = [1, 1]} : vector<4x18xf32> to vector<4x16xf32>
    %c1_412 = arith.constant 1 : index
    %c0_413 = arith.constant 0 : index
    %c0_414 = arith.constant 0 : index
    %638 = vector.load %arg3[%c1_412, %c0_413, %c0_414] : memref<9x8x4xf32, #tpu.memory_space<vmem>>, vector<1x8x4xf32>
    %639 = vector.shape_cast %638 : vector<1x8x4xf32> to vector<8x4xf32>
    %cst_415 = arith.constant dense<0.000000e+00> : vector<8x16xf32>
    %640 = tpu.matmul %639, %637, %cst_415 {dimension_numbers = #tpu.dot_dimension_numbers<[1], [0], [0], [1], [0, 0, 1, 1], [], []>} : vector<8x4xf32>, vector<4x16xf32>, vector<8x16xf32> -> vector<8x16xf32>
    %641 = arith.addf %636, %640 : vector<8x16xf32>
    %642 = vector.extract_strided_slice %631 {offsets = [0, 2], sizes = [4, 16], strides = [1, 1]} : vector<4x18xf32> to vector<4x16xf32>
    %c2_416 = arith.constant 2 : index
    %c0_417 = arith.constant 0 : index
    %c0_418 = arith.constant 0 : index
    %643 = vector.load %arg3[%c2_416, %c0_417, %c0_418] : memref<9x8x4xf32, #tpu.memory_space<vmem>>, vector<1x8x4xf32>
    %644 = vector.shape_cast %643 : vector<1x8x4xf32> to vector<8x4xf32>
    %cst_419 = arith.constant dense<0.000000e+00> : vector<8x16xf32>
    %645 = tpu.matmul %644, %642, %cst_419 {dimension_numbers = #tpu.dot_dimension_numbers<[1], [0], [0], [1], [0, 0, 1, 1], [], []>} : vector<8x4xf32>, vector<4x16xf32>, vector<8x16xf32> -> vector<8x16xf32>
    %646 = arith.addf %641, %645 : vector<8x16xf32>
    %647 = vector.extract_strided_slice %6 {offsets = [0, 11, 0], sizes = [4, 1, 18], strides = [1, 1, 1]} : vector<4x18x18xf32> to vector<4x1x18xf32>
    %648 = vector.shape_cast %647 : vector<4x1x18xf32> to vector<4x18xf32>
    %649 = vector.extract_strided_slice %648 {offsets = [0, 0], sizes = [4, 16], strides = [1, 1]} : vector<4x18xf32> to vector<4x16xf32>
    %c3_420 = arith.constant 3 : index
    %c0_421 = arith.constant 0 : index
    %c0_422 = arith.constant 0 : index
    %650 = vector.load %arg3[%c3_420, %c0_421, %c0_422] : memref<9x8x4xf32, #tpu.memory_space<vmem>>, vector<1x8x4xf32>
    %651 = vector.shape_cast %650 : vector<1x8x4xf32> to vector<8x4xf32>
    %cst_423 = arith.constant dense<0.000000e+00> : vector<8x16xf32>
    %652 = tpu.matmul %651, %649, %cst_423 {dimension_numbers = #tpu.dot_dimension_numbers<[1], [0], [0], [1], [0, 0, 1, 1], [], []>} : vector<8x4xf32>, vector<4x16xf32>, vector<8x16xf32> -> vector<8x16xf32>
    %653 = arith.addf %646, %652 : vector<8x16xf32>
    %654 = vector.extract_strided_slice %648 {offsets = [0, 1], sizes = [4, 16], strides = [1, 1]} : vector<4x18xf32> to vector<4x16xf32>
    %c4_424 = arith.constant 4 : index
    %c0_425 = arith.constant 0 : index
    %c0_426 = arith.constant 0 : index
    %655 = vector.load %arg3[%c4_424, %c0_425, %c0_426] : memref<9x8x4xf32, #tpu.memory_space<vmem>>, vector<1x8x4xf32>
    %656 = vector.shape_cast %655 : vector<1x8x4xf32> to vector<8x4xf32>
    %cst_427 = arith.constant dense<0.000000e+00> : vector<8x16xf32>
    %657 = tpu.matmul %656, %654, %cst_427 {dimension_numbers = #tpu.dot_dimension_numbers<[1], [0], [0], [1], [0, 0, 1, 1], [], []>} : vector<8x4xf32>, vector<4x16xf32>, vector<8x16xf32> -> vector<8x16xf32>
    %658 = arith.addf %653, %657 : vector<8x16xf32>
    %659 = vector.extract_strided_slice %648 {offsets = [0, 2], sizes = [4, 16], strides = [1, 1]} : vector<4x18xf32> to vector<4x16xf32>
    %c5_428 = arith.constant 5 : index
    %c0_429 = arith.constant 0 : index
    %c0_430 = arith.constant 0 : index
    %660 = vector.load %arg3[%c5_428, %c0_429, %c0_430] : memref<9x8x4xf32, #tpu.memory_space<vmem>>, vector<1x8x4xf32>
    %661 = vector.shape_cast %660 : vector<1x8x4xf32> to vector<8x4xf32>
    %cst_431 = arith.constant dense<0.000000e+00> : vector<8x16xf32>
    %662 = tpu.matmul %661, %659, %cst_431 {dimension_numbers = #tpu.dot_dimension_numbers<[1], [0], [0], [1], [0, 0, 1, 1], [], []>} : vector<8x4xf32>, vector<4x16xf32>, vector<8x16xf32> -> vector<8x16xf32>
    %663 = arith.addf %658, %662 : vector<8x16xf32>
    %664 = vector.extract_strided_slice %6 {offsets = [0, 12, 0], sizes = [4, 1, 18], strides = [1, 1, 1]} : vector<4x18x18xf32> to vector<4x1x18xf32>
    %665 = vector.shape_cast %664 : vector<4x1x18xf32> to vector<4x18xf32>
    %666 = vector.extract_strided_slice %665 {offsets = [0, 0], sizes = [4, 16], strides = [1, 1]} : vector<4x18xf32> to vector<4x16xf32>
    %c6_432 = arith.constant 6 : index
    %c0_433 = arith.constant 0 : index
    %c0_434 = arith.constant 0 : index
    %667 = vector.load %arg3[%c6_432, %c0_433, %c0_434] : memref<9x8x4xf32, #tpu.memory_space<vmem>>, vector<1x8x4xf32>
    %668 = vector.shape_cast %667 : vector<1x8x4xf32> to vector<8x4xf32>
    %cst_435 = arith.constant dense<0.000000e+00> : vector<8x16xf32>
    %669 = tpu.matmul %668, %666, %cst_435 {dimension_numbers = #tpu.dot_dimension_numbers<[1], [0], [0], [1], [0, 0, 1, 1], [], []>} : vector<8x4xf32>, vector<4x16xf32>, vector<8x16xf32> -> vector<8x16xf32>
    %670 = arith.addf %663, %669 : vector<8x16xf32>
    %671 = vector.extract_strided_slice %665 {offsets = [0, 1], sizes = [4, 16], strides = [1, 1]} : vector<4x18xf32> to vector<4x16xf32>
    %c7_436 = arith.constant 7 : index
    %c0_437 = arith.constant 0 : index
    %c0_438 = arith.constant 0 : index
    %672 = vector.load %arg3[%c7_436, %c0_437, %c0_438] : memref<9x8x4xf32, #tpu.memory_space<vmem>>, vector<1x8x4xf32>
    %673 = vector.shape_cast %672 : vector<1x8x4xf32> to vector<8x4xf32>
    %cst_439 = arith.constant dense<0.000000e+00> : vector<8x16xf32>
    %674 = tpu.matmul %673, %671, %cst_439 {dimension_numbers = #tpu.dot_dimension_numbers<[1], [0], [0], [1], [0, 0, 1, 1], [], []>} : vector<8x4xf32>, vector<4x16xf32>, vector<8x16xf32> -> vector<8x16xf32>
    %675 = arith.addf %670, %674 : vector<8x16xf32>
    %676 = vector.extract_strided_slice %665 {offsets = [0, 2], sizes = [4, 16], strides = [1, 1]} : vector<4x18xf32> to vector<4x16xf32>
    %c8_440 = arith.constant 8 : index
    %c0_441 = arith.constant 0 : index
    %c0_442 = arith.constant 0 : index
    %677 = vector.load %arg3[%c8_440, %c0_441, %c0_442] : memref<9x8x4xf32, #tpu.memory_space<vmem>>, vector<1x8x4xf32>
    %678 = vector.shape_cast %677 : vector<1x8x4xf32> to vector<8x4xf32>
    %cst_443 = arith.constant dense<0.000000e+00> : vector<8x16xf32>
    %679 = tpu.matmul %678, %676, %cst_443 {dimension_numbers = #tpu.dot_dimension_numbers<[1], [0], [0], [1], [0, 0, 1, 1], [], []>} : vector<8x4xf32>, vector<4x16xf32>, vector<8x16xf32> -> vector<8x16xf32>
    %680 = arith.addf %675, %679 : vector<8x16xf32>
    %c0_444 = arith.constant 0 : index
    %c0_445 = arith.constant 0 : index
    %c160 = arith.constant 160 : index
    %681 = vector.load %arg4[%c0_444, %c0_445, %c160] : memref<1x8x256xf32, #tpu.memory_space<vmem>>, vector<1x8x16xf32>
    %682 = vector.shape_cast %681 : vector<1x8x16xf32> to vector<8x16xf32>
    %683 = vector.shape_cast %680 : vector<8x16xf32> to vector<1x8x16xf32>
    tpu.vector_store %arg4[%c0_444, %c0_445, %c160], %683 {strides = array<i32>} : memref<1x8x256xf32, #tpu.memory_space<vmem>>, vector<1x8x16xf32>,
    %cst_446 = arith.constant dense<0.000000e+00> : vector<8xf32>
    %684 = vector.multi_reduction <add>, %680, %cst_446 [1] : vector<8x16xf32> to vector<8xf32>
    %685 = vector.shape_cast %684 : vector<8xf32> to vector<8x1xf32>
    %686 = arith.addf %624, %685 : vector<8x1xf32>
    %687 = arith.mulf %680, %680 : vector<8x16xf32>
    %cst_447 = arith.constant dense<0.000000e+00> : vector<8xf32>
    %688 = vector.multi_reduction <add>, %687, %cst_447 [1] : vector<8x16xf32> to vector<8xf32>
    %689 = vector.shape_cast %688 : vector<8xf32> to vector<8x1xf32>
    %690 = arith.addf %628, %689 : vector<8x1xf32>
    %cst_448 = arith.constant 0.000000e+00 : f32
    %691 = vector.broadcast %cst_448 : f32 to vector<8x16xf32>
    %692 = vector.extract_strided_slice %6 {offsets = [0, 11, 0], sizes = [4, 1, 18], strides = [1, 1, 1]} : vector<4x18x18xf32> to vector<4x1x18xf32>
    %693 = vector.shape_cast %692 : vector<4x1x18xf32> to vector<4x18xf32>
    %694 = vector.extract_strided_slice %693 {offsets = [0, 0], sizes = [4, 16], strides = [1, 1]} : vector<4x18xf32> to vector<4x16xf32>
    %c0_449 = arith.constant 0 : index
    %c0_450 = arith.constant 0 : index
    %c0_451 = arith.constant 0 : index
    %695 = vector.load %arg3[%c0_449, %c0_450, %c0_451] : memref<9x8x4xf32, #tpu.memory_space<vmem>>, vector<1x8x4xf32>
    %696 = vector.shape_cast %695 : vector<1x8x4xf32> to vector<8x4xf32>
    %cst_452 = arith.constant dense<0.000000e+00> : vector<8x16xf32>
    %697 = tpu.matmul %696, %694, %cst_452 {dimension_numbers = #tpu.dot_dimension_numbers<[1], [0], [0], [1], [0, 0, 1, 1], [], []>} : vector<8x4xf32>, vector<4x16xf32>, vector<8x16xf32> -> vector<8x16xf32>
    %698 = arith.addf %691, %697 : vector<8x16xf32>
    %699 = vector.extract_strided_slice %693 {offsets = [0, 1], sizes = [4, 16], strides = [1, 1]} : vector<4x18xf32> to vector<4x16xf32>
    %c1_453 = arith.constant 1 : index
    %c0_454 = arith.constant 0 : index
    %c0_455 = arith.constant 0 : index
    %700 = vector.load %arg3[%c1_453, %c0_454, %c0_455] : memref<9x8x4xf32, #tpu.memory_space<vmem>>, vector<1x8x4xf32>
    %701 = vector.shape_cast %700 : vector<1x8x4xf32> to vector<8x4xf32>
    %cst_456 = arith.constant dense<0.000000e+00> : vector<8x16xf32>
    %702 = tpu.matmul %701, %699, %cst_456 {dimension_numbers = #tpu.dot_dimension_numbers<[1], [0], [0], [1], [0, 0, 1, 1], [], []>} : vector<8x4xf32>, vector<4x16xf32>, vector<8x16xf32> -> vector<8x16xf32>
    %703 = arith.addf %698, %702 : vector<8x16xf32>
    %704 = vector.extract_strided_slice %693 {offsets = [0, 2], sizes = [4, 16], strides = [1, 1]} : vector<4x18xf32> to vector<4x16xf32>
    %c2_457 = arith.constant 2 : index
    %c0_458 = arith.constant 0 : index
    %c0_459 = arith.constant 0 : index
    %705 = vector.load %arg3[%c2_457, %c0_458, %c0_459] : memref<9x8x4xf32, #tpu.memory_space<vmem>>, vector<1x8x4xf32>
    %706 = vector.shape_cast %705 : vector<1x8x4xf32> to vector<8x4xf32>
    %cst_460 = arith.constant dense<0.000000e+00> : vector<8x16xf32>
    %707 = tpu.matmul %706, %704, %cst_460 {dimension_numbers = #tpu.dot_dimension_numbers<[1], [0], [0], [1], [0, 0, 1, 1], [], []>} : vector<8x4xf32>, vector<4x16xf32>, vector<8x16xf32> -> vector<8x16xf32>
    %708 = arith.addf %703, %707 : vector<8x16xf32>
    %709 = vector.extract_strided_slice %6 {offsets = [0, 12, 0], sizes = [4, 1, 18], strides = [1, 1, 1]} : vector<4x18x18xf32> to vector<4x1x18xf32>
    %710 = vector.shape_cast %709 : vector<4x1x18xf32> to vector<4x18xf32>
    %711 = vector.extract_strided_slice %710 {offsets = [0, 0], sizes = [4, 16], strides = [1, 1]} : vector<4x18xf32> to vector<4x16xf32>
    %c3_461 = arith.constant 3 : index
    %c0_462 = arith.constant 0 : index
    %c0_463 = arith.constant 0 : index
    %712 = vector.load %arg3[%c3_461, %c0_462, %c0_463] : memref<9x8x4xf32, #tpu.memory_space<vmem>>, vector<1x8x4xf32>
    %713 = vector.shape_cast %712 : vector<1x8x4xf32> to vector<8x4xf32>
    %cst_464 = arith.constant dense<0.000000e+00> : vector<8x16xf32>
    %714 = tpu.matmul %713, %711, %cst_464 {dimension_numbers = #tpu.dot_dimension_numbers<[1], [0], [0], [1], [0, 0, 1, 1], [], []>} : vector<8x4xf32>, vector<4x16xf32>, vector<8x16xf32> -> vector<8x16xf32>
    %715 = arith.addf %708, %714 : vector<8x16xf32>
    %716 = vector.extract_strided_slice %710 {offsets = [0, 1], sizes = [4, 16], strides = [1, 1]} : vector<4x18xf32> to vector<4x16xf32>
    %c4_465 = arith.constant 4 : index
    %c0_466 = arith.constant 0 : index
    %c0_467 = arith.constant 0 : index
    %717 = vector.load %arg3[%c4_465, %c0_466, %c0_467] : memref<9x8x4xf32, #tpu.memory_space<vmem>>, vector<1x8x4xf32>
    %718 = vector.shape_cast %717 : vector<1x8x4xf32> to vector<8x4xf32>
    %cst_468 = arith.constant dense<0.000000e+00> : vector<8x16xf32>
    %719 = tpu.matmul %718, %716, %cst_468 {dimension_numbers = #tpu.dot_dimension_numbers<[1], [0], [0], [1], [0, 0, 1, 1], [], []>} : vector<8x4xf32>, vector<4x16xf32>, vector<8x16xf32> -> vector<8x16xf32>
    %720 = arith.addf %715, %719 : vector<8x16xf32>
    %721 = vector.extract_strided_slice %710 {offsets = [0, 2], sizes = [4, 16], strides = [1, 1]} : vector<4x18xf32> to vector<4x16xf32>
    %c5_469 = arith.constant 5 : index
    %c0_470 = arith.constant 0 : index
    %c0_471 = arith.constant 0 : index
    %722 = vector.load %arg3[%c5_469, %c0_470, %c0_471] : memref<9x8x4xf32, #tpu.memory_space<vmem>>, vector<1x8x4xf32>
    %723 = vector.shape_cast %722 : vector<1x8x4xf32> to vector<8x4xf32>
    %cst_472 = arith.constant dense<0.000000e+00> : vector<8x16xf32>
    %724 = tpu.matmul %723, %721, %cst_472 {dimension_numbers = #tpu.dot_dimension_numbers<[1], [0], [0], [1], [0, 0, 1, 1], [], []>} : vector<8x4xf32>, vector<4x16xf32>, vector<8x16xf32> -> vector<8x16xf32>
    %725 = arith.addf %720, %724 : vector<8x16xf32>
    %726 = vector.extract_strided_slice %6 {offsets = [0, 13, 0], sizes = [4, 1, 18], strides = [1, 1, 1]} : vector<4x18x18xf32> to vector<4x1x18xf32>
    %727 = vector.shape_cast %726 : vector<4x1x18xf32> to vector<4x18xf32>
    %728 = vector.extract_strided_slice %727 {offsets = [0, 0], sizes = [4, 16], strides = [1, 1]} : vector<4x18xf32> to vector<4x16xf32>
    %c6_473 = arith.constant 6 : index
    %c0_474 = arith.constant 0 : index
    %c0_475 = arith.constant 0 : index
    %729 = vector.load %arg3[%c6_473, %c0_474, %c0_475] : memref<9x8x4xf32, #tpu.memory_space<vmem>>, vector<1x8x4xf32>
    %730 = vector.shape_cast %729 : vector<1x8x4xf32> to vector<8x4xf32>
    %cst_476 = arith.constant dense<0.000000e+00> : vector<8x16xf32>
    %731 = tpu.matmul %730, %728, %cst_476 {dimension_numbers = #tpu.dot_dimension_numbers<[1], [0], [0], [1], [0, 0, 1, 1], [], []>} : vector<8x4xf32>, vector<4x16xf32>, vector<8x16xf32> -> vector<8x16xf32>
    %732 = arith.addf %725, %731 : vector<8x16xf32>
    %733 = vector.extract_strided_slice %727 {offsets = [0, 1], sizes = [4, 16], strides = [1, 1]} : vector<4x18xf32> to vector<4x16xf32>
    %c7_477 = arith.constant 7 : index
    %c0_478 = arith.constant 0 : index
    %c0_479 = arith.constant 0 : index
    %734 = vector.load %arg3[%c7_477, %c0_478, %c0_479] : memref<9x8x4xf32, #tpu.memory_space<vmem>>, vector<1x8x4xf32>
    %735 = vector.shape_cast %734 : vector<1x8x4xf32> to vector<8x4xf32>
    %cst_480 = arith.constant dense<0.000000e+00> : vector<8x16xf32>
    %736 = tpu.matmul %735, %733, %cst_480 {dimension_numbers = #tpu.dot_dimension_numbers<[1], [0], [0], [1], [0, 0, 1, 1], [], []>} : vector<8x4xf32>, vector<4x16xf32>, vector<8x16xf32> -> vector<8x16xf32>
    %737 = arith.addf %732, %736 : vector<8x16xf32>
    %738 = vector.extract_strided_slice %727 {offsets = [0, 2], sizes = [4, 16], strides = [1, 1]} : vector<4x18xf32> to vector<4x16xf32>
    %c8_481 = arith.constant 8 : index
    %c0_482 = arith.constant 0 : index
    %c0_483 = arith.constant 0 : index
    %739 = vector.load %arg3[%c8_481, %c0_482, %c0_483] : memref<9x8x4xf32, #tpu.memory_space<vmem>>, vector<1x8x4xf32>
    %740 = vector.shape_cast %739 : vector<1x8x4xf32> to vector<8x4xf32>
    %cst_484 = arith.constant dense<0.000000e+00> : vector<8x16xf32>
    %741 = tpu.matmul %740, %738, %cst_484 {dimension_numbers = #tpu.dot_dimension_numbers<[1], [0], [0], [1], [0, 0, 1, 1], [], []>} : vector<8x4xf32>, vector<4x16xf32>, vector<8x16xf32> -> vector<8x16xf32>
    %742 = arith.addf %737, %741 : vector<8x16xf32>
    %c0_485 = arith.constant 0 : index
    %c0_486 = arith.constant 0 : index
    %c176 = arith.constant 176 : index
    %743 = vector.load %arg4[%c0_485, %c0_486, %c176] : memref<1x8x256xf32, #tpu.memory_space<vmem>>, vector<1x8x16xf32>
    %744 = vector.shape_cast %743 : vector<1x8x16xf32> to vector<8x16xf32>
    %745 = vector.shape_cast %742 : vector<8x16xf32> to vector<1x8x16xf32>
    tpu.vector_store %arg4[%c0_485, %c0_486, %c176], %745 {strides = array<i32>} : memref<1x8x256xf32, #tpu.memory_space<vmem>>, vector<1x8x16xf32>,
    %cst_487 = arith.constant dense<0.000000e+00> : vector<8xf32>
    %746 = vector.multi_reduction <add>, %742, %cst_487 [1] : vector<8x16xf32> to vector<8xf32>
    %747 = vector.shape_cast %746 : vector<8xf32> to vector<8x1xf32>
    %748 = arith.addf %686, %747 : vector<8x1xf32>
    %749 = arith.mulf %742, %742 : vector<8x16xf32>
    %cst_488 = arith.constant dense<0.000000e+00> : vector<8xf32>
    %750 = vector.multi_reduction <add>, %749, %cst_488 [1] : vector<8x16xf32> to vector<8xf32>
    %751 = vector.shape_cast %750 : vector<8xf32> to vector<8x1xf32>
    %752 = arith.addf %690, %751 : vector<8x1xf32>
    %cst_489 = arith.constant 0.000000e+00 : f32
    %753 = vector.broadcast %cst_489 : f32 to vector<8x16xf32>
    %754 = vector.extract_strided_slice %6 {offsets = [0, 12, 0], sizes = [4, 1, 18], strides = [1, 1, 1]} : vector<4x18x18xf32> to vector<4x1x18xf32>
    %755 = vector.shape_cast %754 : vector<4x1x18xf32> to vector<4x18xf32>
    %756 = vector.extract_strided_slice %755 {offsets = [0, 0], sizes = [4, 16], strides = [1, 1]} : vector<4x18xf32> to vector<4x16xf32>
    %c0_490 = arith.constant 0 : index
    %c0_491 = arith.constant 0 : index
    %c0_492 = arith.constant 0 : index
    %757 = vector.load %arg3[%c0_490, %c0_491, %c0_492] : memref<9x8x4xf32, #tpu.memory_space<vmem>>, vector<1x8x4xf32>
    %758 = vector.shape_cast %757 : vector<1x8x4xf32> to vector<8x4xf32>
    %cst_493 = arith.constant dense<0.000000e+00> : vector<8x16xf32>
    %759 = tpu.matmul %758, %756, %cst_493 {dimension_numbers = #tpu.dot_dimension_numbers<[1], [0], [0], [1], [0, 0, 1, 1], [], []>} : vector<8x4xf32>, vector<4x16xf32>, vector<8x16xf32> -> vector<8x16xf32>
    %760 = arith.addf %753, %759 : vector<8x16xf32>
    %761 = vector.extract_strided_slice %755 {offsets = [0, 1], sizes = [4, 16], strides = [1, 1]} : vector<4x18xf32> to vector<4x16xf32>
    %c1_494 = arith.constant 1 : index
    %c0_495 = arith.constant 0 : index
    %c0_496 = arith.constant 0 : index
    %762 = vector.load %arg3[%c1_494, %c0_495, %c0_496] : memref<9x8x4xf32, #tpu.memory_space<vmem>>, vector<1x8x4xf32>
    %763 = vector.shape_cast %762 : vector<1x8x4xf32> to vector<8x4xf32>
    %cst_497 = arith.constant dense<0.000000e+00> : vector<8x16xf32>
    %764 = tpu.matmul %763, %761, %cst_497 {dimension_numbers = #tpu.dot_dimension_numbers<[1], [0], [0], [1], [0, 0, 1, 1], [], []>} : vector<8x4xf32>, vector<4x16xf32>, vector<8x16xf32> -> vector<8x16xf32>
    %765 = arith.addf %760, %764 : vector<8x16xf32>
    %766 = vector.extract_strided_slice %755 {offsets = [0, 2], sizes = [4, 16], strides = [1, 1]} : vector<4x18xf32> to vector<4x16xf32>
    %c2_498 = arith.constant 2 : index
    %c0_499 = arith.constant 0 : index
    %c0_500 = arith.constant 0 : index
    %767 = vector.load %arg3[%c2_498, %c0_499, %c0_500] : memref<9x8x4xf32, #tpu.memory_space<vmem>>, vector<1x8x4xf32>
    %768 = vector.shape_cast %767 : vector<1x8x4xf32> to vector<8x4xf32>
    %cst_501 = arith.constant dense<0.000000e+00> : vector<8x16xf32>
    %769 = tpu.matmul %768, %766, %cst_501 {dimension_numbers = #tpu.dot_dimension_numbers<[1], [0], [0], [1], [0, 0, 1, 1], [], []>} : vector<8x4xf32>, vector<4x16xf32>, vector<8x16xf32> -> vector<8x16xf32>
    %770 = arith.addf %765, %769 : vector<8x16xf32>
    %771 = vector.extract_strided_slice %6 {offsets = [0, 13, 0], sizes = [4, 1, 18], strides = [1, 1, 1]} : vector<4x18x18xf32> to vector<4x1x18xf32>
    %772 = vector.shape_cast %771 : vector<4x1x18xf32> to vector<4x18xf32>
    %773 = vector.extract_strided_slice %772 {offsets = [0, 0], sizes = [4, 16], strides = [1, 1]} : vector<4x18xf32> to vector<4x16xf32>
    %c3_502 = arith.constant 3 : index
    %c0_503 = arith.constant 0 : index
    %c0_504 = arith.constant 0 : index
    %774 = vector.load %arg3[%c3_502, %c0_503, %c0_504] : memref<9x8x4xf32, #tpu.memory_space<vmem>>, vector<1x8x4xf32>
    %775 = vector.shape_cast %774 : vector<1x8x4xf32> to vector<8x4xf32>
    %cst_505 = arith.constant dense<0.000000e+00> : vector<8x16xf32>
    %776 = tpu.matmul %775, %773, %cst_505 {dimension_numbers = #tpu.dot_dimension_numbers<[1], [0], [0], [1], [0, 0, 1, 1], [], []>} : vector<8x4xf32>, vector<4x16xf32>, vector<8x16xf32> -> vector<8x16xf32>
    %777 = arith.addf %770, %776 : vector<8x16xf32>
    %778 = vector.extract_strided_slice %772 {offsets = [0, 1], sizes = [4, 16], strides = [1, 1]} : vector<4x18xf32> to vector<4x16xf32>
    %c4_506 = arith.constant 4 : index
    %c0_507 = arith.constant 0 : index
    %c0_508 = arith.constant 0 : index
    %779 = vector.load %arg3[%c4_506, %c0_507, %c0_508] : memref<9x8x4xf32, #tpu.memory_space<vmem>>, vector<1x8x4xf32>
    %780 = vector.shape_cast %779 : vector<1x8x4xf32> to vector<8x4xf32>
    %cst_509 = arith.constant dense<0.000000e+00> : vector<8x16xf32>
    %781 = tpu.matmul %780, %778, %cst_509 {dimension_numbers = #tpu.dot_dimension_numbers<[1], [0], [0], [1], [0, 0, 1, 1], [], []>} : vector<8x4xf32>, vector<4x16xf32>, vector<8x16xf32> -> vector<8x16xf32>
    %782 = arith.addf %777, %781 : vector<8x16xf32>
    %783 = vector.extract_strided_slice %772 {offsets = [0, 2], sizes = [4, 16], strides = [1, 1]} : vector<4x18xf32> to vector<4x16xf32>
    %c5_510 = arith.constant 5 : index
    %c0_511 = arith.constant 0 : index
    %c0_512 = arith.constant 0 : index
    %784 = vector.load %arg3[%c5_510, %c0_511, %c0_512] : memref<9x8x4xf32, #tpu.memory_space<vmem>>, vector<1x8x4xf32>
    %785 = vector.shape_cast %784 : vector<1x8x4xf32> to vector<8x4xf32>
    %cst_513 = arith.constant dense<0.000000e+00> : vector<8x16xf32>
    %786 = tpu.matmul %785, %783, %cst_513 {dimension_numbers = #tpu.dot_dimension_numbers<[1], [0], [0], [1], [0, 0, 1, 1], [], []>} : vector<8x4xf32>, vector<4x16xf32>, vector<8x16xf32> -> vector<8x16xf32>
    %787 = arith.addf %782, %786 : vector<8x16xf32>
    %788 = vector.extract_strided_slice %6 {offsets = [0, 14, 0], sizes = [4, 1, 18], strides = [1, 1, 1]} : vector<4x18x18xf32> to vector<4x1x18xf32>
    %789 = vector.shape_cast %788 : vector<4x1x18xf32> to vector<4x18xf32>
    %790 = vector.extract_strided_slice %789 {offsets = [0, 0], sizes = [4, 16], strides = [1, 1]} : vector<4x18xf32> to vector<4x16xf32>
    %c6_514 = arith.constant 6 : index
    %c0_515 = arith.constant 0 : index
    %c0_516 = arith.constant 0 : index
    %791 = vector.load %arg3[%c6_514, %c0_515, %c0_516] : memref<9x8x4xf32, #tpu.memory_space<vmem>>, vector<1x8x4xf32>
    %792 = vector.shape_cast %791 : vector<1x8x4xf32> to vector<8x4xf32>
    %cst_517 = arith.constant dense<0.000000e+00> : vector<8x16xf32>
    %793 = tpu.matmul %792, %790, %cst_517 {dimension_numbers = #tpu.dot_dimension_numbers<[1], [0], [0], [1], [0, 0, 1, 1], [], []>} : vector<8x4xf32>, vector<4x16xf32>, vector<8x16xf32> -> vector<8x16xf32>
    %794 = arith.addf %787, %793 : vector<8x16xf32>
    %795 = vector.extract_strided_slice %789 {offsets = [0, 1], sizes = [4, 16], strides = [1, 1]} : vector<4x18xf32> to vector<4x16xf32>
    %c7_518 = arith.constant 7 : index
    %c0_519 = arith.constant 0 : index
    %c0_520 = arith.constant 0 : index
    %796 = vector.load %arg3[%c7_518, %c0_519, %c0_520] : memref<9x8x4xf32, #tpu.memory_space<vmem>>, vector<1x8x4xf32>
    %797 = vector.shape_cast %796 : vector<1x8x4xf32> to vector<8x4xf32>
    %cst_521 = arith.constant dense<0.000000e+00> : vector<8x16xf32>
    %798 = tpu.matmul %797, %795, %cst_521 {dimension_numbers = #tpu.dot_dimension_numbers<[1], [0], [0], [1], [0, 0, 1, 1], [], []>} : vector<8x4xf32>, vector<4x16xf32>, vector<8x16xf32> -> vector<8x16xf32>
    %799 = arith.addf %794, %798 : vector<8x16xf32>
    %800 = vector.extract_strided_slice %789 {offsets = [0, 2], sizes = [4, 16], strides = [1, 1]} : vector<4x18xf32> to vector<4x16xf32>
    %c8_522 = arith.constant 8 : index
    %c0_523 = arith.constant 0 : index
    %c0_524 = arith.constant 0 : index
    %801 = vector.load %arg3[%c8_522, %c0_523, %c0_524] : memref<9x8x4xf32, #tpu.memory_space<vmem>>, vector<1x8x4xf32>
    %802 = vector.shape_cast %801 : vector<1x8x4xf32> to vector<8x4xf32>
    %cst_525 = arith.constant dense<0.000000e+00> : vector<8x16xf32>
    %803 = tpu.matmul %802, %800, %cst_525 {dimension_numbers = #tpu.dot_dimension_numbers<[1], [0], [0], [1], [0, 0, 1, 1], [], []>} : vector<8x4xf32>, vector<4x16xf32>, vector<8x16xf32> -> vector<8x16xf32>
    %804 = arith.addf %799, %803 : vector<8x16xf32>
    %c0_526 = arith.constant 0 : index
    %c0_527 = arith.constant 0 : index
    %c192 = arith.constant 192 : index
    %805 = vector.load %arg4[%c0_526, %c0_527, %c192] : memref<1x8x256xf32, #tpu.memory_space<vmem>>, vector<1x8x16xf32>
    %806 = vector.shape_cast %805 : vector<1x8x16xf32> to vector<8x16xf32>
    %807 = vector.shape_cast %804 : vector<8x16xf32> to vector<1x8x16xf32>
    tpu.vector_store %arg4[%c0_526, %c0_527, %c192], %807 {strides = array<i32>} : memref<1x8x256xf32, #tpu.memory_space<vmem>>, vector<1x8x16xf32>,
    %cst_528 = arith.constant dense<0.000000e+00> : vector<8xf32>
    %808 = vector.multi_reduction <add>, %804, %cst_528 [1] : vector<8x16xf32> to vector<8xf32>
    %809 = vector.shape_cast %808 : vector<8xf32> to vector<8x1xf32>
    %810 = arith.addf %748, %809 : vector<8x1xf32>
    %811 = arith.mulf %804, %804 : vector<8x16xf32>
    %cst_529 = arith.constant dense<0.000000e+00> : vector<8xf32>
    %812 = vector.multi_reduction <add>, %811, %cst_529 [1] : vector<8x16xf32> to vector<8xf32>
    %813 = vector.shape_cast %812 : vector<8xf32> to vector<8x1xf32>
    %814 = arith.addf %752, %813 : vector<8x1xf32>
    %cst_530 = arith.constant 0.000000e+00 : f32
    %815 = vector.broadcast %cst_530 : f32 to vector<8x16xf32>
    %816 = vector.extract_strided_slice %6 {offsets = [0, 13, 0], sizes = [4, 1, 18], strides = [1, 1, 1]} : vector<4x18x18xf32> to vector<4x1x18xf32>
    %817 = vector.shape_cast %816 : vector<4x1x18xf32> to vector<4x18xf32>
    %818 = vector.extract_strided_slice %817 {offsets = [0, 0], sizes = [4, 16], strides = [1, 1]} : vector<4x18xf32> to vector<4x16xf32>
    %c0_531 = arith.constant 0 : index
    %c0_532 = arith.constant 0 : index
    %c0_533 = arith.constant 0 : index
    %819 = vector.load %arg3[%c0_531, %c0_532, %c0_533] : memref<9x8x4xf32, #tpu.memory_space<vmem>>, vector<1x8x4xf32>
    %820 = vector.shape_cast %819 : vector<1x8x4xf32> to vector<8x4xf32>
    %cst_534 = arith.constant dense<0.000000e+00> : vector<8x16xf32>
    %821 = tpu.matmul %820, %818, %cst_534 {dimension_numbers = #tpu.dot_dimension_numbers<[1], [0], [0], [1], [0, 0, 1, 1], [], []>} : vector<8x4xf32>, vector<4x16xf32>, vector<8x16xf32> -> vector<8x16xf32>
    %822 = arith.addf %815, %821 : vector<8x16xf32>
    %823 = vector.extract_strided_slice %817 {offsets = [0, 1], sizes = [4, 16], strides = [1, 1]} : vector<4x18xf32> to vector<4x16xf32>
    %c1_535 = arith.constant 1 : index
    %c0_536 = arith.constant 0 : index
    %c0_537 = arith.constant 0 : index
    %824 = vector.load %arg3[%c1_535, %c0_536, %c0_537] : memref<9x8x4xf32, #tpu.memory_space<vmem>>, vector<1x8x4xf32>
    %825 = vector.shape_cast %824 : vector<1x8x4xf32> to vector<8x4xf32>
    %cst_538 = arith.constant dense<0.000000e+00> : vector<8x16xf32>
    %826 = tpu.matmul %825, %823, %cst_538 {dimension_numbers = #tpu.dot_dimension_numbers<[1], [0], [0], [1], [0, 0, 1, 1], [], []>} : vector<8x4xf32>, vector<4x16xf32>, vector<8x16xf32> -> vector<8x16xf32>
    %827 = arith.addf %822, %826 : vector<8x16xf32>
    %828 = vector.extract_strided_slice %817 {offsets = [0, 2], sizes = [4, 16], strides = [1, 1]} : vector<4x18xf32> to vector<4x16xf32>
    %c2_539 = arith.constant 2 : index
    %c0_540 = arith.constant 0 : index
    %c0_541 = arith.constant 0 : index
    %829 = vector.load %arg3[%c2_539, %c0_540, %c0_541] : memref<9x8x4xf32, #tpu.memory_space<vmem>>, vector<1x8x4xf32>
    %830 = vector.shape_cast %829 : vector<1x8x4xf32> to vector<8x4xf32>
    %cst_542 = arith.constant dense<0.000000e+00> : vector<8x16xf32>
    %831 = tpu.matmul %830, %828, %cst_542 {dimension_numbers = #tpu.dot_dimension_numbers<[1], [0], [0], [1], [0, 0, 1, 1], [], []>} : vector<8x4xf32>, vector<4x16xf32>, vector<8x16xf32> -> vector<8x16xf32>
    %832 = arith.addf %827, %831 : vector<8x16xf32>
    %833 = vector.extract_strided_slice %6 {offsets = [0, 14, 0], sizes = [4, 1, 18], strides = [1, 1, 1]} : vector<4x18x18xf32> to vector<4x1x18xf32>
    %834 = vector.shape_cast %833 : vector<4x1x18xf32> to vector<4x18xf32>
    %835 = vector.extract_strided_slice %834 {offsets = [0, 0], sizes = [4, 16], strides = [1, 1]} : vector<4x18xf32> to vector<4x16xf32>
    %c3_543 = arith.constant 3 : index
    %c0_544 = arith.constant 0 : index
    %c0_545 = arith.constant 0 : index
    %836 = vector.load %arg3[%c3_543, %c0_544, %c0_545] : memref<9x8x4xf32, #tpu.memory_space<vmem>>, vector<1x8x4xf32>
    %837 = vector.shape_cast %836 : vector<1x8x4xf32> to vector<8x4xf32>
    %cst_546 = arith.constant dense<0.000000e+00> : vector<8x16xf32>
    %838 = tpu.matmul %837, %835, %cst_546 {dimension_numbers = #tpu.dot_dimension_numbers<[1], [0], [0], [1], [0, 0, 1, 1], [], []>} : vector<8x4xf32>, vector<4x16xf32>, vector<8x16xf32> -> vector<8x16xf32>
    %839 = arith.addf %832, %838 : vector<8x16xf32>
    %840 = vector.extract_strided_slice %834 {offsets = [0, 1], sizes = [4, 16], strides = [1, 1]} : vector<4x18xf32> to vector<4x16xf32>
    %c4_547 = arith.constant 4 : index
    %c0_548 = arith.constant 0 : index
    %c0_549 = arith.constant 0 : index
    %841 = vector.load %arg3[%c4_547, %c0_548, %c0_549] : memref<9x8x4xf32, #tpu.memory_space<vmem>>, vector<1x8x4xf32>
    %842 = vector.shape_cast %841 : vector<1x8x4xf32> to vector<8x4xf32>
    %cst_550 = arith.constant dense<0.000000e+00> : vector<8x16xf32>
    %843 = tpu.matmul %842, %840, %cst_550 {dimension_numbers = #tpu.dot_dimension_numbers<[1], [0], [0], [1], [0, 0, 1, 1], [], []>} : vector<8x4xf32>, vector<4x16xf32>, vector<8x16xf32> -> vector<8x16xf32>
    %844 = arith.addf %839, %843 : vector<8x16xf32>
    %845 = vector.extract_strided_slice %834 {offsets = [0, 2], sizes = [4, 16], strides = [1, 1]} : vector<4x18xf32> to vector<4x16xf32>
    %c5_551 = arith.constant 5 : index
    %c0_552 = arith.constant 0 : index
    %c0_553 = arith.constant 0 : index
    %846 = vector.load %arg3[%c5_551, %c0_552, %c0_553] : memref<9x8x4xf32, #tpu.memory_space<vmem>>, vector<1x8x4xf32>
    %847 = vector.shape_cast %846 : vector<1x8x4xf32> to vector<8x4xf32>
    %cst_554 = arith.constant dense<0.000000e+00> : vector<8x16xf32>
    %848 = tpu.matmul %847, %845, %cst_554 {dimension_numbers = #tpu.dot_dimension_numbers<[1], [0], [0], [1], [0, 0, 1, 1], [], []>} : vector<8x4xf32>, vector<4x16xf32>, vector<8x16xf32> -> vector<8x16xf32>
    %849 = arith.addf %844, %848 : vector<8x16xf32>
    %850 = vector.extract_strided_slice %6 {offsets = [0, 15, 0], sizes = [4, 1, 18], strides = [1, 1, 1]} : vector<4x18x18xf32> to vector<4x1x18xf32>
    %851 = vector.shape_cast %850 : vector<4x1x18xf32> to vector<4x18xf32>
    %852 = vector.extract_strided_slice %851 {offsets = [0, 0], sizes = [4, 16], strides = [1, 1]} : vector<4x18xf32> to vector<4x16xf32>
    %c6_555 = arith.constant 6 : index
    %c0_556 = arith.constant 0 : index
    %c0_557 = arith.constant 0 : index
    %853 = vector.load %arg3[%c6_555, %c0_556, %c0_557] : memref<9x8x4xf32, #tpu.memory_space<vmem>>, vector<1x8x4xf32>
    %854 = vector.shape_cast %853 : vector<1x8x4xf32> to vector<8x4xf32>
    %cst_558 = arith.constant dense<0.000000e+00> : vector<8x16xf32>
    %855 = tpu.matmul %854, %852, %cst_558 {dimension_numbers = #tpu.dot_dimension_numbers<[1], [0], [0], [1], [0, 0, 1, 1], [], []>} : vector<8x4xf32>, vector<4x16xf32>, vector<8x16xf32> -> vector<8x16xf32>
    %856 = arith.addf %849, %855 : vector<8x16xf32>
    %857 = vector.extract_strided_slice %851 {offsets = [0, 1], sizes = [4, 16], strides = [1, 1]} : vector<4x18xf32> to vector<4x16xf32>
    %c7_559 = arith.constant 7 : index
    %c0_560 = arith.constant 0 : index
    %c0_561 = arith.constant 0 : index
    %858 = vector.load %arg3[%c7_559, %c0_560, %c0_561] : memref<9x8x4xf32, #tpu.memory_space<vmem>>, vector<1x8x4xf32>
    %859 = vector.shape_cast %858 : vector<1x8x4xf32> to vector<8x4xf32>
    %cst_562 = arith.constant dense<0.000000e+00> : vector<8x16xf32>
    %860 = tpu.matmul %859, %857, %cst_562 {dimension_numbers = #tpu.dot_dimension_numbers<[1], [0], [0], [1], [0, 0, 1, 1], [], []>} : vector<8x4xf32>, vector<4x16xf32>, vector<8x16xf32> -> vector<8x16xf32>
    %861 = arith.addf %856, %860 : vector<8x16xf32>
    %862 = vector.extract_strided_slice %851 {offsets = [0, 2], sizes = [4, 16], strides = [1, 1]} : vector<4x18xf32> to vector<4x16xf32>
    %c8_563 = arith.constant 8 : index
    %c0_564 = arith.constant 0 : index
    %c0_565 = arith.constant 0 : index
    %863 = vector.load %arg3[%c8_563, %c0_564, %c0_565] : memref<9x8x4xf32, #tpu.memory_space<vmem>>, vector<1x8x4xf32>
    %864 = vector.shape_cast %863 : vector<1x8x4xf32> to vector<8x4xf32>
    %cst_566 = arith.constant dense<0.000000e+00> : vector<8x16xf32>
    %865 = tpu.matmul %864, %862, %cst_566 {dimension_numbers = #tpu.dot_dimension_numbers<[1], [0], [0], [1], [0, 0, 1, 1], [], []>} : vector<8x4xf32>, vector<4x16xf32>, vector<8x16xf32> -> vector<8x16xf32>
    %866 = arith.addf %861, %865 : vector<8x16xf32>
    %c0_567 = arith.constant 0 : index
    %c0_568 = arith.constant 0 : index
    %c208 = arith.constant 208 : index
    %867 = vector.load %arg4[%c0_567, %c0_568, %c208] : memref<1x8x256xf32, #tpu.memory_space<vmem>>, vector<1x8x16xf32>
    %868 = vector.shape_cast %867 : vector<1x8x16xf32> to vector<8x16xf32>
    %869 = vector.shape_cast %866 : vector<8x16xf32> to vector<1x8x16xf32>
    tpu.vector_store %arg4[%c0_567, %c0_568, %c208], %869 {strides = array<i32>} : memref<1x8x256xf32, #tpu.memory_space<vmem>>, vector<1x8x16xf32>,
    %cst_569 = arith.constant dense<0.000000e+00> : vector<8xf32>
    %870 = vector.multi_reduction <add>, %866, %cst_569 [1] : vector<8x16xf32> to vector<8xf32>
    %871 = vector.shape_cast %870 : vector<8xf32> to vector<8x1xf32>
    %872 = arith.addf %810, %871 : vector<8x1xf32>
    %873 = arith.mulf %866, %866 : vector<8x16xf32>
    %cst_570 = arith.constant dense<0.000000e+00> : vector<8xf32>
    %874 = vector.multi_reduction <add>, %873, %cst_570 [1] : vector<8x16xf32> to vector<8xf32>
    %875 = vector.shape_cast %874 : vector<8xf32> to vector<8x1xf32>
    %876 = arith.addf %814, %875 : vector<8x1xf32>
    %cst_571 = arith.constant 0.000000e+00 : f32
    %877 = vector.broadcast %cst_571 : f32 to vector<8x16xf32>
    %878 = vector.extract_strided_slice %6 {offsets = [0, 14, 0], sizes = [4, 1, 18], strides = [1, 1, 1]} : vector<4x18x18xf32> to vector<4x1x18xf32>
    %879 = vector.shape_cast %878 : vector<4x1x18xf32> to vector<4x18xf32>
    %880 = vector.extract_strided_slice %879 {offsets = [0, 0], sizes = [4, 16], strides = [1, 1]} : vector<4x18xf32> to vector<4x16xf32>
    %c0_572 = arith.constant 0 : index
    %c0_573 = arith.constant 0 : index
    %c0_574 = arith.constant 0 : index
    %881 = vector.load %arg3[%c0_572, %c0_573, %c0_574] : memref<9x8x4xf32, #tpu.memory_space<vmem>>, vector<1x8x4xf32>
    %882 = vector.shape_cast %881 : vector<1x8x4xf32> to vector<8x4xf32>
    %cst_575 = arith.constant dense<0.000000e+00> : vector<8x16xf32>
    %883 = tpu.matmul %882, %880, %cst_575 {dimension_numbers = #tpu.dot_dimension_numbers<[1], [0], [0], [1], [0, 0, 1, 1], [], []>} : vector<8x4xf32>, vector<4x16xf32>, vector<8x16xf32> -> vector<8x16xf32>
    %884 = arith.addf %877, %883 : vector<8x16xf32>
    %885 = vector.extract_strided_slice %879 {offsets = [0, 1], sizes = [4, 16], strides = [1, 1]} : vector<4x18xf32> to vector<4x16xf32>
    %c1_576 = arith.constant 1 : index
    %c0_577 = arith.constant 0 : index
    %c0_578 = arith.constant 0 : index
    %886 = vector.load %arg3[%c1_576, %c0_577, %c0_578] : memref<9x8x4xf32, #tpu.memory_space<vmem>>, vector<1x8x4xf32>
    %887 = vector.shape_cast %886 : vector<1x8x4xf32> to vector<8x4xf32>
    %cst_579 = arith.constant dense<0.000000e+00> : vector<8x16xf32>
    %888 = tpu.matmul %887, %885, %cst_579 {dimension_numbers = #tpu.dot_dimension_numbers<[1], [0], [0], [1], [0, 0, 1, 1], [], []>} : vector<8x4xf32>, vector<4x16xf32>, vector<8x16xf32> -> vector<8x16xf32>
    %889 = arith.addf %884, %888 : vector<8x16xf32>
    %890 = vector.extract_strided_slice %879 {offsets = [0, 2], sizes = [4, 16], strides = [1, 1]} : vector<4x18xf32> to vector<4x16xf32>
    %c2_580 = arith.constant 2 : index
    %c0_581 = arith.constant 0 : index
    %c0_582 = arith.constant 0 : index
    %891 = vector.load %arg3[%c2_580, %c0_581, %c0_582] : memref<9x8x4xf32, #tpu.memory_space<vmem>>, vector<1x8x4xf32>
    %892 = vector.shape_cast %891 : vector<1x8x4xf32> to vector<8x4xf32>
    %cst_583 = arith.constant dense<0.000000e+00> : vector<8x16xf32>
    %893 = tpu.matmul %892, %890, %cst_583 {dimension_numbers = #tpu.dot_dimension_numbers<[1], [0], [0], [1], [0, 0, 1, 1], [], []>} : vector<8x4xf32>, vector<4x16xf32>, vector<8x16xf32> -> vector<8x16xf32>
    %894 = arith.addf %889, %893 : vector<8x16xf32>
    %895 = vector.extract_strided_slice %6 {offsets = [0, 15, 0], sizes = [4, 1, 18], strides = [1, 1, 1]} : vector<4x18x18xf32> to vector<4x1x18xf32>
    %896 = vector.shape_cast %895 : vector<4x1x18xf32> to vector<4x18xf32>
    %897 = vector.extract_strided_slice %896 {offsets = [0, 0], sizes = [4, 16], strides = [1, 1]} : vector<4x18xf32> to vector<4x16xf32>
    %c3_584 = arith.constant 3 : index
    %c0_585 = arith.constant 0 : index
    %c0_586 = arith.constant 0 : index
    %898 = vector.load %arg3[%c3_584, %c0_585, %c0_586] : memref<9x8x4xf32, #tpu.memory_space<vmem>>, vector<1x8x4xf32>
    %899 = vector.shape_cast %898 : vector<1x8x4xf32> to vector<8x4xf32>
    %cst_587 = arith.constant dense<0.000000e+00> : vector<8x16xf32>
    %900 = tpu.matmul %899, %897, %cst_587 {dimension_numbers = #tpu.dot_dimension_numbers<[1], [0], [0], [1], [0, 0, 1, 1], [], []>} : vector<8x4xf32>, vector<4x16xf32>, vector<8x16xf32> -> vector<8x16xf32>
    %901 = arith.addf %894, %900 : vector<8x16xf32>
    %902 = vector.extract_strided_slice %896 {offsets = [0, 1], sizes = [4, 16], strides = [1, 1]} : vector<4x18xf32> to vector<4x16xf32>
    %c4_588 = arith.constant 4 : index
    %c0_589 = arith.constant 0 : index
    %c0_590 = arith.constant 0 : index
    %903 = vector.load %arg3[%c4_588, %c0_589, %c0_590] : memref<9x8x4xf32, #tpu.memory_space<vmem>>, vector<1x8x4xf32>
    %904 = vector.shape_cast %903 : vector<1x8x4xf32> to vector<8x4xf32>
    %cst_591 = arith.constant dense<0.000000e+00> : vector<8x16xf32>
    %905 = tpu.matmul %904, %902, %cst_591 {dimension_numbers = #tpu.dot_dimension_numbers<[1], [0], [0], [1], [0, 0, 1, 1], [], []>} : vector<8x4xf32>, vector<4x16xf32>, vector<8x16xf32> -> vector<8x16xf32>
    %906 = arith.addf %901, %905 : vector<8x16xf32>
    %907 = vector.extract_strided_slice %896 {offsets = [0, 2], sizes = [4, 16], strides = [1, 1]} : vector<4x18xf32> to vector<4x16xf32>
    %c5_592 = arith.constant 5 : index
    %c0_593 = arith.constant 0 : index
    %c0_594 = arith.constant 0 : index
    %908 = vector.load %arg3[%c5_592, %c0_593, %c0_594] : memref<9x8x4xf32, #tpu.memory_space<vmem>>, vector<1x8x4xf32>
    %909 = vector.shape_cast %908 : vector<1x8x4xf32> to vector<8x4xf32>
    %cst_595 = arith.constant dense<0.000000e+00> : vector<8x16xf32>
    %910 = tpu.matmul %909, %907, %cst_595 {dimension_numbers = #tpu.dot_dimension_numbers<[1], [0], [0], [1], [0, 0, 1, 1], [], []>} : vector<8x4xf32>, vector<4x16xf32>, vector<8x16xf32> -> vector<8x16xf32>
    %911 = arith.addf %906, %910 : vector<8x16xf32>
    %912 = vector.extract_strided_slice %6 {offsets = [0, 16, 0], sizes = [4, 1, 18], strides = [1, 1, 1]} : vector<4x18x18xf32> to vector<4x1x18xf32>
    %913 = vector.shape_cast %912 : vector<4x1x18xf32> to vector<4x18xf32>
    %914 = vector.extract_strided_slice %913 {offsets = [0, 0], sizes = [4, 16], strides = [1, 1]} : vector<4x18xf32> to vector<4x16xf32>
    %c6_596 = arith.constant 6 : index
    %c0_597 = arith.constant 0 : index
    %c0_598 = arith.constant 0 : index
    %915 = vector.load %arg3[%c6_596, %c0_597, %c0_598] : memref<9x8x4xf32, #tpu.memory_space<vmem>>, vector<1x8x4xf32>
    %916 = vector.shape_cast %915 : vector<1x8x4xf32> to vector<8x4xf32>
    %cst_599 = arith.constant dense<0.000000e+00> : vector<8x16xf32>
    %917 = tpu.matmul %916, %914, %cst_599 {dimension_numbers = #tpu.dot_dimension_numbers<[1], [0], [0], [1], [0, 0, 1, 1], [], []>} : vector<8x4xf32>, vector<4x16xf32>, vector<8x16xf32> -> vector<8x16xf32>
    %918 = arith.addf %911, %917 : vector<8x16xf32>
    %919 = vector.extract_strided_slice %913 {offsets = [0, 1], sizes = [4, 16], strides = [1, 1]} : vector<4x18xf32> to vector<4x16xf32>
    %c7_600 = arith.constant 7 : index
    %c0_601 = arith.constant 0 : index
    %c0_602 = arith.constant 0 : index
    %920 = vector.load %arg3[%c7_600, %c0_601, %c0_602] : memref<9x8x4xf32, #tpu.memory_space<vmem>>, vector<1x8x4xf32>
    %921 = vector.shape_cast %920 : vector<1x8x4xf32> to vector<8x4xf32>
    %cst_603 = arith.constant dense<0.000000e+00> : vector<8x16xf32>
    %922 = tpu.matmul %921, %919, %cst_603 {dimension_numbers = #tpu.dot_dimension_numbers<[1], [0], [0], [1], [0, 0, 1, 1], [], []>} : vector<8x4xf32>, vector<4x16xf32>, vector<8x16xf32> -> vector<8x16xf32>
    %923 = arith.addf %918, %922 : vector<8x16xf32>
    %924 = vector.extract_strided_slice %913 {offsets = [0, 2], sizes = [4, 16], strides = [1, 1]} : vector<4x18xf32> to vector<4x16xf32>
    %c8_604 = arith.constant 8 : index
    %c0_605 = arith.constant 0 : index
    %c0_606 = arith.constant 0 : index
    %925 = vector.load %arg3[%c8_604, %c0_605, %c0_606] : memref<9x8x4xf32, #tpu.memory_space<vmem>>, vector<1x8x4xf32>
    %926 = vector.shape_cast %925 : vector<1x8x4xf32> to vector<8x4xf32>
    %cst_607 = arith.constant dense<0.000000e+00> : vector<8x16xf32>
    %927 = tpu.matmul %926, %924, %cst_607 {dimension_numbers = #tpu.dot_dimension_numbers<[1], [0], [0], [1], [0, 0, 1, 1], [], []>} : vector<8x4xf32>, vector<4x16xf32>, vector<8x16xf32> -> vector<8x16xf32>
    %928 = arith.addf %923, %927 : vector<8x16xf32>
    %c0_608 = arith.constant 0 : index
    %c0_609 = arith.constant 0 : index
    %c224 = arith.constant 224 : index
    %929 = vector.load %arg4[%c0_608, %c0_609, %c224] : memref<1x8x256xf32, #tpu.memory_space<vmem>>, vector<1x8x16xf32>
    %930 = vector.shape_cast %929 : vector<1x8x16xf32> to vector<8x16xf32>
    %931 = vector.shape_cast %928 : vector<8x16xf32> to vector<1x8x16xf32>
    tpu.vector_store %arg4[%c0_608, %c0_609, %c224], %931 {strides = array<i32>} : memref<1x8x256xf32, #tpu.memory_space<vmem>>, vector<1x8x16xf32>,
    %cst_610 = arith.constant dense<0.000000e+00> : vector<8xf32>
    %932 = vector.multi_reduction <add>, %928, %cst_610 [1] : vector<8x16xf32> to vector<8xf32>
    %933 = vector.shape_cast %932 : vector<8xf32> to vector<8x1xf32>
    %934 = arith.addf %872, %933 : vector<8x1xf32>
    %935 = arith.mulf %928, %928 : vector<8x16xf32>
    %cst_611 = arith.constant dense<0.000000e+00> : vector<8xf32>
    %936 = vector.multi_reduction <add>, %935, %cst_611 [1] : vector<8x16xf32> to vector<8xf32>
    %937 = vector.shape_cast %936 : vector<8xf32> to vector<8x1xf32>
    %938 = arith.addf %876, %937 : vector<8x1xf32>
    %cst_612 = arith.constant 0.000000e+00 : f32
    %939 = vector.broadcast %cst_612 : f32 to vector<8x16xf32>
    %940 = vector.extract_strided_slice %6 {offsets = [0, 15, 0], sizes = [4, 1, 18], strides = [1, 1, 1]} : vector<4x18x18xf32> to vector<4x1x18xf32>
    %941 = vector.shape_cast %940 : vector<4x1x18xf32> to vector<4x18xf32>
    %942 = vector.extract_strided_slice %941 {offsets = [0, 0], sizes = [4, 16], strides = [1, 1]} : vector<4x18xf32> to vector<4x16xf32>
    %c0_613 = arith.constant 0 : index
    %c0_614 = arith.constant 0 : index
    %c0_615 = arith.constant 0 : index
    %943 = vector.load %arg3[%c0_613, %c0_614, %c0_615] : memref<9x8x4xf32, #tpu.memory_space<vmem>>, vector<1x8x4xf32>
    %944 = vector.shape_cast %943 : vector<1x8x4xf32> to vector<8x4xf32>
    %cst_616 = arith.constant dense<0.000000e+00> : vector<8x16xf32>
    %945 = tpu.matmul %944, %942, %cst_616 {dimension_numbers = #tpu.dot_dimension_numbers<[1], [0], [0], [1], [0, 0, 1, 1], [], []>} : vector<8x4xf32>, vector<4x16xf32>, vector<8x16xf32> -> vector<8x16xf32>
    %946 = arith.addf %939, %945 : vector<8x16xf32>
    %947 = vector.extract_strided_slice %941 {offsets = [0, 1], sizes = [4, 16], strides = [1, 1]} : vector<4x18xf32> to vector<4x16xf32>
    %c1_617 = arith.constant 1 : index
    %c0_618 = arith.constant 0 : index
    %c0_619 = arith.constant 0 : index
    %948 = vector.load %arg3[%c1_617, %c0_618, %c0_619] : memref<9x8x4xf32, #tpu.memory_space<vmem>>, vector<1x8x4xf32>
    %949 = vector.shape_cast %948 : vector<1x8x4xf32> to vector<8x4xf32>
    %cst_620 = arith.constant dense<0.000000e+00> : vector<8x16xf32>
    %950 = tpu.matmul %949, %947, %cst_620 {dimension_numbers = #tpu.dot_dimension_numbers<[1], [0], [0], [1], [0, 0, 1, 1], [], []>} : vector<8x4xf32>, vector<4x16xf32>, vector<8x16xf32> -> vector<8x16xf32>
    %951 = arith.addf %946, %950 : vector<8x16xf32>
    %952 = vector.extract_strided_slice %941 {offsets = [0, 2], sizes = [4, 16], strides = [1, 1]} : vector<4x18xf32> to vector<4x16xf32>
    %c2_621 = arith.constant 2 : index
    %c0_622 = arith.constant 0 : index
    %c0_623 = arith.constant 0 : index
    %953 = vector.load %arg3[%c2_621, %c0_622, %c0_623] : memref<9x8x4xf32, #tpu.memory_space<vmem>>, vector<1x8x4xf32>
    %954 = vector.shape_cast %953 : vector<1x8x4xf32> to vector<8x4xf32>
    %cst_624 = arith.constant dense<0.000000e+00> : vector<8x16xf32>
    %955 = tpu.matmul %954, %952, %cst_624 {dimension_numbers = #tpu.dot_dimension_numbers<[1], [0], [0], [1], [0, 0, 1, 1], [], []>} : vector<8x4xf32>, vector<4x16xf32>, vector<8x16xf32> -> vector<8x16xf32>
    %956 = arith.addf %951, %955 : vector<8x16xf32>
    %957 = vector.extract_strided_slice %6 {offsets = [0, 16, 0], sizes = [4, 1, 18], strides = [1, 1, 1]} : vector<4x18x18xf32> to vector<4x1x18xf32>
    %958 = vector.shape_cast %957 : vector<4x1x18xf32> to vector<4x18xf32>
    %959 = vector.extract_strided_slice %958 {offsets = [0, 0], sizes = [4, 16], strides = [1, 1]} : vector<4x18xf32> to vector<4x16xf32>
    %c3_625 = arith.constant 3 : index
    %c0_626 = arith.constant 0 : index
    %c0_627 = arith.constant 0 : index
    %960 = vector.load %arg3[%c3_625, %c0_626, %c0_627] : memref<9x8x4xf32, #tpu.memory_space<vmem>>, vector<1x8x4xf32>
    %961 = vector.shape_cast %960 : vector<1x8x4xf32> to vector<8x4xf32>
    %cst_628 = arith.constant dense<0.000000e+00> : vector<8x16xf32>
    %962 = tpu.matmul %961, %959, %cst_628 {dimension_numbers = #tpu.dot_dimension_numbers<[1], [0], [0], [1], [0, 0, 1, 1], [], []>} : vector<8x4xf32>, vector<4x16xf32>, vector<8x16xf32> -> vector<8x16xf32>
    %963 = arith.addf %956, %962 : vector<8x16xf32>
    %964 = vector.extract_strided_slice %958 {offsets = [0, 1], sizes = [4, 16], strides = [1, 1]} : vector<4x18xf32> to vector<4x16xf32>
    %c4_629 = arith.constant 4 : index
    %c0_630 = arith.constant 0 : index
    %c0_631 = arith.constant 0 : index
    %965 = vector.load %arg3[%c4_629, %c0_630, %c0_631] : memref<9x8x4xf32, #tpu.memory_space<vmem>>, vector<1x8x4xf32>
    %966 = vector.shape_cast %965 : vector<1x8x4xf32> to vector<8x4xf32>
    %cst_632 = arith.constant dense<0.000000e+00> : vector<8x16xf32>
    %967 = tpu.matmul %966, %964, %cst_632 {dimension_numbers = #tpu.dot_dimension_numbers<[1], [0], [0], [1], [0, 0, 1, 1], [], []>} : vector<8x4xf32>, vector<4x16xf32>, vector<8x16xf32> -> vector<8x16xf32>
    %968 = arith.addf %963, %967 : vector<8x16xf32>
    %969 = vector.extract_strided_slice %958 {offsets = [0, 2], sizes = [4, 16], strides = [1, 1]} : vector<4x18xf32> to vector<4x16xf32>
    %c5_633 = arith.constant 5 : index
    %c0_634 = arith.constant 0 : index
    %c0_635 = arith.constant 0 : index
    %970 = vector.load %arg3[%c5_633, %c0_634, %c0_635] : memref<9x8x4xf32, #tpu.memory_space<vmem>>, vector<1x8x4xf32>
    %971 = vector.shape_cast %970 : vector<1x8x4xf32> to vector<8x4xf32>
    %cst_636 = arith.constant dense<0.000000e+00> : vector<8x16xf32>
    %972 = tpu.matmul %971, %969, %cst_636 {dimension_numbers = #tpu.dot_dimension_numbers<[1], [0], [0], [1], [0, 0, 1, 1], [], []>} : vector<8x4xf32>, vector<4x16xf32>, vector<8x16xf32> -> vector<8x16xf32>
    %973 = arith.addf %968, %972 : vector<8x16xf32>
    %974 = vector.extract_strided_slice %6 {offsets = [0, 17, 0], sizes = [4, 1, 18], strides = [1, 1, 1]} : vector<4x18x18xf32> to vector<4x1x18xf32>
    %975 = vector.shape_cast %974 : vector<4x1x18xf32> to vector<4x18xf32>
    %976 = vector.extract_strided_slice %975 {offsets = [0, 0], sizes = [4, 16], strides = [1, 1]} : vector<4x18xf32> to vector<4x16xf32>
    %c6_637 = arith.constant 6 : index
    %c0_638 = arith.constant 0 : index
    %c0_639 = arith.constant 0 : index
    %977 = vector.load %arg3[%c6_637, %c0_638, %c0_639] : memref<9x8x4xf32, #tpu.memory_space<vmem>>, vector<1x8x4xf32>
    %978 = vector.shape_cast %977 : vector<1x8x4xf32> to vector<8x4xf32>
    %cst_640 = arith.constant dense<0.000000e+00> : vector<8x16xf32>
    %979 = tpu.matmul %978, %976, %cst_640 {dimension_numbers = #tpu.dot_dimension_numbers<[1], [0], [0], [1], [0, 0, 1, 1], [], []>} : vector<8x4xf32>, vector<4x16xf32>, vector<8x16xf32> -> vector<8x16xf32>
    %980 = arith.addf %973, %979 : vector<8x16xf32>
    %981 = vector.extract_strided_slice %975 {offsets = [0, 1], sizes = [4, 16], strides = [1, 1]} : vector<4x18xf32> to vector<4x16xf32>
    %c7_641 = arith.constant 7 : index
    %c0_642 = arith.constant 0 : index
    %c0_643 = arith.constant 0 : index
    %982 = vector.load %arg3[%c7_641, %c0_642, %c0_643] : memref<9x8x4xf32, #tpu.memory_space<vmem>>, vector<1x8x4xf32>
    %983 = vector.shape_cast %982 : vector<1x8x4xf32> to vector<8x4xf32>
    %cst_644 = arith.constant dense<0.000000e+00> : vector<8x16xf32>
    %984 = tpu.matmul %983, %981, %cst_644 {dimension_numbers = #tpu.dot_dimension_numbers<[1], [0], [0], [1], [0, 0, 1, 1], [], []>} : vector<8x4xf32>, vector<4x16xf32>, vector<8x16xf32> -> vector<8x16xf32>
    %985 = arith.addf %980, %984 : vector<8x16xf32>
    %986 = vector.extract_strided_slice %975 {offsets = [0, 2], sizes = [4, 16], strides = [1, 1]} : vector<4x18xf32> to vector<4x16xf32>
    %c8_645 = arith.constant 8 : index
    %c0_646 = arith.constant 0 : index
    %c0_647 = arith.constant 0 : index
    %987 = vector.load %arg3[%c8_645, %c0_646, %c0_647] : memref<9x8x4xf32, #tpu.memory_space<vmem>>, vector<1x8x4xf32>
    %988 = vector.shape_cast %987 : vector<1x8x4xf32> to vector<8x4xf32>
    %cst_648 = arith.constant dense<0.000000e+00> : vector<8x16xf32>
    %989 = tpu.matmul %988, %986, %cst_648 {dimension_numbers = #tpu.dot_dimension_numbers<[1], [0], [0], [1], [0, 0, 1, 1], [], []>} : vector<8x4xf32>, vector<4x16xf32>, vector<8x16xf32> -> vector<8x16xf32>
    %990 = arith.addf %985, %989 : vector<8x16xf32>
    %c0_649 = arith.constant 0 : index
    %c0_650 = arith.constant 0 : index
    %c240 = arith.constant 240 : index
    %991 = vector.load %arg4[%c0_649, %c0_650, %c240] : memref<1x8x256xf32, #tpu.memory_space<vmem>>, vector<1x8x16xf32>
    %992 = vector.shape_cast %991 : vector<1x8x16xf32> to vector<8x16xf32>
    %993 = vector.shape_cast %990 : vector<8x16xf32> to vector<1x8x16xf32>
    tpu.vector_store %arg4[%c0_649, %c0_650, %c240], %993 {strides = array<i32>} : memref<1x8x256xf32, #tpu.memory_space<vmem>>, vector<1x8x16xf32>,
    %cst_651 = arith.constant dense<0.000000e+00> : vector<8xf32>
    %994 = vector.multi_reduction <add>, %990, %cst_651 [1] : vector<8x16xf32> to vector<8xf32>
    %995 = vector.shape_cast %994 : vector<8xf32> to vector<8x1xf32>
    %996 = arith.addf %934, %995 : vector<8x1xf32>
    %997 = arith.mulf %990, %990 : vector<8x16xf32>
    %cst_652 = arith.constant dense<0.000000e+00> : vector<8xf32>
    %998 = vector.multi_reduction <add>, %997, %cst_652 [1] : vector<8x16xf32> to vector<8xf32>
    %999 = vector.shape_cast %998 : vector<8xf32> to vector<8x1xf32>
    %1000 = arith.addf %938, %999 : vector<8x1xf32>
    %c0_653 = arith.constant 0 : index
    %c0_654 = arith.constant 0 : index
    %c0_655 = arith.constant 0 : index
    %1001 = vector.load %arg5[%c0_653, %c0_654, %c0_655] : memref<1x8x2xf32, #tpu.memory_space<vmem>>, vector<1x8x2xf32>
    %1002 = vector.shape_cast %1001 : vector<1x8x2xf32> to vector<8x2xf32>
    %1003 = tpu.concatenate %996, %1000 in 1 : vector<8x1xf32>, vector<8x1xf32> -> vector<8x2xf32>
    %1004 = arith.addf %1002, %1003 : vector<8x2xf32>
    %c0_656 = arith.constant 0 : index
    %c0_657 = arith.constant 0 : index
    %c0_658 = arith.constant 0 : index
    %1005 = vector.load %arg5[%c0_656, %c0_657, %c0_658] : memref<1x8x2xf32, #tpu.memory_space<vmem>>, vector<1x8x2xf32>
    %1006 = vector.shape_cast %1005 : vector<1x8x2xf32> to vector<8x2xf32>
    %1007 = vector.shape_cast %1004 : vector<8x2xf32> to vector<1x8x2xf32>
    tpu.vector_store %arg5[%c0_656, %c0_657, %c0_658], %1007 {strides = array<i32>} : memref<1x8x2xf32, #tpu.memory_space<vmem>>, vector<1x8x2xf32>,
    return
  }
  func.func @transform_0(%arg0: i32, %arg1: i32) -> (i32, i32, i32, i32) {
    %c0_i32 = arith.constant 0 : i32
    %c0_i32_0 = arith.constant 0 : i32
    %c0_i32_1 = arith.constant 0 : i32
    %c0_i32_2 = arith.constant 0 : i32
    return %arg0, %c0_i32, %c0_i32_0, %c0_i32_1 : i32, i32, i32, i32
  }
  func.func @transform_1(%arg0: i32, %arg1: i32) -> (i32, i32, i32) {
    %c0_i32 = arith.constant 0 : i32
    %c0_i32_0 = arith.constant 0 : i32
    %c0_i32_1 = arith.constant 0 : i32
    %c0_i32_2 = arith.constant 0 : i32
    return %c0_i32, %c0_i32_0, %c0_i32_1 : i32, i32, i32
  }
  func.func @transform_2(%arg0: i32, %arg1: i32) -> (i32, i32, i32) {
    %c0_i32 = arith.constant 0 : i32
    %c0_i32_0 = arith.constant 0 : i32
    return %arg0, %c0_i32, %arg1 : i32, i32, i32
  }
  func.func @transform_3(%arg0: i32, %arg1: i32) -> (i32, i32, i32) {
    %c0_i32 = arith.constant 0 : i32
    %c0_i32_0 = arith.constant 0 : i32
    %c0_i32_1 = arith.constant 0 : i32
    return %arg0, %c0_i32, %c0_i32_0 : i32, i32, i32
  }
}

module attributes {stable_mosaic.version = 11 : i64} {
  func.func @_bn_apply_kernel(%arg0: i32, %arg1: i32, %arg2: memref<1x8x256xf32, #tpu.memory_space<vmem>>, %arg3: memref<8x2xf32, #tpu.memory_space<vmem>>, %arg4: memref<1x8x256xf32, #tpu.memory_space<vmem>>) attributes {dimension_semantics = [#tpu.dimension_semantics<parallel>, #tpu.dimension_semantics<parallel>], iteration_bounds = array<i64: 2, 1>, scalar_prefetch = 0 : i64, scratch_operands = 0 : i64, tpu.core_type = #tpu.core_type<tc>, window_params = [{transform_indices = @transform_0, window_bounds = array<i64: 1, 8, 256>}, {pipeline_mode = #tpu.pipeline_mode<synchronous>, transform_indices = @transform_1, window_bounds = array<i64: 8, 2>}, {transform_indices = @transform_2, window_bounds = array<i64: 1, 8, 256>}]} {
    %c0 = arith.constant 0 : index
    %c0_0 = arith.constant 0 : index
    %c0_1 = arith.constant 0 : index
    %0 = vector.load %arg2[%c0, %c0_0, %c0_1] : memref<1x8x256xf32, #tpu.memory_space<vmem>>, vector<1x8x256xf32>
    %1 = vector.shape_cast %0 : vector<1x8x256xf32> to vector<8x256xf32>
    %c0_2 = arith.constant 0 : index
    %c0_3 = arith.constant 0 : index
    %2 = vector.load %arg3[%c0_2, %c0_3] : memref<8x2xf32, #tpu.memory_space<vmem>>, vector<8x1xf32>
    %3 = vector.broadcast %2 : vector<8x1xf32> to vector<8x256xf32>
    %4 = arith.mulf %1, %3 : vector<8x256xf32>
    %c0_4 = arith.constant 0 : index
    %c1 = arith.constant 1 : index
    %5 = vector.load %arg3[%c0_4, %c1] : memref<8x2xf32, #tpu.memory_space<vmem>>, vector<8x1xf32>
    %6 = vector.broadcast %5 : vector<8x1xf32> to vector<8x256xf32>
    %7 = arith.addf %4, %6 : vector<8x256xf32>
    %c0_5 = arith.constant 0 : index
    %c0_6 = arith.constant 0 : index
    %c0_7 = arith.constant 0 : index
    %8 = vector.load %arg4[%c0_5, %c0_6, %c0_7] : memref<1x8x256xf32, #tpu.memory_space<vmem>>, vector<1x8x256xf32>
    %9 = vector.shape_cast %8 : vector<1x8x256xf32> to vector<8x256xf32>
    %10 = vector.shape_cast %7 : vector<8x256xf32> to vector<1x8x256xf32>
    tpu.vector_store %arg4[%c0_5, %c0_6, %c0_7], %10 {strides = array<i32>} : memref<1x8x256xf32, #tpu.memory_space<vmem>>, vector<1x8x256xf32>,
    return
  }
  func.func @transform_0(%arg0: i32, %arg1: i32) -> (i32, i32, i32) {
    %c0_i32 = arith.constant 0 : i32
    %c0_i32_0 = arith.constant 0 : i32
    return %arg0, %c0_i32, %arg1 : i32, i32, i32
  }
  func.func @transform_1(%arg0: i32, %arg1: i32) -> (i32, i32) {
    %c0_i32 = arith.constant 0 : i32
    %c0_i32_0 = arith.constant 0 : i32
    %c0_i32_1 = arith.constant 0 : i32
    return %c0_i32, %c0_i32_0 : i32, i32
  }
  func.func @transform_2(%arg0: i32, %arg1: i32) -> (i32, i32, i32) {
    %c0_i32 = arith.constant 0 : i32
    %c0_i32_0 = arith.constant 0 : i32
    return %arg0, %c0_i32, %arg1 : i32, i32, i32
  }
}

</mosaic_0001>

<bundles_post_ra>
// kernel: conv2d_batchnorm.3
= control target key start
LH: loop header
LB: loop body
LE: loop exit
PB: predicated region body
PF: predicated region fallthrough
CT: control target
= control target key end

     0   :  { %s370_s9 = smov 0   ;;  %s372_s10 = smov 0   ;;  %s403_s0 = inlined_call_operand.vmem [shape: f32[2,8,256], index: 0, kind: input, shape index: {}]   ;;  %s404_s1 = inlined_call_operand.vmem [shape: f32[8,2], index: 1, kind: input, shape index: {}]   ;;  %s405_s2 = inlined_call_operand.vmem [shape: f32[2,8,256], index: 2, kind: output, shape index: {}]  }
   0x1   :  { %s374_s11 = smov 0  }
   0x2 LB: > { %s24_s12 = sadd.s32 1, %s347_s10  ;;  %p292_p0 = scmp.ge.s32.totalorder %s351_s11, 1  ;;  %s351_s11 = sphi %s374_s11, %s12_s11   ;;  %s347_s10 = sphi %s372_s10, %s407_s10   ;;  %s343_s9 = sphi %s370_s9, %s406_s9  }
   0x3   : > { %p26_p1 = scmp.ge.s32.totalorder %s24_s12, 2  ;;  %p133_p2 = scmp.lt.s32.totalorder %s351_s11, 3 }
   0x5   : > { %s409_s12 = smov (%p26_p1, %s24_s12), 0  ;;  %p134_p3 = pnand %p292_p0, %p133_p2 }
   0x6   : > { %p164_p4 = scmp.lt.s32.totalorder (!%p134_p3), %s343_s9, 1 }
   0x7   : > { %137 = sbr.rel (%p134_p3) target bundleno = 146 (0x92), region = 28 }
   0xc   : > { %v185_v0 = vld [vmem:[%s404_s1] sm:$0xff]  ;;  %v353_v1 = vmov 0   ;;  %v354_v2 = vmov 1   ;;  %s411_s9 = smov (!%p164_p4, %s343_s9), 1 }
   0xd   : > { %327 = vset.pattern.permute.xlu0 %v353_v1  ;;  %s299_s15 = sshll.u32 %s411_s9, 4 }
   0xe   : > { %188 = vperm.xlu0 %327, %v185_v0   ;;  %s171_s18 = scalar_lea.vmem %s403_s0, %s299_s15  ;;  %s181_s21 = scalar_lea.vmem %s405_s2, %s299_s15 }
   0xf   : > { %v183_v4 = vld [vmem:[%s171_s18] sm:$0xff]  ;;  %v184_v5 = vld [vmem:[%s171_s18 + $0x8] sm:$0xff] }
  0x12   : > { %328 = vset.pattern.permute.xlu0 %v354_v2 }
  0x13   : > { %194 = vperm.xlu0 %328, %v185_v0  }
  0x89   : > { %v189_v3 = vpop.permute.xlu0 %188 }
  0x8a   : > { %v191_v6 = vmul.f32 %v189_v3, %v183_v4  ;;  %v192_v7 = vmul.f32 %v189_v3, %v184_v5 }
  0x8e   : > { %v195_v8 = vpop.permute.xlu0 %194 }
  0x8f   : > { %v197_v9 = vadd.f32 %v195_v8, %v191_v6  ;;  %v198_v10 = vadd.f32 %v195_v8, %v192_v7 }
  0x91   : > { %199 = vst [vmem:[%s181_s21] sm:$0xff] %v197_v9  ;;  %200 = vst [vmem:[%s181_s21 + $0x8] sm:$0xff] %v198_v10 }
  0x92 PF: > { %s12_s11 = sadd.s32 1, %s351_s11   ;;  %s406_s9 = smov %s347_s10 }
  0x93   : > { %p9_p5 = scmp.ge.s32.totalorder %s12_s11, 4   ;;  %s407_s10 = smov %s409_s12 }
  0x95   :  { %11 = sbr.rel (!%p9_p5) target bundleno = 2 (0x2), region = 58 }

// kernel: conv2d_batchnorm.2
= control target key start
LH: loop header
LB: loop body
LE: loop exit
PB: predicated region body
PF: predicated region fallthrough
CT: control target
= control target key end

     0   :  { %s13185_s12 = smov 0   ;;  %s13187_s13 = smov 0   ;;  %s14780_s0 = inlined_call_operand.vmem [shape: f32[2,4,18,18], index: 0, kind: input, shape index: {}]   ;;  %s14781_s1 = inlined_call_operand.vmem [shape: f32[9,8,4], index: 1, kind: input, shape index: {}]   ;;  %s14782_s2 = inlined_call_operand.vmem [shape: f32[2,8,256], index: 2, kind: output, shape index: {0}]   ;;  %s14783_s3 = inlined_call_operand.vmem [shape: f32[2,8,2], index: 3, kind: output, shape index: {1}]  }
   0x1   :  { %s13189_s14 = smov 0  }
   0x2 LB: > { %s26_s15 = sadd.s32 1, %s13148_s13  ;;  %p11662_p0 = scmp.ge.s32.totalorder %s13152_s14, 1  ;;  %s13152_s14 = sphi %s13189_s14, %s14_s14   ;;  %s13148_s13 = sphi %s13187_s13, %s14785_s13   ;;  %s13144_s12 = sphi %s13185_s12, %s14784_s12  }
   0x3   : > { %p28_p1 = scmp.ge.s32.totalorder %s26_s15, 2  ;;  %p154_p2 = scmp.lt.s32.totalorder %s13152_s14, 3 }
   0x5   : > { %s14787_s15 = smov (%p28_p1, %s26_s15), 0  ;;  %p155_p3 = pnand %p11662_p0, %p154_p2 }
   0x6   : > { %p186_p4 = scmp.lt.s32.totalorder (!%p155_p3), %s13144_s12, 1  ;;  %s13156_s22 = smov (!%p155_p3), 127  }
   0x7   : > { %158 = sbr.rel (%p155_p3) target bundleno = 862 (0x35e), region = 28  ;;  %s13157_s25 = smov (!%p155_p3), 126  }
   0x8   : > { %s13159_s23 = smov (!%p155_p3), 64   ;;  %s13160_s28 = smov (!%p155_p3), 32  }
   0x9   : > { %s13161_s4 = smov (!%p155_p3), 48   ;;  %s13162_s5 = smov (!%p155_p3), 96  }
   0xa   : > { %s13163_s6 = smov (!%p155_p3), 80   ;;  %s13164_s7 = smov (!%p155_p3), 112  }
   0xc   : > { %v13154_v0 = vmov 0.0   ;;  %s14789_s12 = smov (!%p186_p4, %s13144_s12), 1  ;;  %vm13155_vm0 = vmmov 0   ;;  %vm233_vm1 = vcmask 1041409   ;;  %vm236_vm2 = vcmask 1042434   ;;  %v13253_v22 = vld [vmem:[%s14781_s1] sm:$0xff] }
   0xd   : > { %12379 = vmatprep.subr.mxu1 %v13154_v0  ;;  %12374 = vmatprep.subr.mxu0 %v13154_v0  ;;  %s13094_s16 = smul.u32 96, %s14789_s12  ;;  %vm239_vm3 = vcmask 1043459   ;;  %vm247_vm4 = vcmask 1043456   ;;  %vm243_vm5 = vcmask 31744   ;;  %v13276_v29 = vld [vmem:[%s14781_s1 + $0x18] sm:$0xff]  ;;  %s12085_s8 = sshll.u32 %s14789_s12, 4 }
   0xe   : > { %12381 = vmatprep.mubr.msk.f32.mxu1 %vm13155_vm0, %v13154_v0  ;;  %12376 = vmatprep.mubr.msk.f32.mxu0 %vm13155_vm0, %v13154_v0  ;;  %s14269_s11 = scalar_lea.vmem %s14782_s2, %s12085_s8  ;;  %vm963_vm6 = vcmask 130048   ;;  %vm1667_vm7 = vcmask 261248   ;;  %vm2372_vm8 = vcmask 392448   ;;  %vm3077_vm9 = vcmask 523648   ;;  %s11666_s8 = sshll.u32 %s14789_s12, 3 }
   0xf   : > { %s13215_s19 = scalar_lea.vmem %s14780_s0, %s13094_s16  ;;  %s13158_s16 = smov 16   ;;  %vm3782_vm10 = vcmask 654848   ;;  %vm4487_vm11 = vcmask 786048   ;;  %vm5195_vm12 = vcmask 917248   ;;  %vm5899_vm13 = vcmask 1048448  }
  0x10   : > { %v13218_v1 = vld [vmem:[%s13215_s19] sm:$0xff]  ;;  %v13221_v2 = vld [vmem:[%s13215_s19 + $0x18] sm:$0xff]  ;;  %v13224_v3 = vld [vmem:[%s13215_s19 + $0x30] sm:$0xff]  ;;  %vm210_vm14 = vcmask 15360   ;;  %vm11539_vm15 = vcmask 7168  }
  0x11   : > { %v13227_v4 = vld [vmem:[%s13215_s19 + $0x48] sm:$0xff]  ;;  %v477_v5 = vrot.slane %v13218_v1, 1  ;;  %v479_v6 = vrot.slane %v13224_v3, 7  ;;  %v232_v7 = vrot.slane %v13221_v2, 7  ;;  %v235_v8 = vrot.slane %v13224_v3, 6  ;;  %v13326_v50 = vld [vmem:[%s13215_s19 + $0x20] sm:$0xff] }
  0x12   : > { %v481_v9 = vrot.slane %v13227_v4, 6  ;;  %v238_v10 = vrot.slane %v13227_v4, 5  ;;  %v721_v11 = vrot.slane %v13218_v1, 2  ;;  %v722_v12 = vrot.slane %v13221_v2, 1  ;;  %v13336_v56 = vld [vmem:[%s13215_s19 + $0x38] sm:$0xff]  ;;  %v13344_v58 = vld [vmem:[%s13215_s19 + $0x8] sm:$0xff] }
  0x13   : > { %v478_v13 = vsel %vm233_vm1, %v13221_v2, %v477_v5  ;;  %v234_v14 = vsel %vm233_vm1, %v232_v7, %v13218_v1  ;;  %v1423_v17 = vrot.slane %v13218_v1, 3  ;;  %v1424_v21 = vrot.slane %v13221_v2, 2  ;;  %v13352_v62 = vld [vmem:[%s13215_s19 + $0x50] sm:$0xff] }
  0x14   : > { %v480_v15 = vsel %vm236_vm2, %v479_v6, %v478_v13  ;;  %v237_v16 = vsel %vm236_vm2, %v235_v8, %v234_v14  ;;  %v723_v20 = vsel %vm233_vm1, %v722_v12, %v721_v11  ;;  %v725_v23 = vrot.slane %v13227_v4, 7 }
  0x15   : > { %v13245_v18 = vsel %vm239_vm3, %v481_v9, %v480_v15  ;;  %v240_v19 = vsel %vm239_vm3, %v238_v10, %v237_v16  ;;  %v724_v24 = vsel %vm236_vm2, %v13224_v3, %v723_v20  ;;  %v1426_v25 = vrot.slane %v13224_v3, 1 }
  0x16   : > { %561 = vrot.lane.b32.xlu1 %v13245_v18, %s13156_s22  ;;  %241 = vrot.lane.b32.xlu0 %v240_v19, %s13156_s22  ;;  %v1425_v26 = vsel %vm233_vm1, %v1424_v21, %v1423_v17  ;;  %v2127_v27 = vrot.slane %v13218_v1, 4  ;;  %v2128_v28 = vrot.slane %v13221_v2, 3  ;;  %v13282_v30 = vsel %vm239_vm3, %v725_v23, %v724_v24 }
  0x17   : > { %12380 = vmatpush3.msk.msra.mxu1 %vm247_vm4, %v240_v19  ;;  %v1427_v31 = vsel %vm236_vm2, %v1426_v25, %v1425_v26  ;;  %v2130_v32 = vrot.slane %v13224_v3, 2  ;;  %v2832_v34 = vrot.slane %v13218_v1, 5  ;;  %v2833_v35 = vrot.slane %v13221_v2, 4 }
  0x18   : > { %12382 = vmatmul.mubr.msk.f32.vlgmr.msra.gmra.mxu1 %vm243_vm5, %v13253_v22  ;;  %12389 = vmatprep.subr.mxu1 %v13154_v0  ;;  %v2129_v33 = vsel %vm233_vm1, %v2128_v28, %v2127_v27  ;;  %v13300_v36 = vsel %vm239_vm3, %v13227_v4, %v1427_v31  ;;  %v2132_v37 = vrot.slane %v13227_v4, 1  ;;  %v2835_v39 = vrot.slane %v13224_v3, 3 }
  0x19   : > { %12390 = vmatpush3.msk.msra.mxu1 %vm247_vm4, %v13245_v18  ;;  %12391 = vmatprep.mubr.msk.f32.mxu1 %vm13155_vm0, %v13154_v0  ;;  %v2131_v38 = vsel %vm236_vm2, %v2130_v32, %v2129_v33  ;;  %v2834_v40 = vsel %vm233_vm1, %v2833_v35, %v2832_v34  ;;  %v3537_v41 = vrot.slane %v13218_v1, 6  ;;  %v3538_v42 = vrot.slane %v13221_v2, 5 }
  0x1a   : > { %641 = vrot.lane.b32.xlu1 %v13245_v18, %s13157_s25  ;;  %397 = vrot.lane.b32.xlu0 %v240_v19, %s13157_s25  ;;  %v13313_v43 = vsel %vm239_vm3, %v2132_v37, %v2131_v38  ;;  %v2837_v44 = vrot.slane %v13227_v4, 2  ;;  %v2836_v45 = vsel %vm236_vm2, %v2835_v39, %v2834_v40  ;;  %v3540_v46 = vrot.slane %v13224_v3, 4 }
  0x1b   : > { %12399 = vmatprep.subr.mxu1 %v13154_v0  ;;  %v3539_v47 = vsel %vm233_vm1, %v3538_v42, %v3537_v41  ;;  %v4242_v48 = vrot.slane %v13218_v1, 7  ;;  %v4243_v49 = vrot.slane %v13221_v2, 6  ;;  %v3542_v52 = vrot.slane %v13227_v4, 3 }
  0x1c   : > { %12392 = vmatmul.mubr.msk.f32.vlgmr.msra.gmra.mxu1 %vm243_vm5, %v13276_v29  ;;  %v13329_v51 = vsel %vm239_vm3, %v2837_v44, %v2836_v45  ;;  %v3541_v53 = vsel %vm236_vm2, %v3540_v46, %v3539_v47  ;;  %v4245_v54 = vrot.slane %v13224_v3, 5  ;;  %v4951_v57 = vrot.slane %v13326_v50, 7 }
  0x1d   : > { %12401 = vmatprep.mubr.msk.f32.mxu1 %vm13155_vm0, %v13154_v0  ;;  %v4244_v55 = vsel %vm233_vm1, %v4243_v49, %v4242_v48  ;;  %v13347_v59 = vsel %vm239_vm3, %v3542_v52, %v3541_v53  ;;  %v4247_v60 = vrot.slane %v13227_v4, 4  ;;  %v4953_v63 = vrot.slane %v13336_v56, 6  ;;  %v13454_v53 = vld [vmem:[%s14781_s1 + $0x8] sm:$0xff] }
  0x1e   : > { %805 = vrot.lane.b32.xlu0 %v13282_v30, %s13156_s22  ;;  %885 = vrot.lane.b32.xlu1 %v13282_v30, %s13157_s25  ;;  %v4246_v61 = vsel %vm236_vm2, %v4245_v54, %v4244_v55  ;;  %v4952_v1 = vsel %vm233_vm1, %v4951_v57, %v13344_v58  ;;  %v4955_v3 = vrot.slane %v13352_v62, 5  ;;  %v5655_v6 = vrot.slane %v13344_v58, 1  ;;  %v13469_v57 = vld [vmem:[%s14781_s1 + $0x10] sm:$0xff] }
  0x1f   : > { %v13362_v2 = vsel %vm239_vm3, %v4247_v60, %v4246_v61  ;;  %v4954_v4 = vsel %vm236_vm2, %v4953_v63, %v4952_v1  ;;  %v5657_v7 = vrot.slane %v13336_v56, 7  ;;  %v5659_v9 = vrot.slane %v13352_v62, 6  ;;  %v13474_v63 = vld [vmem:[%s14781_s1 + $0x28] sm:$0xff]  ;;  %v13487_v1 = vld [vmem:[%s14781_s1 + $0x20] sm:$0xff] }
  0x20   : > { %v13371_v5 = vsel %vm239_vm3, %v4955_v3, %v4954_v4  ;;  %v5656_v8 = vsel %vm233_vm1, %v13326_v50, %v5655_v6  ;;  %v6359_v12 = vrot.slane %v13344_v58, 2  ;;  %v6360_v13 = vrot.slane %v13326_v50, 1  ;;  %v13495_v4 = vld [vmem:[%s14781_s1 + $0x38] sm:$0xff]  ;;  %v13509_v6 = vld [vmem:[%s14781_s1 + $0x30] sm:$0xff] }
  0x21   : > { %v5658_v10 = vsel %vm236_vm2, %v5657_v7, %v5656_v8  ;;  %v6363_v14 = vrot.slane %v13352_v62, 7  ;;  %v7058_v19 = vrot.slane %v13344_v58, 3  ;;  %v7059_v20 = vrot.slane %v13326_v50, 2  ;;  %v13527_v8 = vld [vmem:[%s14781_s1 + $0x40] sm:$0xff] }
  0x22   : > { %1585 = vrot.lane.b32.xlu1 %v13300_v36, %s13157_s25  ;;  %1506 = vrot.lane.b32.xlu0 %v13300_v36, %s13156_s22  ;;  %v13384_v11 = vsel %vm239_vm3, %v5659_v9, %v5658_v10  ;;  %v6361_v15 = vsel %vm233_vm1, %v6360_v13, %v6359_v12  ;;  %v7061_v21 = vrot.slane %v13336_v56, 1  ;;  %v7761_v25 = vrot.slane %v13344_v58, 4 }
  0x23   : > { %v6362_v16 = vsel %vm236_vm2, %v13336_v56, %v6361_v15  ;;  %v7060_v23 = vsel %vm233_vm1, %v7059_v20, %v7058_v19  ;;  %v7762_v26 = vrot.slane %v13326_v50, 3  ;;  %v7764_v27 = vrot.slane %v13336_v56, 2 }
  0x24   : > { %v13397_v17 = vsel %vm239_vm3, %v6363_v14, %v6362_v16  ;;  %v7062_v24 = vsel %vm236_vm2, %v7061_v21, %v7060_v23  ;;  %v7766_v31 = vrot.slane %v13352_v62, 1  ;;  %v8465_v35 = vrot.slane %v13344_v58, 5 }
  0x25   : > { %v13413_v28 = vsel %vm239_vm3, %v13352_v62, %v7062_v24  ;;  %v7763_v32 = vsel %vm233_vm1, %v7762_v26, %v7761_v25  ;;  %v8466_v37 = vrot.slane %v13326_v50, 4  ;;  %v8468_v38 = vrot.slane %v13336_v56, 3  ;;  %v218_v25 = vld [vmem:[%s13215_s19 + $0x28] sm:$0x3] }
  0x26   : > { %2211 = vrot.lane.b32.xlu0 %v13313_v43, %s13156_s22  ;;  %2290 = vrot.lane.b32.xlu1 %v13313_v43, %s13157_s25  ;;  %v7765_v33 = vsel %vm236_vm2, %v7764_v27, %v7763_v32  ;;  %v8470_v39 = vrot.slane %v13352_v62, 2  ;;  %v9169_v44 = vrot.slane %v13344_v58, 6  ;;  %v9170_v45 = vrot.slane %v13326_v50, 5  ;;  %v215_v32 = vld [vmem:[%s13215_s19 + $0x10] sm:$0x3] }
  0x27   : > { %v13423_v34 = vsel %vm239_vm3, %v7766_v31, %v7765_v33  ;;  %v8467_v40 = vsel %vm233_vm1, %v8466_v37, %v8465_v35  ;;  %v9172_v46 = vrot.slane %v13336_v56, 4  ;;  %v9174_v47 = vrot.slane %v13352_v62, 3  ;;  %v224_v33 = vld [vmem:[%s13215_s19 + $0x58] sm:$0x3] }
  0x28   : > { %v8469_v41 = vsel %vm236_vm2, %v8468_v38, %v8467_v40  ;;  %v9171_v48 = vsel %vm233_vm1, %v9170_v45, %v9169_v44  ;;  %v9873_v21 = vrot.slane %v13344_v58, 7  ;;  %v9874_v23 = vrot.slane %v13326_v50, 6 }
  0x29   : > { %v13436_v42 = vsel %vm239_vm3, %v8470_v39, %v8469_v41  ;;  %v9173_v49 = vsel %vm236_vm2, %v9172_v46, %v9171_v48  ;;  %v9876_v50 = vrot.slane %v13336_v56, 5  ;;  %v9878_v56 = vrot.slane %v13352_v62, 4  ;;  %v221_v62 = vld [vmem:[%s13215_s19 + $0x40] sm:$0x3] }
  0x2a   : > { %2916 = vrot.lane.b32.xlu0 %v13329_v51, %s13156_s22  ;;  %2995 = vrot.lane.b32.xlu1 %v13329_v51, %s13157_s25  ;;  %v13449_v52 = vsel %vm239_vm3, %v9174_v47, %v9173_v49  ;;  %v9875_v24 = vsel %vm233_vm1, %v9874_v23, %v9873_v21  ;;  %v10581_v27 = vrot.slane %v218_v25, 7  ;;  %v10583_v35 = vrot.slane %v221_v62, 6 }
  0x2b   : > { %v9877_v26 = vsel %vm236_vm2, %v9876_v50, %v9875_v24  ;;  %v11284_v40 = vrot.slane %v215_v32, 1  ;;  %v11286_v44 = vrot.slane %v221_v62, 7  ;;  %v11288_v47 = vrot.slane %v224_v33, 6 }
  0x2c   : > { %v13904_v31 = vsel %vm239_vm3, %v9878_v56, %v9877_v26  ;;  %v10582_v37 = vsel %vm233_vm1, %v10581_v27, %v215_v32 }
  0x2d   : > { %v10584_v39 = vsel %vm236_vm2, %v10583_v35, %v10582_v37  ;;  %v11285_v46 = vsel %vm233_vm1, %v218_v25, %v11284_v40 }
  0x2e   : > { %3621 = vrot.lane.b32.xlu0 %v13347_v59, %s13156_s22  ;;  %3700 = vrot.lane.b32.xlu1 %v13347_v59, %s13157_s25  ;;  %v11287_v48 = vsel %vm236_vm2, %v11286_v44, %v11285_v46 }
  0x2f   : > { %v13981_v49 = vsel %vm239_vm3, %v11288_v47, %v11287_v48 }
  0x32   : > { %4326 = vrot.lane.b32.xlu0 %v13362_v2, %s13156_s22  ;;  %4405 = vrot.lane.b32.xlu1 %v13362_v2, %s13157_s25 }
  0x36   : > { %5034 = vrot.lane.b32.xlu0 %v13371_v5, %s13156_s22  ;;  %5113 = vrot.lane.b32.xlu1 %v13371_v5, %s13157_s25 }
  0x3a   : > { %5738 = vrot.lane.b32.xlu1 %v13384_v11, %s13156_s22  ;;  %7141 = vrot.lane.b32.xlu0 %v13413_v28, %s13156_s22 }
  0x3e   : > { %5817 = vrot.lane.b32.xlu1 %v13384_v11, %s13157_s25  ;;  %7845 = vrot.lane.b32.xlu0 %v13423_v34, %s13156_s22 }
  0x42   : > { %6442 = vrot.lane.b32.xlu1 %v13397_v17, %s13156_s22  ;;  %7924 = vrot.lane.b32.xlu0 %v13423_v34, %s13157_s25 }
  0x46   : > { %6521 = vrot.lane.b32.xlu1 %v13397_v17, %s13157_s25  ;;  %9253 = vrot.lane.b32.xlu0 %v13449_v52, %s13156_s22 }
  0x4a   : > { %7220 = vrot.lane.b32.xlu1 %v13413_v28, %s13157_s25  ;;  %9957 = vrot.lane.b32.xlu0 %v13904_v31, %s13156_s22 }
  0x4e   : > { %8549 = vrot.lane.b32.xlu1 %v13436_v42, %s13156_s22  ;;  %10036 = vrot.lane.b32.xlu0 %v13904_v31, %s13157_s25 }
  0x52   : > { %8628 = vrot.lane.b32.xlu1 %v13436_v42, %s13157_s25 }
  0x56   : > { %9332 = vrot.lane.b32.xlu1 %v13449_v52, %s13157_s25 }
  0x88   : > { %v562_v54 = vpop.permute.xlu1 %561  ;;  %v242_v55 = vpop.permute.xlu0 %241 }
  0x89   : > { %12375 = vmatpush3.msk.msra.mxu0 %vm247_vm4, %v242_v55  ;;  %v14087_v55 = vld [vmem:[%s14781_s1 + $0x18] sm:$0xff] }
  0x8a   : > { %12377 = vmatmul.mubr.msk.f32.vlgmr.msra.gmra.mxu0 %vm243_vm5, %v13454_v53  ;;  %12384 = vmatprep.subr.mxu0 %v13154_v0 }
  0x8b   : > { %12386 = vmatprep.mubr.msk.f32.mxu0 %vm13155_vm0, %v13154_v0 }
  0x8c   : > { %v642_v60 = vpop.permute.xlu1 %641  ;;  %v398_v61 = vpop.permute.xlu0 %397 }
  0x8d   : > { %12385 = vmatpush3.msk.msra.mxu0 %vm247_vm4, %v398_v61  ;;  %12400 = vmatpush3.msk.msra.mxu1 %vm247_vm4, %v642_v60 }
  0x8e   : > { %12387 = vmatmul.mubr.msk.f32.vlgmr.msra.gmra.mxu0 %vm243_vm5, %v13469_v57  ;;  %12394 = vmatprep.subr.mxu0 %v13154_v0 }
  0x8f   : > { %12402 = vmatmul.mubr.msk.f32.vlgmr.msra.gmra.mxu1 %vm243_vm5, %v13474_v63  ;;  %12395 = vmatpush3.msk.msra.mxu0 %vm247_vm4, %v562_v54 }
  0x90   : > { %v806_v3 = vpop.permute.xlu0 %805  ;;  %12409 = vmatprep.subr.mxu1 %v13154_v0  ;;  %12396 = vmatprep.mubr.msk.f32.mxu0 %vm13155_vm0, %v13154_v0  ;;  %v886_v7 = vpop.permute.xlu1 %885 }
  0x91   : > { %12410 = vmatpush3.msk.msra.mxu1 %vm247_vm4, %v806_v3  ;;  %12411 = vmatprep.mubr.msk.f32.mxu1 %vm13155_vm0, %v13154_v0 }
  0x92   : > { %12397 = vmatmul.mubr.msk.f32.vlgmr.msra.gmra.mxu0 %vm243_vm5, %v13487_v1  ;;  %12419 = vmatprep.subr.mxu1 %v13154_v0 }
  0x93   : > { %12412 = vmatmul.mubr.msk.f32.vlgmr.msra.gmra.mxu1 %vm243_vm5, %v13495_v4  ;;  %12404 = vmatprep.subr.mxu0 %v13154_v0 }
  0x94   : > { %12420 = vmatpush3.msk.msra.mxu1 %vm247_vm4, %v562_v54  ;;  %12405 = vmatpush3.msk.msra.mxu0 %vm247_vm4, %v13282_v30  ;;  %v1507_v9 = vpop.permute.xlu0 %1506  ;;  %v14072_v54 = vld [vmem:[%s14781_s1 + $0x10] sm:$0xff] }
  0x95   : > { %12406 = vmatprep.mubr.msk.f32.mxu0 %vm13155_vm0, %v13154_v0  ;;  %12421 = vmatprep.mubr.msk.f32.mxu1 %vm13155_vm0, %v13154_v0 }
  0x96   : > { %12429 = vmatprep.subr.mxu1 %v13154_v0  ;;  %12407 = vmatmul.mubr.msk.f32.vlgmr.msra.gmra.mxu0 %vm243_vm5, %v13509_v6 }
  0x97   : > { %12422 = vmatmul.mubr.msk.f32.vlgmr.msra.gmra.mxu1 %vm243_vm5, %v13454_v53  ;;  %12414 = vmatprep.subr.mxu0 %v13154_v0 }
  0x98   : > { %12430 = vmatpush3.msk.msra.mxu1 %vm247_vm4, %v642_v60  ;;  %12415 = vmatpush3.msk.msra.mxu0 %vm247_vm4, %v886_v7  ;;  %v14120_v60 = vld [vmem:[%s14781_s1 + $0x30] sm:$0xff] }
  0x99   : > { %12416 = vmatprep.mubr.msk.f32.mxu0 %vm13155_vm0, %v13154_v0  ;;  %12431 = vmatprep.mubr.msk.f32.mxu1 %vm13155_vm0, %v13154_v0 }
  0x9a   : > { %12439 = vmatprep.subr.mxu1 %v13154_v0  ;;  %12417 = vmatmul.mubr.msk.f32.vlgmr.msra.gmra.mxu0 %vm243_vm5, %v13527_v8 }
  0x9b   : > { %12432 = vmatmul.mubr.msk.f32.vlgmr.msra.gmra.mxu1 %vm243_vm5, %v13469_v57  ;;  %12424 = vmatprep.subr.mxu0 %v13154_v0 }
  0x9c   : > { %12440 = vmatpush3.msk.msra.mxu1 %vm247_vm4, %v806_v3  ;;  %12425 = vmatpush3.msk.msra.mxu0 %vm247_vm4, %v13245_v18  ;;  %v1586_v18 = vpop.permute.xlu1 %1585 }
  0x9d   : > { %12426 = vmatprep.mubr.msk.f32.mxu0 %vm13155_vm0, %v13154_v0  ;;  %12441 = vmatprep.mubr.msk.f32.mxu1 %vm13155_vm0, %v13154_v0 }
  0x9e   : > { %12427 = vmatmul.mubr.msk.f32.vlgmr.msra.gmra.mxu0 %vm243_vm5, %v13253_v22  ;;  %12434 = vmatprep.subr.mxu0 %v13154_v0 }
  0x9f   : > { %12442 = vmatmul.mubr.msk.f32.vlgmr.msra.gmra.mxu1 %vm243_vm5, %v13487_v1  ;;  %12435 = vmatpush3.msk.msra.mxu0 %vm247_vm4, %v13282_v30 }
  0xa0   : > { %12449 = vmatprep.subr.mxu1 %v13154_v0  ;;  %12436 = vmatprep.mubr.msk.f32.mxu0 %vm13155_vm0, %v13154_v0  ;;  %v2291_v10 = vpop.permute.xlu1 %2290 }
  0xa1   : > { %12444 = vmatprep.subr.mxu0 %v13154_v0  ;;  %12450 = vmatpush3.msk.msra.mxu1 %vm247_vm4, %v13300_v36 }
  0xa2   : > { %12451 = vmatprep.mubr.msk.f32.mxu1 %vm13155_vm0, %v13154_v0  ;;  %12437 = vmatmul.mubr.msk.f32.vlgmr.msra.gmra.mxu0 %vm243_vm5, %v13276_v29 }
  0xa3   : > { %12445 = vmatpush3.msk.msra.mxu0 %vm247_vm4, %v886_v7  ;;  %12452 = vmatmul.mubr.msk.f32.vlgmr.msra.gmra.mxu1 %vm243_vm5, %v13509_v6 }
  0xa4   : > { %12459 = vmatprep.subr.mxu1 %v13154_v0  ;;  %12446 = vmatprep.mubr.msk.f32.mxu0 %vm13155_vm0, %v13154_v0 }
  0xa5   : > { %12460 = vmatpush3.msk.msra.mxu1 %vm247_vm4, %v1586_v18  ;;  %12461 = vmatprep.mubr.msk.f32.mxu1 %vm13155_vm0, %v13154_v0 }
  0xa6   : > { %12447 = vmatmul.mubr.msk.f32.vlgmr.msra.gmra.mxu0 %vm243_vm5, %v13474_v63  ;;  %12454 = vmatprep.subr.mxu0 %v13154_v0 }
  0xa7   : > { %12462 = vmatmul.mubr.msk.f32.vlgmr.msra.gmra.mxu1 %vm243_vm5, %v13527_v8  ;;  %12455 = vmatpush3.msk.msra.mxu0 %vm247_vm4, %v1507_v9 }
  0xa8   : > { %12469 = vmatprep.subr.mxu1 %v13154_v0  ;;  %12456 = vmatprep.mubr.msk.f32.mxu0 %vm13155_vm0, %v13154_v0 }
  0xa9   : > { %12464 = vmatprep.subr.mxu0 %v13154_v0  ;;  %12470 = vmatpush3.msk.msra.mxu1 %vm247_vm4, %v13282_v30  ;;  %v2212_v30 = vpop.permute.xlu0 %2211 }
  0xaa   : > { %12471 = vmatprep.mubr.msk.f32.mxu1 %vm13155_vm0, %v13154_v0  ;;  %12457 = vmatmul.mubr.msk.f32.vlgmr.msra.gmra.mxu0 %vm243_vm5, %v13495_v4 }
  0xab   : > { %12465 = vmatpush3.msk.msra.mxu0 %vm247_vm4, %v806_v3  ;;  %12472 = vmatmul.mubr.msk.f32.vlgmr.msra.gmra.mxu1 %vm243_vm5, %v13253_v22  ;;  %v14146_v3 = vld [vmem:[%s14781_s1 + $0x40] sm:$0xff] }
  0xac   : > { %12479 = vmatprep.subr.mxu1 %v13154_v0  ;;  %12466 = vmatprep.mubr.msk.f32.mxu0 %vm13155_vm0, %v13154_v0 }
  0xad   : > { %12474 = vmatprep.subr.mxu0 %v13154_v0  ;;  %12480 = vmatpush3.msk.msra.mxu1 %vm247_vm4, %v13300_v36  ;;  %v2917_v12 = vpop.permute.xlu0 %2916 }
  0xae   : > { %12481 = vmatprep.mubr.msk.f32.mxu1 %vm13155_vm0, %v13154_v0  ;;  %12467 = vmatmul.mubr.msk.f32.vlgmr.msra.gmra.mxu0 %vm243_vm5, %v13454_v53 }
  0xaf   : > { %12475 = vmatpush3.msk.msra.mxu0 %vm247_vm4, %v886_v7  ;;  %12482 = vmatmul.mubr.msk.f32.vlgmr.msra.gmra.mxu1 %vm243_vm5, %v13276_v29 }
  0xb0   : > { %12489 = vmatprep.subr.mxu1 %v13154_v0  ;;  %12476 = vmatprep.mubr.msk.f32.mxu0 %vm13155_vm0, %v13154_v0 }
  0xb1   : > { %12490 = vmatpush3.msk.msra.mxu1 %vm247_vm4, %v1586_v18  ;;  %12484 = vmatprep.subr.mxu0 %v13154_v0 }
  0xb2   : > { %12491 = vmatprep.mubr.msk.f32.mxu1 %vm13155_vm0, %v13154_v0  ;;  %12477 = vmatmul.mubr.msk.f32.vlgmr.msra.gmra.mxu0 %vm243_vm5, %v13469_v57 }
  0xb3   : > { %12485 = vmatpush3.msk.msra.mxu0 %vm247_vm4, %v1507_v9  ;;  %12492 = vmatmul.mubr.msk.f32.vlgmr.msra.gmra.mxu1 %vm243_vm5, %v13474_v63 }
  0xb4   : > { %12499 = vmatprep.subr.mxu1 %v13154_v0  ;;  %12486 = vmatprep.mubr.msk.f32.mxu0 %vm13155_vm0, %v13154_v0 }
  0xb5   : > { %12500 = vmatpush3.msk.msra.mxu1 %vm247_vm4, %v2212_v30  ;;  %12501 = vmatprep.mubr.msk.f32.mxu1 %vm13155_vm0, %v13154_v0 }
  0xb6   : > { %12509 = vmatprep.subr.mxu1 %v13154_v0  ;;  %12487 = vmatmul.mubr.msk.f32.vlgmr.msra.gmra.mxu0 %vm243_vm5, %v13487_v1 }
  0xb7   : > { %12502 = vmatmul.mubr.msk.f32.vlgmr.msra.gmra.mxu1 %vm243_vm5, %v13495_v4  ;;  %12494 = vmatprep.subr.mxu0 %v13154_v0 }
  0xb8   : > { %12510 = vmatpush3.msk.msra.mxu1 %vm247_vm4, %v1507_v9  ;;  %12495 = vmatpush3.msk.msra.mxu0 %vm247_vm4, %v13313_v43 }
  0xb9   : > { %12496 = vmatprep.mubr.msk.f32.mxu0 %vm13155_vm0, %v13154_v0  ;;  %12511 = vmatprep.mubr.msk.f32.mxu1 %vm13155_vm0, %v13154_v0 }
  0xba   : > { %12519 = vmatprep.subr.mxu1 %v13154_v0  ;;  %12497 = vmatmul.mubr.msk.f32.vlgmr.msra.gmra.mxu0 %vm243_vm5, %v13509_v6 }
  0xbb   : > { %12512 = vmatmul.mubr.msk.f32.vlgmr.msra.gmra.mxu1 %vm243_vm5, %v13454_v53  ;;  %12504 = vmatprep.subr.mxu0 %v13154_v0 }
  0xbc   : > { %12520 = vmatpush3.msk.msra.mxu1 %vm247_vm4, %v1586_v18  ;;  %12505 = vmatpush3.msk.msra.mxu0 %vm247_vm4, %v2291_v10 }
  0xbd   : > { %12506 = vmatprep.mubr.msk.f32.mxu0 %vm13155_vm0, %v13154_v0  ;;  %12514 = vmatprep.subr.mxu0 %v13154_v0 }
  0xbe   : > { %12507 = vmatmul.mubr.msk.f32.vlgmr.msra.gmra.mxu0 %vm243_vm5, %v13527_v8  ;;  %12521 = vmatprep.mubr.msk.f32.mxu1 %vm13155_vm0, %v13154_v0 }
  0xbf   : > { %12515 = vmatpush3.msk.msra.mxu0 %vm247_vm4, %v13300_v36  ;;  %12516 = vmatprep.mubr.msk.f32.mxu0 %vm13155_vm0, %v13154_v0  ;;  %v2996_v36 = vpop.permute.xlu1 %2995 }
  0xc0   : > { %12522 = vmatmul.mubr.msk.f32.vlgmr.msra.gmra.mxu1 %vm243_vm5, %v13469_v57  ;;  %12524 = vmatprep.subr.mxu0 %v13154_v0 }
  0xc1   : > { %12529 = vmatprep.subr.mxu1 %v13154_v0  ;;  %12531 = vmatprep.mubr.msk.f32.mxu1 %vm13155_vm0, %v13154_v0 }
  0xc2   : > { %12517 = vmatmul.mubr.msk.f32.vlgmr.msra.gmra.mxu0 %vm243_vm5, %v13253_v22  ;;  %12530 = vmatpush3.msk.msra.mxu1 %vm247_vm4, %v2212_v30 }
  0xc3   : > { %12525 = vmatpush3.msk.msra.mxu0 %vm247_vm4, %v13313_v43  ;;  %12526 = vmatprep.mubr.msk.f32.mxu0 %vm13155_vm0, %v13154_v0  ;;  %v3701_v15 = vpop.permute.xlu1 %3700 }
  0xc4   : > { %12532 = vmatmul.mubr.msk.f32.vlgmr.msra.gmra.mxu1 %vm243_vm5, %v13487_v1  ;;  %12534 = vmatprep.subr.mxu0 %v13154_v0 }
  0xc5   : > { %12539 = vmatprep.subr.mxu1 %v13154_v0  ;;  %12541 = vmatprep.mubr.msk.f32.mxu1 %vm13155_vm0, %v13154_v0 }
  0xc6   : > { %12527 = vmatmul.mubr.msk.f32.vlgmr.msra.gmra.mxu0 %vm243_vm5, %v13276_v29  ;;  %12540 = vmatpush3.msk.msra.mxu1 %vm247_vm4, %v13329_v51 }
  0xc7   : > { %12535 = vmatpush3.msk.msra.mxu0 %vm247_vm4, %v2291_v10  ;;  %12536 = vmatprep.mubr.msk.f32.mxu0 %vm13155_vm0, %v13154_v0 }
  0xc8   : > { %12544 = vmatprep.subr.mxu0 %v13154_v0  ;;  %12542 = vmatmul.mubr.msk.f32.vlgmr.msra.gmra.mxu1 %vm243_vm5, %v13509_v6 }
  0xc9   : > { %12549 = vmatprep.subr.mxu1 %v13154_v0  ;;  %12551 = vmatprep.mubr.msk.f32.mxu1 %vm13155_vm0, %v13154_v0 }
  0xca   : > { %12537 = vmatmul.mubr.msk.f32.vlgmr.msra.gmra.mxu0 %vm243_vm5, %v13474_v63  ;;  %12550 = vmatpush3.msk.msra.mxu1 %vm247_vm4, %v2996_v36 }
  0xcb   : > { %12545 = vmatpush3.msk.msra.mxu0 %vm247_vm4, %v2917_v12  ;;  %12546 = vmatprep.mubr.msk.f32.mxu0 %vm13155_vm0, %v13154_v0 }
  0xcc   : > { %12552 = vmatmul.mubr.msk.f32.vlgmr.msra.gmra.mxu1 %vm243_vm5, %v13527_v8  ;;  %12554 = vmatprep.subr.mxu0 %v13154_v0 }
  0xcd   : > { %12559 = vmatprep.subr.mxu1 %v13154_v0  ;;  %12561 = vmatprep.mubr.msk.f32.mxu1 %vm13155_vm0, %v13154_v0 }
  0xce   : > { %12547 = vmatmul.mubr.msk.f32.vlgmr.msra.gmra.mxu0 %vm243_vm5, %v13495_v4  ;;  %12560 = vmatpush3.msk.msra.mxu1 %vm247_vm4, %v13313_v43  ;;  %v3622_v43 = vpop.permute.xlu0 %3621 }
  0xcf   : > { %12555 = vmatpush3.msk.msra.mxu0 %vm247_vm4, %v2212_v30  ;;  %12556 = vmatprep.mubr.msk.f32.mxu0 %vm13155_vm0, %v13154_v0 }
  0xd0   : > { %12562 = vmatmul.mubr.msk.f32.vlgmr.msra.gmra.mxu1 %vm243_vm5, %v13253_v22  ;;  %12564 = vmatprep.subr.mxu0 %v13154_v0 }
  0xd1   : > { %12569 = vmatprep.subr.mxu1 %v13154_v0  ;;  %12571 = vmatprep.mubr.msk.f32.mxu1 %vm13155_vm0, %v13154_v0 }
  0xd2   : > { %12557 = vmatmul.mubr.msk.f32.vlgmr.msra.gmra.mxu0 %vm243_vm5, %v13454_v53  ;;  %12570 = vmatpush3.msk.msra.mxu1 %vm247_vm4, %v13329_v51  ;;  %v4327_v20 = vpop.permute.xlu0 %4326 }
  0xd3   : > { %12565 = vmatpush3.msk.msra.mxu0 %vm247_vm4, %v2291_v10  ;;  %12566 = vmatprep.mubr.msk.f32.mxu0 %vm13155_vm0, %v13154_v0 }
  0xd4   : > { %12572 = vmatmul.mubr.msk.f32.vlgmr.msra.gmra.mxu1 %vm243_vm5, %v13276_v29  ;;  %12574 = vmatprep.subr.mxu0 %v13154_v0 }
  0xd5   : > { %12579 = vmatprep.subr.mxu1 %v13154_v0  ;;  %12581 = vmatprep.mubr.msk.f32.mxu1 %vm13155_vm0, %v13154_v0 }
  0xd6   : > { %12567 = vmatmul.mubr.msk.f32.vlgmr.msra.gmra.mxu0 %vm243_vm5, %v13469_v57  ;;  %12580 = vmatpush3.msk.msra.mxu1 %vm247_vm4, %v2996_v36 }
  0xd7   : > { %12575 = vmatpush3.msk.msra.mxu0 %vm247_vm4, %v2917_v12  ;;  %12576 = vmatprep.mubr.msk.f32.mxu0 %vm13155_vm0, %v13154_v0 }
  0xd8   : > { %12582 = vmatmul.mubr.msk.f32.vlgmr.msra.gmra.mxu1 %vm243_vm5, %v13474_v63  ;;  %12584 = vmatprep.subr.mxu0 %v13154_v0  ;;  %v13735_v13 = vpop.f32.mrf.mxu1 }
  0xd9   : > { %12589 = vmatprep.subr.mxu1 %v13154_v0  ;;  %12591 = vmatprep.mubr.msk.f32.mxu1 %vm13155_vm0, %v13154_v0 }
  0xda   : > { %12577 = vmatmul.mubr.msk.f32.vlgmr.msra.gmra.mxu0 %vm243_vm5, %v13487_v1  ;;  %12590 = vmatpush3.msk.msra.mxu1 %vm247_vm4, %v3622_v43  ;;  %v12383_v14 = vpop.f32.mrf.mxu1 }
  0xdb   : > { %12585 = vmatpush3.msk.msra.mxu0 %vm247_vm4, %v13347_v59  ;;  %12586 = vmatprep.mubr.msk.f32.mxu0 %vm13155_vm0, %v13154_v0 }
  0xdc   : > { %12592 = vmatmul.mubr.msk.f32.vlgmr.msra.gmra.mxu1 %vm243_vm5, %v13495_v4  ;;  %12594 = vmatprep.subr.mxu0 %v13154_v0  ;;  %v13750_v16 = vpop.f32.mrf.mxu1 }
  0xdd   : > { %12599 = vmatprep.subr.mxu1 %v13154_v0  ;;  %12601 = vmatprep.mubr.msk.f32.mxu1 %vm13155_vm0, %v13154_v0 }
  0xde   : > { %12587 = vmatmul.mubr.msk.f32.vlgmr.msra.gmra.mxu0 %vm243_vm5, %v13509_v6  ;;  %12600 = vmatpush3.msk.msra.mxu1 %vm247_vm4, %v2917_v12  ;;  %v12393_v19 = vpop.f32.mrf.mxu1 }
  0xdf   : > { %12595 = vmatpush3.msk.msra.mxu0 %vm247_vm4, %v3701_v15  ;;  %12596 = vmatprep.mubr.msk.f32.mxu0 %vm13155_vm0, %v13154_v0 }
  0xe0   : > { %12602 = vmatmul.mubr.msk.f32.vlgmr.msra.gmra.mxu1 %vm243_vm5, %v13454_v53  ;;  %12604 = vmatprep.subr.mxu0 %v13154_v0 }
  0xe1   : > { %12609 = vmatprep.subr.mxu1 %v13154_v0  ;;  %12611 = vmatprep.mubr.msk.f32.mxu1 %vm13155_vm0, %v13154_v0 }
  0xe2   : > { %12597 = vmatmul.mubr.msk.f32.vlgmr.msra.gmra.mxu0 %vm243_vm5, %v13527_v8  ;;  %12610 = vmatpush3.msk.msra.mxu1 %vm247_vm4, %v2996_v36 }
  0xe3   : > { %12605 = vmatpush3.msk.msra.mxu0 %vm247_vm4, %v13329_v51  ;;  %12606 = vmatprep.mubr.msk.f32.mxu0 %vm13155_vm0, %v13154_v0  ;;  %v13800_v51 = vpop.permute.xlu1 %4405 }
  0xe4   : > { %12612 = vmatmul.mubr.msk.f32.vlgmr.msra.gmra.mxu1 %vm243_vm5, %v13469_v57  ;;  %12614 = vmatprep.subr.mxu0 %v13154_v0 }
  0xe5   : > { %12619 = vmatprep.subr.mxu1 %v13154_v0  ;;  %12621 = vmatprep.mubr.msk.f32.mxu1 %vm13155_vm0, %v13154_v0 }
  0xe6   : > { %12607 = vmatmul.mubr.msk.f32.vlgmr.msra.gmra.mxu0 %vm243_vm5, %v13253_v22  ;;  %12620 = vmatpush3.msk.msra.mxu1 %vm247_vm4, %v3622_v43 }
  0xe7   : > { %12615 = vmatpush3.msk.msra.mxu0 %vm247_vm4, %v13347_v59  ;;  %12616 = vmatprep.mubr.msk.f32.mxu0 %vm13155_vm0, %v13154_v0  ;;  %v13873_v58 = vpop.permute.xlu1 %5113 }
  0xe8   : > { %12622 = vmatmul.mubr.msk.f32.vlgmr.msra.gmra.mxu1 %vm243_vm5, %v13487_v1  ;;  %12624 = vmatprep.subr.mxu0 %v13154_v0 }
  0xe9   : > { %12629 = vmatprep.subr.mxu1 %v13154_v0  ;;  %12631 = vmatprep.mubr.msk.f32.mxu1 %vm13155_vm0, %v13154_v0 }
  0xea   : > { %12617 = vmatmul.mubr.msk.f32.vlgmr.msra.gmra.mxu0 %vm243_vm5, %v13276_v29  ;;  %12630 = vmatpush3.msk.msra.mxu1 %vm247_vm4, %v13362_v2 }
  0xeb   : > { %12625 = vmatpush3.msk.msra.mxu0 %vm247_vm4, %v3701_v15  ;;  %12626 = vmatprep.mubr.msk.f32.mxu0 %vm13155_vm0, %v13154_v0  ;;  %v13930_v38 = vpop.permute.xlu1 %5738 }
  0xec   : > { %12634 = vmatprep.subr.mxu0 %v13154_v0  ;;  %12632 = vmatmul.mubr.msk.f32.vlgmr.msra.gmra.mxu1 %vm243_vm5, %v13509_v6 }
  0xed   : > { %12639 = vmatprep.subr.mxu1 %v13154_v0  ;;  %12641 = vmatprep.mubr.msk.f32.mxu1 %vm13155_vm0, %v13154_v0 }
  0xee   : > { %12627 = vmatmul.mubr.msk.f32.vlgmr.msra.gmra.mxu0 %vm243_vm5, %v13474_v63  ;;  %12640 = vmatpush3.msk.msra.mxu1 %vm247_vm4, %v13800_v51 }
  0xef   : > { %12635 = vmatpush3.msk.msra.mxu0 %vm247_vm4, %v4327_v20  ;;  %12636 = vmatprep.mubr.msk.f32.mxu0 %vm13155_vm0, %v13154_v0  ;;  %v5818_v45 = vpop.permute.xlu1 %5817 }
  0xf0   : > { %12642 = vmatmul.mubr.msk.f32.vlgmr.msra.gmra.mxu1 %vm243_vm5, %v13527_v8  ;;  %12644 = vmatprep.subr.mxu0 %v13154_v0 }
  0xf1   : > { %12649 = vmatprep.subr.mxu1 %v13154_v0  ;;  %12651 = vmatprep.mubr.msk.f32.mxu1 %vm13155_vm0, %v13154_v0 }
  0xf2   : > { %12637 = vmatmul.mubr.msk.f32.vlgmr.msra.gmra.mxu0 %vm243_vm5, %v13495_v4  ;;  %12650 = vmatpush3.msk.msra.mxu1 %vm247_vm4, %v13347_v59  ;;  %v13854_v59 = vpop.permute.xlu0 %5034 }
  0xf3   : > { %12645 = vmatpush3.msk.msra.mxu0 %vm247_vm4, %v3622_v43  ;;  %12646 = vmatprep.mubr.msk.f32.mxu0 %vm13155_vm0, %v13154_v0 }
  0xf4   : > { %12652 = vmatmul.mubr.msk.f32.vlgmr.msra.gmra.mxu1 %vm243_vm5, %v13253_v22  ;;  %12654 = vmatprep.subr.mxu0 %v13154_v0 }
  0xf5   : > { %12659 = vmatprep.subr.mxu1 %v13154_v0  ;;  %12661 = vmatprep.mubr.msk.f32.mxu1 %vm13155_vm0, %v13154_v0 }
  0xf6   : > { %12647 = vmatmul.mubr.msk.f32.vlgmr.msra.gmra.mxu0 %vm243_vm5, %v13454_v53  ;;  %12660 = vmatpush3.msk.msra.mxu1 %vm247_vm4, %v13362_v2 }
  0xf7   : > { %12655 = vmatpush3.msk.msra.mxu0 %vm247_vm4, %v3701_v15  ;;  %12656 = vmatprep.mubr.msk.f32.mxu0 %vm13155_vm0, %v13154_v0 }
  0xf8   : > { %12662 = vmatmul.mubr.msk.f32.vlgmr.msra.gmra.mxu1 %vm243_vm5, %v13276_v29  ;;  %12664 = vmatprep.subr.mxu0 %v13154_v0 }
  0xf9   : > { %12669 = vmatprep.subr.mxu1 %v13154_v0  ;;  %12671 = vmatprep.mubr.msk.f32.mxu1 %vm13155_vm0, %v13154_v0 }
  0xfa   : > { %12657 = vmatmul.mubr.msk.f32.vlgmr.msra.gmra.mxu0 %vm243_vm5, %v13469_v57  ;;  %12670 = vmatpush3.msk.msra.mxu1 %vm247_vm4, %v13800_v51 }
  0xfb   : > { %12665 = vmatpush3.msk.msra.mxu0 %vm247_vm4, %v4327_v20  ;;  %12666 = vmatprep.mubr.msk.f32.mxu0 %vm13155_vm0, %v13154_v0 }
  0xfc   : > { %12672 = vmatmul.mubr.msk.f32.vlgmr.msra.gmra.mxu1 %vm243_vm5, %v13474_v63  ;;  %12674 = vmatprep.subr.mxu0 %v13154_v0 }
  0xfd   : > { %12679 = vmatprep.subr.mxu1 %v13154_v0  ;;  %12681 = vmatprep.mubr.msk.f32.mxu1 %vm13155_vm0, %v13154_v0 }
  0xfe   : > { %12667 = vmatmul.mubr.msk.f32.vlgmr.msra.gmra.mxu0 %vm243_vm5, %v13487_v1  ;;  %12680 = vmatpush3.msk.msra.mxu1 %vm247_vm4, %v13854_v59 }
  0xff   : > { %12675 = vmatpush3.msk.msra.mxu0 %vm247_vm4, %v13371_v5  ;;  %12676 = vmatprep.mubr.msk.f32.mxu0 %vm13155_vm0, %v13154_v0 }
 0x100   : > { %12682 = vmatmul.mubr.msk.f32.vlgmr.msra.gmra.mxu1 %vm243_vm5, %v13495_v4  ;;  %12684 = vmatprep.subr.mxu0 %v13154_v0 }
 0x101   : > { %12689 = vmatprep.subr.mxu1 %v13154_v0  ;;  %12691 = vmatprep.mubr.msk.f32.mxu1 %vm13155_vm0, %v13154_v0 }
 0x102   : > { %12677 = vmatmul.mubr.msk.f32.vlgmr.msra.gmra.mxu0 %vm243_vm5, %v13509_v6  ;;  %12690 = vmatpush3.msk.msra.mxu1 %vm247_vm4, %v4327_v20 }
 0x103   : > { %12685 = vmatpush3.msk.msra.mxu0 %vm247_vm4, %v13873_v58  ;;  %12686 = vmatprep.mubr.msk.f32.mxu0 %vm13155_vm0, %v13154_v0 }
 0x104   : > { %12692 = vmatmul.mubr.msk.f32.vlgmr.msra.gmra.mxu1 %vm243_vm5, %v13454_v53  ;;  %12694 = vmatprep.subr.mxu0 %v13154_v0 }
 0x105   : > { %12699 = vmatprep.subr.mxu1 %v13154_v0  ;;  %12701 = vmatprep.mubr.msk.f32.mxu1 %vm13155_vm0, %v13154_v0 }
 0x106   : > { %12687 = vmatmul.mubr.msk.f32.vlgmr.msra.gmra.mxu0 %vm243_vm5, %v13527_v8  ;;  %12700 = vmatpush3.msk.msra.mxu1 %vm247_vm4, %v13800_v51 }
 0x107   : > { %12695 = vmatpush3.msk.msra.mxu0 %vm247_vm4, %v13362_v2  ;;  %12696 = vmatprep.mubr.msk.f32.mxu0 %vm13155_vm0, %v13154_v0  ;;  %v10585_v2 = vrot.slane %v224_v33, 5 }
 0x108   : > { %12702 = vmatmul.mubr.msk.f32.vlgmr.msra.gmra.mxu1 %vm243_vm5, %v13469_v57  ;;  %12704 = vmatprep.subr.mxu0 %v13154_v0 }
 0x109   : > { %12709 = vmatprep.subr.mxu1 %v13154_v0  ;;  %12711 = vmatprep.mubr.msk.f32.mxu1 %vm13155_vm0, %v13154_v0  ;;  %v13945_v41 = vsel %vm239_vm3, %v10585_v2, %v10584_v39 }
 0x10a   : > { %12697 = vmatmul.mubr.msk.f32.vlgmr.msra.gmra.mxu0 %vm243_vm5, %v13253_v22  ;;  %12710 = vmatpush3.msk.msra.mxu1 %vm247_vm4, %v13854_v59 }
 0x10b   : > { %12705 = vmatpush3.msk.msra.mxu0 %vm247_vm4, %v13371_v5  ;;  %12706 = vmatprep.mubr.msk.f32.mxu0 %vm13155_vm0, %v13154_v0 }
 0x10c   : > { %12714 = vmatprep.subr.mxu0 %v13154_v0  ;;  %12712 = vmatmul.mubr.msk.f32.vlgmr.msra.gmra.mxu1 %vm243_vm5, %v13487_v1 }
 0x10d   : > { %12719 = vmatprep.subr.mxu1 %v13154_v0  ;;  %12721 = vmatprep.mubr.msk.f32.mxu1 %vm13155_vm0, %v13154_v0 }
 0x10e   : > { %12707 = vmatmul.mubr.msk.f32.vlgmr.msra.gmra.mxu0 %vm243_vm5, %v13276_v29  ;;  %12720 = vmatpush3.msk.msra.mxu1 %vm247_vm4, %v13384_v11 }
 0x10f   : > { %12715 = vmatpush3.msk.msra.mxu0 %vm247_vm4, %v13873_v58  ;;  %12716 = vmatprep.mubr.msk.f32.mxu0 %vm13155_vm0, %v13154_v0 }
 0x110   : > { %12722 = vmatmul.mubr.msk.f32.vlgmr.msra.gmra.mxu1 %vm243_vm5, %v13509_v6  ;;  %12724 = vmatprep.subr.mxu0 %v13154_v0 }
 0x111   : > { %10664 = vrot.lane.b32.xlu1 %v13945_v41, %s13156_s22  ;;  %12729 = vmatprep.subr.mxu1 %v13154_v0 }
 0x112   : > { %12717 = vmatmul.mubr.msk.f32.vlgmr.msra.gmra.mxu0 %vm243_vm5, %v13474_v63  ;;  %12731 = vmatprep.mubr.msk.f32.mxu1 %vm13155_vm0, %v13154_v0 }
 0x113   : > { %12725 = vmatpush3.msk.msra.mxu0 %vm247_vm4, %v13930_v38  ;;  %12726 = vmatprep.mubr.msk.f32.mxu0 %vm13155_vm0, %v13154_v0 }
 0x114   : > { %12730 = vmatpush3.msk.msra.mxu1 %vm247_vm4, %v5818_v45  ;;  %12734 = vmatprep.subr.mxu0 %v13154_v0 }
 0x115   : > { %12732 = vmatmul.mubr.msk.f32.vlgmr.msra.gmra.mxu1 %vm243_vm5, %v13527_v8  ;;  %10743 = vrot.lane.b32.xlu1 %v13945_v41, %s13157_s25 }
 0x116   : > { %12727 = vmatmul.mubr.msk.f32.vlgmr.msra.gmra.mxu0 %vm243_vm5, %v13495_v4  ;;  %12739 = vmatprep.subr.mxu1 %v13154_v0 }
 0x117   : > { %12735 = vmatpush3.msk.msra.mxu0 %vm247_vm4, %v13854_v59  ;;  %12736 = vmatprep.mubr.msk.f32.mxu0 %vm13155_vm0, %v13154_v0 }
 0x118   : > { %12740 = vmatpush3.msk.msra.mxu1 %vm247_vm4, %v13371_v5  ;;  %12741 = vmatprep.mubr.msk.f32.mxu1 %vm13155_vm0, %v13154_v0  ;;  %v14049_v5 = vld [vmem:[%s14781_s1 + $0x8] sm:$0xff] }
 0x119   : > { %12742 = vmatmul.mubr.msk.f32.vlgmr.msra.gmra.mxu1 %vm243_vm5, %v13253_v22  ;;  %12744 = vmatprep.subr.mxu0 %v13154_v0  ;;  %v14008_v22 = vpop.permute.xlu1 %6442 }
 0x11a   : > { %12737 = vmatmul.mubr.msk.f32.vlgmr.msra.gmra.mxu0 %vm243_vm5, %v13454_v53  ;;  %11367 = vrot.lane.b32.xlu1 %v13981_v49, %s13156_s22  ;;  %v14064_v53 = vld [vmem:[%s14781_s1] sm:$0xff] }
 0x11b   : > { %12745 = vmatpush3.msk.msra.mxu0 %vm247_vm4, %v13873_v58  ;;  %12746 = vmatprep.mubr.msk.f32.mxu0 %vm13155_vm0, %v13154_v0 }
 0x11c   : > { %12749 = vmatprep.subr.mxu1 %v13154_v0  ;;  %12751 = vmatprep.mubr.msk.f32.mxu1 %vm13155_vm0, %v13154_v0 }
 0x11d   : > { %12750 = vmatpush3.msk.msra.mxu1 %vm247_vm4, %v13384_v11  ;;  %12754 = vmatprep.subr.mxu0 %v13154_v0 }
 0x11e   : > { %12747 = vmatmul.mubr.msk.f32.vlgmr.msra.gmra.mxu0 %vm243_vm5, %v13469_v57  ;;  %12752 = vmatmul.mubr.msk.f32.vlgmr.msra.gmra.mxu1 %vm243_vm5, %v13276_v29  ;;  %v14030_v29 = vpop.permute.xlu1 %6521  ;;  %v14111_v57 = vld [vmem:[%s14781_s1 + $0x28] sm:$0xff] }
 0x11f   : > { %11446 = vrot.lane.b32.xlu1 %v13981_v49, %s13157_s25  ;;  %12755 = vmatpush3.msk.msra.mxu0 %vm247_vm4, %v13930_v38 }
 0x120   : > { %12756 = vmatprep.mubr.msk.f32.mxu0 %vm13155_vm0, %v13154_v0  ;;  %12759 = vmatprep.subr.mxu1 %v13154_v0 }
 0x121   : > { %12760 = vmatpush3.msk.msra.mxu1 %vm247_vm4, %v5818_v45  ;;  %12761 = vmatprep.mubr.msk.f32.mxu1 %vm13155_vm0, %v13154_v0 }
 0x122   : > { %12757 = vmatmul.mubr.msk.f32.vlgmr.msra.gmra.mxu0 %vm243_vm5, %v13487_v1  ;;  %12764 = vmatprep.subr.mxu0 %v13154_v0  ;;  %v14126_v61 = vpop.permute.xlu1 %7220  ;;  %v14137_v1 = vld [vmem:[%s14781_s1 + $0x38] sm:$0xff] }
 0x123   : > { %12762 = vmatmul.mubr.msk.f32.vlgmr.msra.gmra.mxu1 %vm243_vm5, %v13474_v63  ;;  %12765 = vmatpush3.msk.msra.mxu0 %vm247_vm4, %v13397_v17  ;;  %v7142_v63 = vpop.permute.xlu0 %7141 }
 0x124   : > { %12766 = vmatprep.mubr.msk.f32.mxu0 %vm13155_vm0, %v13154_v0  ;;  %12769 = vmatprep.subr.mxu1 %v13154_v0 }
 0x125   : > { %12770 = vmatpush3.msk.msra.mxu1 %vm247_vm4, %v14008_v22  ;;  %12771 = vmatprep.mubr.msk.f32.mxu1 %vm13155_vm0, %v13154_v0 }
 0x126   : > { %12767 = vmatmul.mubr.msk.f32.vlgmr.msra.gmra.mxu0 %vm243_vm5, %v13509_v6  ;;  %12774 = vmatprep.subr.mxu0 %v13154_v0 }
 0x127   : > { %12772 = vmatmul.mubr.msk.f32.vlgmr.msra.gmra.mxu1 %vm243_vm5, %v13495_v4  ;;  %12775 = vmatpush3.msk.msra.mxu0 %vm247_vm4, %v14030_v29 }
 0x128   : > { %12776 = vmatprep.mubr.msk.f32.mxu0 %vm13155_vm0, %v13154_v0  ;;  %12779 = vmatprep.subr.mxu1 %v13154_v0 }
 0x129   : > { %12780 = vmatpush3.msk.msra.mxu1 %vm247_vm4, %v13930_v38  ;;  %12781 = vmatprep.mubr.msk.f32.mxu1 %vm13155_vm0, %v13154_v0 }
 0x12a   : > { %12777 = vmatmul.mubr.msk.f32.vlgmr.msra.gmra.mxu0 %vm243_vm5, %v13527_v8  ;;  %12789 = vmatprep.subr.mxu1 %v13154_v0 }
 0x12b   : > { %12782 = vmatmul.mubr.msk.f32.vlgmr.msra.gmra.mxu1 %vm243_vm5, %v14049_v5  ;;  %12784 = vmatprep.subr.mxu0 %v13154_v0 }
 0x12c   : > { %12790 = vmatpush3.msk.msra.mxu1 %vm247_vm4, %v5818_v45  ;;  %12791 = vmatprep.mubr.msk.f32.mxu1 %vm13155_vm0, %v13154_v0 }
 0x12d   : > { %12785 = vmatpush3.msk.msra.mxu0 %vm247_vm4, %v13384_v11  ;;  %12786 = vmatprep.mubr.msk.f32.mxu0 %vm13155_vm0, %v13154_v0  ;;  %v14096_v11 = vld [vmem:[%s14781_s1 + $0x20] sm:$0xff] }
 0x12e   : > { %12787 = vmatmul.mubr.msk.f32.vlgmr.msra.gmra.mxu0 %vm243_vm5, %v14064_v53  ;;  %12799 = vmatprep.subr.mxu1 %v13154_v0 }
 0x12f   : > { %12792 = vmatmul.mubr.msk.f32.vlgmr.msra.gmra.mxu1 %vm243_vm5, %v14072_v54  ;;  %12794 = vmatprep.subr.mxu0 %v13154_v0 }
 0x130   : > { %12800 = vmatpush3.msk.msra.mxu1 %vm247_vm4, %v14008_v22  ;;  %12801 = vmatprep.mubr.msk.f32.mxu1 %vm13155_vm0, %v13154_v0 }
 0x131   : > { %12795 = vmatpush3.msk.msra.mxu0 %vm247_vm4, %v13397_v17  ;;  %12796 = vmatprep.mubr.msk.f32.mxu0 %vm13155_vm0, %v13154_v0 }
 0x132   : > { %12797 = vmatmul.mubr.msk.f32.vlgmr.msra.gmra.mxu0 %vm243_vm5, %v14087_v55  ;;  %12809 = vmatprep.subr.mxu1 %v13154_v0 }
 0x133   : > { %12802 = vmatmul.mubr.msk.f32.vlgmr.msra.gmra.mxu1 %vm243_vm5, %v14096_v11  ;;  %12804 = vmatprep.subr.mxu0 %v13154_v0 }
 0x134   : > { %12810 = vmatpush3.msk.msra.mxu1 %vm247_vm4, %v13413_v28  ;;  %12811 = vmatprep.mubr.msk.f32.mxu1 %vm13155_vm0, %v13154_v0 }
 0x135   : > { %12805 = vmatpush3.msk.msra.mxu0 %vm247_vm4, %v14030_v29  ;;  %12806 = vmatprep.mubr.msk.f32.mxu0 %vm13155_vm0, %v13154_v0 }
 0x136   : > { %12807 = vmatmul.mubr.msk.f32.vlgmr.msra.gmra.mxu0 %vm243_vm5, %v14111_v57  ;;  %12819 = vmatprep.subr.mxu1 %v13154_v0 }
 0x137   : > { %12812 = vmatmul.mubr.msk.f32.vlgmr.msra.gmra.mxu1 %vm243_vm5, %v14120_v60  ;;  %12814 = vmatprep.subr.mxu0 %v13154_v0 }
 0x138   : > { %12820 = vmatpush3.msk.msra.mxu1 %vm247_vm4, %v14126_v61  ;;  %12821 = vmatprep.mubr.msk.f32.mxu1 %vm13155_vm0, %v13154_v0 }
 0x139   : > { %12815 = vmatpush3.msk.msra.mxu0 %vm247_vm4, %v7142_v63  ;;  %12816 = vmatprep.mubr.msk.f32.mxu0 %vm13155_vm0, %v13154_v0 }
 0x13a   : > { %12817 = vmatmul.mubr.msk.f32.vlgmr.msra.gmra.mxu0 %vm243_vm5, %v14137_v1  ;;  %12829 = vmatprep.subr.mxu1 %v13154_v0 }
 0x13b   : > { %12822 = vmatmul.mubr.msk.f32.vlgmr.msra.gmra.mxu1 %vm243_vm5, %v14146_v3  ;;  %12824 = vmatprep.subr.mxu0 %v13154_v0 }
 0x13c   : > { %12830 = vmatpush3.msk.msra.mxu1 %vm247_vm4, %v13397_v17  ;;  %12831 = vmatprep.mubr.msk.f32.mxu1 %vm13155_vm0, %v13154_v0  ;;  %v14189_v17 = vpop.permute.xlu0 %7845 }
 0x13d   : > { %12839 = vmatprep.subr.mxu1 %v13154_v0  ;;  %12825 = vmatpush3.msk.msra.mxu0 %vm247_vm4, %v14008_v22 }
 0x13e   : > { %12826 = vmatprep.mubr.msk.f32.mxu0 %vm13155_vm0, %v13154_v0  ;;  %12834 = vmatprep.subr.mxu0 %v13154_v0 }
 0x13f   : > { %12832 = vmatmul.mubr.msk.f32.vlgmr.msra.gmra.mxu1 %vm243_vm5, %v14064_v53  ;;  %12827 = vmatmul.mubr.msk.f32.vlgmr.msra.gmra.mxu0 %vm243_vm5, %v14049_v5 }
 0x140   : > { %12840 = vmatpush3.msk.msra.mxu1 %vm247_vm4, %v13413_v28  ;;  %12841 = vmatprep.mubr.msk.f32.mxu1 %vm13155_vm0, %v13154_v0  ;;  %v14210_v6 = vpop.permute.xlu0 %7924 }
 0x141   : > { %12849 = vmatprep.subr.mxu1 %v13154_v0  ;;  %12835 = vmatpush3.msk.msra.mxu0 %vm247_vm4, %v14030_v29 }
 0x142   : > { %12836 = vmatprep.mubr.msk.f32.mxu0 %vm13155_vm0, %v13154_v0  ;;  %12844 = vmatprep.subr.mxu0 %v13154_v0 }
 0x143   : > { %12842 = vmatmul.mubr.msk.f32.vlgmr.msra.gmra.mxu1 %vm243_vm5, %v14087_v55  ;;  %12837 = vmatmul.mubr.msk.f32.vlgmr.msra.gmra.mxu0 %vm243_vm5, %v14072_v54 }
 0x144   : > { %12850 = vmatpush3.msk.msra.mxu1 %vm247_vm4, %v14126_v61  ;;  %12851 = vmatprep.mubr.msk.f32.mxu1 %vm13155_vm0, %v13154_v0 }
 0x145   : > { %12859 = vmatprep.subr.mxu1 %v13154_v0  ;;  %12845 = vmatpush3.msk.msra.mxu0 %vm247_vm4, %v7142_v63 }
 0x146   : > { %12846 = vmatprep.mubr.msk.f32.mxu0 %vm13155_vm0, %v13154_v0  ;;  %12854 = vmatprep.subr.mxu0 %v13154_v0 }
 0x147   : > { %12852 = vmatmul.mubr.msk.f32.vlgmr.msra.gmra.mxu1 %vm243_vm5, %v14111_v57  ;;  %12847 = vmatmul.mubr.msk.f32.vlgmr.msra.gmra.mxu0 %vm243_vm5, %v14096_v11 }
 0x148   : > { %12860 = vmatpush3.msk.msra.mxu1 %vm247_vm4, %v14189_v17  ;;  %12861 = vmatprep.mubr.msk.f32.mxu1 %vm13155_vm0, %v13154_v0 }
 0x149   : > { %12869 = vmatprep.subr.mxu1 %v13154_v0  ;;  %12855 = vmatpush3.msk.msra.mxu0 %vm247_vm4, %v13423_v34 }
 0x14a   : > { %v316_v4 = vpop.f32.mrf.mxu0  ;;  %12856 = vmatprep.mubr.msk.f32.mxu0 %vm13155_vm0, %v13154_v0  ;;  %12864 = vmatprep.subr.mxu0 %v13154_v0 }
 0x14b   : > { %12862 = vmatmul.mubr.msk.f32.vlgmr.msra.gmra.mxu1 %vm243_vm5, %v14137_v1  ;;  %12857 = vmatmul.mubr.msk.f32.vlgmr.msra.gmra.mxu0 %vm243_vm5, %v14120_v60  ;;  %v392_v8 = vadd.f32 %v13735_v13, %v316_v4 }
 0x14c   : > { %v12378_v7 = vpop.f32.mrf.mxu0  ;;  %12870 = vmatpush3.msk.msra.mxu1 %vm247_vm4, %v7142_v63  ;;  %12871 = vmatprep.mubr.msk.f32.mxu1 %vm13155_vm0, %v13154_v0 }
 0x14d   : > { %12879 = vmatprep.subr.mxu1 %v13154_v0  ;;  %12865 = vmatpush3.msk.msra.mxu0 %vm247_vm4, %v14210_v6 }
 0x14e   : > { %v470_v18 = vpop.f32.mrf.mxu0  ;;  %12866 = vmatprep.mubr.msk.f32.mxu0 %vm13155_vm0, %v13154_v0  ;;  %12874 = vmatprep.subr.mxu0 %v13154_v0 }
 0x14f   : > { %v474_v9 = vadd.f32 %v470_v18, %v392_v8  ;;  %v714_v30 = vpop.f32.mrf.mxu1  ;;  %12872 = vmatmul.mubr.msk.f32.vlgmr.msra.gmra.mxu1 %vm243_vm5, %v14049_v5  ;;  %12867 = vmatmul.mubr.msk.f32.vlgmr.msra.gmra.mxu0 %vm243_vm5, %v14146_v3  ;;  %v14330_v8 = vpop.permute.xlu0 %9253 }
 0x150   : > { %v12388_v10 = vpop.f32.mrf.mxu0  ;;  %12880 = vmatpush3.msk.msra.mxu1 %vm247_vm4, %v14126_v61  ;;  %12881 = vmatprep.mubr.msk.f32.mxu1 %vm13155_vm0, %v13154_v0 }
 0x151   : > { %v558_v36 = vadd.f32 %v13750_v16, %v474_v9  ;;  %v12403_v12 = vpop.f32.mrf.mxu1  ;;  %12889 = vmatprep.subr.mxu1 %v13154_v0  ;;  %12875 = vmatpush3.msk.msra.mxu0 %vm247_vm4, %v13413_v28  ;;  %v14243_v16 = vpop.permute.xlu1 %8549 }
 0x152   : > { %v634_v43 = vpop.f32.mrf.mxu0  ;;  %12876 = vmatprep.mubr.msk.f32.mxu0 %vm13155_vm0, %v13154_v0  ;;  %12884 = vmatprep.subr.mxu0 %v13154_v0 }
 0x153   : > { %v638_v13 = vadd.f32 %v634_v43, %v558_v36  ;;  %v878_v14 = vpop.f32.mrf.mxu1  ;;  %12882 = vmatmul.mubr.msk.f32.vlgmr.msra.gmra.mxu1 %vm243_vm5, %v14072_v54  ;;  %12877 = vmatmul.mubr.msk.f32.vlgmr.msra.gmra.mxu0 %vm243_vm5, %v14064_v53 }
 0x154   : > { %v12398_v15 = vpop.f32.mrf.mxu0  ;;  %12890 = vmatpush3.msk.msra.mxu1 %vm247_vm4, %v14189_v17  ;;  %12891 = vmatprep.mubr.msk.f32.mxu1 %vm13155_vm0, %v13154_v0 }
 0x155   : > { %v718_v19 = vadd.f32 %v714_v30, %v638_v13  ;;  %v12413_v51 = vpop.f32.mrf.mxu1  ;;  %12899 = vmatprep.subr.mxu1 %v13154_v0  ;;  %12885 = vmatpush3.msk.msra.mxu0 %vm247_vm4, %v13423_v34  ;;  %v14271_v24 = vpop.permute.xlu1 %8628 }
 0x156   : > { %v798_v28 = vpop.f32.mrf.mxu0  ;;  %12886 = vmatprep.mubr.msk.f32.mxu0 %vm13155_vm0, %v13154_v0  ;;  %12894 = vmatprep.subr.mxu0 %v13154_v0 }
 0x157   : > { %v802_v20 = vadd.f32 %v798_v28, %v718_v19  ;;  %v1045_v59 = vpop.f32.mrf.mxu1  ;;  %12892 = vmatmul.mubr.msk.f32.vlgmr.msra.gmra.mxu1 %vm243_vm5, %v14096_v11  ;;  %12887 = vmatmul.mubr.msk.f32.vlgmr.msra.gmra.mxu0 %vm243_vm5, %v14087_v55 }
 0x158   : > { %v12408_v21 = vpop.f32.mrf.mxu0  ;;  %12900 = vmatpush3.msk.msra.mxu1 %vm247_vm4, %v13436_v42  ;;  %12901 = vmatprep.mubr.msk.f32.mxu1 %vm13155_vm0, %v13154_v0 }
 0x159   : > { %v882_v23 = vadd.f32 %v878_v14, %v802_v20  ;;  %v12423_v50 = vpop.f32.mrf.mxu1  ;;  %12909 = vmatprep.subr.mxu1 %v13154_v0  ;;  %12895 = vmatpush3.msk.msra.mxu0 %vm247_vm4, %v14210_v6 }
 0x15a   : > { %v958_v58 = vpop.f32.mrf.mxu0  ;;  %12896 = vmatprep.mubr.msk.f32.mxu0 %vm13155_vm0, %v13154_v0  ;;  %12904 = vmatprep.subr.mxu0 %v13154_v0 }
 0x15b   : > { %v962_v56 = vadd.f32 %v958_v58, %v882_v23  ;;  %v1192_v25 = vpop.f32.mrf.mxu1  ;;  %12902 = vmatmul.mubr.msk.f32.vlgmr.msra.gmra.mxu1 %vm243_vm5, %v14120_v60  ;;  %12897 = vmatmul.mubr.msk.f32.vlgmr.msra.gmra.mxu0 %vm243_vm5, %v14111_v57 }
 0x15c   : > { %v12418_v26 = vpop.f32.mrf.mxu0  ;;  %12910 = vmatpush3.msk.msra.mxu1 %vm247_vm4, %v14271_v24  ;;  %12911 = vmatprep.mubr.msk.f32.mxu1 %vm13155_vm0, %v13154_v0 }
 0x15d   : > { %964 = vst.msk [vmem:[%s14269_s11] sm:$0xff] %vm963_vm6, %v962_v56  ;;  %v965_v62 = vsel %vm963_vm6, %v962_v56, 0.0  ;;  %v969_v27 = vmul.f32 %v962_v56, %v962_v56  ;;  %v12433_v32 = vpop.f32.mrf.mxu1  ;;  %12919 = vmatprep.subr.mxu1 %v13154_v0  ;;  %12905 = vmatpush3.msk.msra.mxu0 %vm247_vm4, %v14243_v16 }
 0x15e   : > { %v1118_v33 = vpop.f32.mrf.mxu0  ;;  %966 = vadd.xlane.f32.xlu0 %v965_v62  ;;  %12906 = vmatprep.mubr.msk.f32.mxu0 %vm13155_vm0, %v13154_v0 }
 0x15f   : > { %v1119_v35 = vadd.f32 %v1118_v33, %v1045_v59  ;;  %v970_v37 = vsel %vm963_vm6, %v969_v27, 0.0  ;;  %v1342_v2 = vpop.f32.mrf.mxu1  ;;  %12912 = vmatmul.mubr.msk.f32.vlgmr.msra.gmra.mxu1 %vm243_vm5, %v14146_v3  ;;  %12907 = vmatmul.mubr.msk.f32.vlgmr.msra.gmra.mxu0 %vm243_vm5, %v14137_v1  ;;  %v14368_v59 = vpop.permute.xlu1 %9332 }
 0x160   : > { %v12428_v38 = vpop.f32.mrf.mxu0  ;;  %971 = vadd.xlane.f32.xlu1 %v970_v37  ;;  %12920 = vmatpush3.msk.msra.mxu1 %vm247_vm4, %v13423_v34  ;;  %v14396_v33 = vpop.permute.xlu0 %9957 }
 0x161   : > { %v1196_v39 = vadd.f32 %v1192_v25, %v1119_v35  ;;  %v12443_v40 = vpop.f32.mrf.mxu1  ;;  %12921 = vmatprep.mubr.msk.f32.mxu1 %vm13155_vm0, %v13154_v0  ;;  %12929 = vmatprep.subr.mxu1 %v13154_v0 }
 0x162   : > { %v1267_v44 = vpop.f32.mrf.mxu0  ;;  %12914 = vmatprep.subr.mxu0 %v13154_v0  ;;  %12916 = vmatprep.mubr.msk.f32.mxu0 %vm13155_vm0, %v13154_v0 }
 0x163   : > { %v1271_v45 = vadd.f32 %v1267_v44, %v1196_v39  ;;  %v1500_v46 = vpop.f32.mrf.mxu1  ;;  %12922 = vmatmul.mubr.msk.f32.vlgmr.msra.gmra.mxu1 %vm243_vm5, %v14064_v53  ;;  %12915 = vmatpush3.msk.msra.mxu0 %vm247_vm4, %v14189_v17 }
 0x164   : > { %v12438_v47 = vpop.f32.mrf.mxu0  ;;  %12930 = vmatpush3.msk.msra.mxu1 %vm247_vm4, %v13436_v42  ;;  %12931 = vmatprep.mubr.msk.f32.mxu1 %vm13155_vm0, %v13154_v0  ;;  %v14414_v39 = vpop.permute.xlu0 %10036 }
 0x165   : > { %v1346_v34 = vadd.f32 %v1342_v2, %v1271_v45  ;;  %v12453_v48 = vpop.f32.mrf.mxu1  ;;  %12939 = vmatprep.subr.mxu1 %v13154_v0  ;;  %12917 = vmatmul.mubr.msk.f32.vlgmr.msra.gmra.mxu0 %vm243_vm5, %v14049_v5 }
 0x166   : > { %v1417_v22 = vpop.f32.mrf.mxu0  ;;  %12924 = vmatprep.subr.mxu0 %v13154_v0  ;;  %12926 = vmatprep.mubr.msk.f32.mxu0 %vm13155_vm0, %v13154_v0 }
 0x167   : > { %v1421_v29 = vadd.f32 %v1417_v22, %v1346_v34  ;;  %v1658_v61 = vpop.f32.mrf.mxu1  ;;  %12932 = vmatmul.mubr.msk.f32.vlgmr.msra.gmra.mxu1 %vm243_vm5, %v14087_v55  ;;  %12925 = vmatpush3.msk.msra.mxu0 %vm247_vm4, %v14210_v6 }
 0x168   : > { %v12448_v63 = vpop.f32.mrf.mxu0  ;;  %12940 = vmatpush3.msk.msra.mxu1 %vm247_vm4, %v14271_v24  ;;  %12941 = vmatprep.mubr.msk.f32.mxu1 %vm13155_vm0, %v13154_v0 }
 0x169   : > { %v1504_v17 = vadd.f32 %v1500_v46, %v1421_v29  ;;  %v12463_v4 = vpop.f32.mrf.mxu1  ;;  %12949 = vmatprep.subr.mxu1 %v13154_v0  ;;  %12927 = vmatmul.mubr.msk.f32.vlgmr.msra.gmra.mxu0 %vm243_vm5, %v14072_v54 }
 0x16a   : > { %v1579_v7 = vpop.f32.mrf.mxu0  ;;  %12934 = vmatprep.subr.mxu0 %v13154_v0  ;;  %12936 = vmatprep.mubr.msk.f32.mxu0 %vm13155_vm0, %v13154_v0 }
 0x16b   : > { %v1583_v18 = vadd.f32 %v1579_v7, %v1504_v17  ;;  %v1822_v9 = vpop.f32.mrf.mxu1  ;;  %12942 = vmatmul.mubr.msk.f32.vlgmr.msra.gmra.mxu1 %vm243_vm5, %v14111_v57  ;;  %12935 = vmatpush3.msk.msra.mxu0 %vm247_vm4, %v14243_v16 }
 0x16c   : > { %v12458_v6 = vpop.f32.mrf.mxu0  ;;  %12950 = vmatpush3.msk.msra.mxu1 %vm247_vm4, %v14330_v8  ;;  %12951 = vmatprep.mubr.msk.f32.mxu1 %vm13155_vm0, %v13154_v0 }
 0x16d   : > { %v14342_v30 = vadd.f32 %v1658_v61, %v1583_v18  ;;  %v12473_v10 = vpop.f32.mrf.mxu1  ;;  %12959 = vmatprep.subr.mxu1 %v13154_v0  ;;  %12937 = vmatmul.mubr.msk.f32.vlgmr.msra.gmra.mxu0 %vm243_vm5, %v14096_v11 }
 0x16e   : > { %v1749_v36 = vpop.f32.mrf.mxu0  ;;  %12944 = vmatprep.subr.mxu0 %v13154_v0  ;;  %12946 = vmatprep.mubr.msk.f32.mxu0 %vm13155_vm0, %v13154_v0 }
 0x16f   : > { %v1823_v12 = vadd.f32 %v1822_v9, %v1749_v36  ;;  %v1673_v43 = vmul.f32 %v14342_v30, %v14342_v30  ;;  %v1971_v13 = vpop.f32.mrf.mxu1  ;;  %12952 = vmatmul.mubr.msk.f32.vlgmr.msra.gmra.mxu1 %vm243_vm5, %v14137_v1  ;;  %12945 = vmatpush3.msk.msra.mxu0 %vm247_vm4, %v13449_v52 }
 0x170   : > { %v12468_v14 = vpop.f32.mrf.mxu0  ;;  %12960 = vmatpush3.msk.msra.mxu1 %vm247_vm4, %v14243_v16  ;;  %12961 = vmatprep.mubr.msk.f32.mxu1 %vm13155_vm0, %v13154_v0 }
 0x171   : > { %v1674_v15 = vsel %vm963_vm6, %v1673_v43, 0.0  ;;  %v12483_v19 = vpop.f32.mrf.mxu1  ;;  %12969 = vmatprep.subr.mxu1 %v13154_v0  ;;  %12947 = vmatmul.mubr.msk.f32.vlgmr.msra.gmra.mxu0 %vm243_vm5, %v14120_v60 }
 0x172   : > { %v1896_v51 = vpop.f32.mrf.mxu0  ;;  %1675 = vadd.xlane.f32.xlu1 %v1674_v15  ;;  %12954 = vmatprep.subr.mxu0 %v13154_v0 }
 0x173   : > { %v1900_v28 = vadd.f32 %v1896_v51, %v1823_v12  ;;  %v2121_v20 = vpop.f32.mrf.mxu1  ;;  %12962 = vmatmul.mubr.msk.f32.vlgmr.msra.gmra.mxu1 %vm243_vm5, %v14049_v5  ;;  %12955 = vmatpush3.msk.msra.mxu0 %vm247_vm4, %v14368_v59 }
 0x174   : > { %v12478_v21 = vpop.f32.mrf.mxu0  ;;  %1664 = vrot.lane.b32.xlu0 %v14342_v30, %s13158_s16  ;;  %12970 = vmatpush3.msk.msra.mxu1 %vm247_vm4, %v14271_v24 }
 0x175   : > { %v1975_v16 = vadd.f32 %v1971_v13, %v1900_v28  ;;  %v12493_v23 = vpop.f32.mrf.mxu1  ;;  %12971 = vmatprep.mubr.msk.f32.mxu1 %vm13155_vm0, %v13154_v0  ;;  %12979 = vmatprep.subr.mxu1 %v13154_v0 }
 0x176   : > { %v2046_v50 = vpop.f32.mrf.mxu0  ;;  %12956 = vmatprep.mubr.msk.f32.mxu0 %vm13155_vm0, %v13154_v0  ;;  %12964 = vmatprep.subr.mxu0 %v13154_v0 }
 0x177   : > { %v2050_v58 = vadd.f32 %v2046_v50, %v1975_v16  ;;  %v2284_v56 = vpop.f32.mrf.mxu1  ;;  %12972 = vmatmul.mubr.msk.f32.vlgmr.msra.gmra.mxu1 %vm243_vm5, %v14072_v54  ;;  %12957 = vmatmul.mubr.msk.f32.vlgmr.msra.gmra.mxu0 %vm243_vm5, %v14146_v3 }
 0x178   : > { %v12488_v25 = vpop.f32.mrf.mxu0  ;;  %12980 = vmatpush3.msk.msra.mxu1 %vm247_vm4, %v14330_v8  ;;  %12981 = vmatprep.mubr.msk.f32.mxu1 %vm13155_vm0, %v13154_v0 }
 0x179   : > { %v2125_v24 = vadd.f32 %v2121_v20, %v2050_v58  ;;  %v12503_v26 = vpop.f32.mrf.mxu1  ;;  %12989 = vmatprep.subr.mxu1 %v13154_v0  ;;  %12965 = vmatpush3.msk.msra.mxu0 %vm247_vm4, %v13436_v42 }
 0x17a   : > { %v2205_v62 = vpop.f32.mrf.mxu0  ;;  %12966 = vmatprep.mubr.msk.f32.mxu0 %vm13155_vm0, %v13154_v0  ;;  %12974 = vmatprep.subr.mxu0 %v13154_v0 }
 0x17b   : > { %v2209_v27 = vadd.f32 %v2205_v62, %v2125_v24  ;;  %v2454_v32 = vpop.f32.mrf.mxu1  ;;  %12982 = vmatmul.mubr.msk.f32.vlgmr.msra.gmra.mxu1 %vm243_vm5, %v14096_v11  ;;  %12967 = vmatmul.mubr.msk.f32.vlgmr.msra.gmra.mxu0 %vm243_vm5, %v14064_v53 }
 0x17c   : > { %v12498_v35 = vpop.f32.mrf.mxu0  ;;  %12990 = vmatpush3.msk.msra.mxu1 %vm247_vm4, %v13904_v31  ;;  %12991 = vmatprep.mubr.msk.f32.mxu1 %vm13155_vm0, %v13154_v0 }
 0x17d   : > { %v2288_v37 = vadd.f32 %v2284_v56, %v2209_v27  ;;  %v12513_v2 = vpop.f32.mrf.mxu1  ;;  %12999 = vmatprep.subr.mxu1 %v13154_v0  ;;  %12975 = vmatpush3.msk.msra.mxu0 %vm247_vm4, %v13449_v52 }
 0x17e   : > { %v2363_v42 = vpop.f32.mrf.mxu0  ;;  %12976 = vmatprep.mubr.msk.f32.mxu0 %vm13155_vm0, %v13154_v0  ;;  %12984 = vmatprep.subr.mxu0 %v13154_v0 }
 0x17f   : > { %v14412_v38 = vadd.f32 %v2363_v42, %v2288_v37  ;;  %12992 = vmatmul.mubr.msk.f32.vlgmr.msra.gmra.mxu1 %vm243_vm5, %v14120_v60  ;;  %12977 = vmatmul.mubr.msk.f32.vlgmr.msra.gmra.mxu0 %vm243_vm5, %v14087_v55 }
 0x180   : > { %v12508_v40 = vpop.f32.mrf.mxu0  ;;  %v2601_v44 = vpop.f32.mrf.mxu1  ;;  %13000 = vmatpush3.msk.msra.mxu1 %vm247_vm4, %v14414_v39  ;;  %13001 = vmatprep.mubr.msk.f32.mxu1 %vm13155_vm0, %v13154_v0 }
 0x181   : > { %v2378_v45 = vmul.f32 %v14412_v38, %v14412_v38  ;;  %13009 = vmatprep.subr.mxu1 %v13154_v0  ;;  %12985 = vmatpush3.msk.msra.mxu0 %vm247_vm4, %v14368_v59 }
 0x182   : > { %v2527_v46 = vpop.f32.mrf.mxu0  ;;  %v12523_v47 = vpop.f32.mrf.mxu1  ;;  %12986 = vmatprep.mubr.msk.f32.mxu0 %vm13155_vm0, %v13154_v0  ;;  %12994 = vmatprep.subr.mxu0 %v13154_v0 }
 0x183   : > { %v2528_v34 = vadd.f32 %v2527_v46, %v2454_v32  ;;  %v2379_v48 = vsel %vm963_vm6, %v2378_v45, 0.0  ;;  %13002 = vmatmul.mubr.msk.f32.vlgmr.msra.gmra.mxu1 %vm243_vm5, %v14146_v3  ;;  %12987 = vmatmul.mubr.msk.f32.vlgmr.msra.gmra.mxu0 %vm243_vm5, %v14111_v57  ;;  %v10665_v13 = vpop.permute.xlu1 %10664 }
 0x184   : > { %v12518_v22 = vpop.f32.mrf.mxu0  ;;  %2380 = vadd.xlane.f32.xlu1 %v2379_v48  ;;  %v2751_v29 = vpop.f32.mrf.mxu1  ;;  %13010 = vmatpush3.msk.msra.mxu1 %vm247_vm4, %v13449_v52 }
 0x185   : > { %v2605_v61 = vadd.f32 %v2601_v44, %v2528_v34  ;;  %13011 = vmatprep.mubr.msk.f32.mxu1 %vm13155_vm0, %v13154_v0  ;;  %13019 = vmatprep.subr.mxu1 %v13154_v0 }
 0x186   : > { %v2676_v63 = vpop.f32.mrf.mxu0  ;;  %v12533_v17 = vpop.f32.mrf.mxu1  ;;  %12995 = vmatpush3.msk.msra.mxu0 %vm247_vm4, %v14396_v33  ;;  %12996 = vmatprep.mubr.msk.f32.mxu0 %vm13155_vm0, %v13154_v0 }
 0x187   : > { %v2680_v4 = vadd.f32 %v2676_v63, %v2605_v61  ;;  %13012 = vmatmul.mubr.msk.f32.vlgmr.msra.gmra.mxu1 %vm243_vm5, %v14064_v53  ;;  %13004 = vmatprep.subr.mxu0 %v13154_v0  ;;  %v10744_v24 = vpop.permute.xlu1 %10743  ;;  %v12080_v61 = vld [vmem:[%s14781_s1 + $0x40] sm:$0xff] }
 0x188   : > { %v12528_v7 = vpop.f32.mrf.mxu0  ;;  %v2910_v18 = vpop.f32.mrf.mxu1  ;;  %13020 = vmatpush3.msk.msra.mxu1 %vm247_vm4, %v13904_v31  ;;  %13021 = vmatprep.mubr.msk.f32.mxu1 %vm13155_vm0, %v13154_v0 }
 0x189   : > { %v2755_v52 = vadd.f32 %v2751_v29, %v2680_v4  ;;  %12997 = vmatmul.mubr.msk.f32.vlgmr.msra.gmra.mxu0 %vm243_vm5, %v14137_v1  ;;  %13029 = vmatprep.subr.mxu1 %v13154_v0  ;;  %v12071_v29 = vld [vmem:[%s14781_s1 + $0x28] sm:$0xff] }
 0x18a   : > { %v2826_v9 = vpop.f32.mrf.mxu0  ;;  %v12543_v6 = vpop.f32.mrf.mxu1  ;;  %13005 = vmatpush3.msk.msra.mxu0 %vm247_vm4, %v14330_v8  ;;  %13006 = vmatprep.mubr.msk.f32.mxu0 %vm13155_vm0, %v13154_v0 }
 0x18b   : > { %v2830_v10 = vadd.f32 %v2826_v9, %v2755_v52  ;;  %13022 = vmatmul.mubr.msk.f32.vlgmr.msra.gmra.mxu1 %vm243_vm5, %v14087_v55  ;;  %13014 = vmatprep.subr.mxu0 %v13154_v0 }
 0x18c   : > { %v12538_v36 = vpop.f32.mrf.mxu0  ;;  %v3068_v12 = vpop.f32.mrf.mxu1  ;;  %13030 = vmatpush3.msk.msra.mxu1 %vm247_vm4, %v14414_v39  ;;  %13031 = vmatprep.mubr.msk.f32.mxu1 %vm13155_vm0, %v13154_v0 }
 0x18d   : > { %v2914_v43 = vadd.f32 %v2910_v18, %v2830_v10  ;;  %13007 = vmatmul.mubr.msk.f32.vlgmr.msra.gmra.mxu0 %vm243_vm5, %v14049_v5  ;;  %13039 = vmatprep.subr.mxu1 %v13154_v0  ;;  %v11368_v42 = vpop.permute.xlu1 %11367  ;;  %v12077_v18 = vld [vmem:[%s14781_s1 + $0x38] sm:$0xff] }
 0x18e   : > { %v2989_v14 = vpop.f32.mrf.mxu0  ;;  %v12553_v8 = vpop.f32.mrf.mxu1  ;;  %13015 = vmatpush3.msk.msra.mxu0 %vm247_vm4, %v14368_v59  ;;  %13016 = vmatprep.mubr.msk.f32.mxu0 %vm13155_vm0, %v13154_v0  ;;  %v1669_v59 = vsel %vm963_vm6, %v14342_v30, 0.0 }
 0x18f   : > { %v2993_v15 = vadd.f32 %v2989_v14, %v2914_v43  ;;  %13032 = vmatmul.mubr.msk.f32.vlgmr.msra.gmra.mxu1 %vm243_vm5, %v14111_v57  ;;  %13024 = vmatprep.subr.mxu0 %v13154_v0 }
 0x190   : > { %v12548_v19 = vpop.f32.mrf.mxu0  ;;  %v3232_v51 = vpop.f32.mrf.mxu1  ;;  %13040 = vmatpush3.msk.msra.mxu1 %vm247_vm4, %v10665_v13  ;;  %13041 = vmatprep.mubr.msk.f32.mxu1 %vm13155_vm0, %v13154_v0 }
 0x191   : > { %v14480_v28 = vadd.f32 %v3068_v12, %v2993_v15  ;;  %13049 = vmatprep.subr.mxu1 %v13154_v0  ;;  %13017 = vmatmul.mubr.msk.f32.vlgmr.msra.gmra.mxu0 %vm243_vm5, %v14072_v54 }
 0x192   : > { %v3159_v20 = vpop.f32.mrf.mxu0  ;;  %v12563_v21 = vpop.f32.mrf.mxu1  ;;  %13025 = vmatpush3.msk.msra.mxu0 %vm247_vm4, %v14396_v33  ;;  %13026 = vmatprep.mubr.msk.f32.mxu0 %vm13155_vm0, %v13154_v0 }
 0x193   : > { %1670 = vadd.xlane.f32.xlu0 %v1669_v59  ;;  %v3079_v57 = vsel %vm963_vm6, %v14480_v28, 0.0  ;;  %v3233_v16 = vadd.f32 %v3232_v51, %v3159_v20  ;;  %13042 = vmatmul.mubr.msk.f32.vlgmr.msra.gmra.mxu1 %vm243_vm5, %v14137_v1 }
 0x194   : > { %v12558_v23 = vpop.f32.mrf.mxu0  ;;  %3080 = vadd.xlane.f32.xlu1 %v3079_v57  ;;  %v3381_v50 = vpop.f32.mrf.mxu1  ;;  %13050 = vmatpush3.msk.msra.mxu1 %vm247_vm4, %v14396_v33 }
 0x195   : > { %13051 = vmatprep.mubr.msk.f32.mxu1 %vm13155_vm0, %v13154_v0  ;;  %13059 = vmatprep.subr.mxu1 %v13154_v0 }
 0x196   : > { %v3306_v54 = vpop.f32.mrf.mxu0  ;;  %v12573_v30 = vpop.f32.mrf.mxu1  ;;  %13027 = vmatmul.mubr.msk.f32.vlgmr.msra.gmra.mxu0 %vm243_vm5, %v14096_v11  ;;  %13034 = vmatprep.subr.mxu0 %v13154_v0 }
 0x197   : > { %v3310_v58 = vadd.f32 %v3306_v54, %v3233_v16  ;;  %13052 = vmatmul.mubr.msk.f32.vlgmr.msra.gmra.mxu1 %vm243_vm5, %v14049_v5  ;;  %13035 = vmatpush3.msk.msra.mxu0 %vm247_vm4, %v13945_v41  ;;  %v12062_v5 = vld [vmem:[%s14781_s1 + $0x10] sm:$0xff] }
 0x198   : > { %v12568_v1 = vpop.f32.mrf.mxu0  ;;  %v3531_v56 = vpop.f32.mrf.mxu1  ;;  %13060 = vmatpush3.msk.msra.mxu1 %vm247_vm4, %v14414_v39  ;;  %13036 = vmatprep.mubr.msk.f32.mxu0 %vm13155_vm0, %v13154_v0 }
 0x199   : > { %v3385_v25 = vadd.f32 %v3381_v50, %v3310_v58  ;;  %13044 = vmatprep.subr.mxu0 %v13154_v0  ;;  %13061 = vmatprep.mubr.msk.f32.mxu1 %vm13155_vm0, %v13154_v0 }
 0x19a   : > { %v3456_v26 = vpop.f32.mrf.mxu0  ;;  %v12583_v11 = vpop.f32.mrf.mxu1  ;;  %13037 = vmatmul.mubr.msk.f32.vlgmr.msra.gmra.mxu0 %vm243_vm5, %v14120_v60  ;;  %13069 = vmatprep.subr.mxu1 %v13154_v0  ;;  %v12068_v60 = vld [vmem:[%s14781_s1 + $0x20] sm:$0xff] }
 0x19b   : > { %v3460_v62 = vadd.f32 %v3456_v26, %v3385_v25  ;;  %13045 = vmatpush3.msk.msra.mxu0 %vm247_vm4, %v10744_v24  ;;  %13046 = vmatprep.mubr.msk.f32.mxu0 %vm13155_vm0, %v13154_v0 }
 0x19c   : > { %v12578_v27 = vpop.f32.mrf.mxu0  ;;  %v3694_v32 = vpop.f32.mrf.mxu1  ;;  %13054 = vmatprep.subr.mxu0 %v13154_v0  ;;  %13062 = vmatmul.mubr.msk.f32.vlgmr.msra.gmra.mxu1 %vm243_vm5, %v12062_v5 }
 0x19d   : > { %v3535_v33 = vadd.f32 %v3531_v56, %v3460_v62  ;;  %13070 = vmatpush3.msk.msra.mxu1 %vm247_vm4, %v10665_v13  ;;  %13071 = vmatprep.mubr.msk.f32.mxu1 %vm13155_vm0, %v13154_v0 }
 0x19e   : > { %v3615_v35 = vpop.f32.mrf.mxu0  ;;  %v12593_v37 = vpop.f32.mrf.mxu1  ;;  %13047 = vmatmul.mubr.msk.f32.vlgmr.msra.gmra.mxu0 %vm243_vm5, %v14146_v3  ;;  %13079 = vmatprep.subr.mxu1 %v13154_v0 }
 0x19f   : > { %v3619_v2 = vadd.f32 %v3615_v35, %v3535_v33  ;;  %13055 = vmatpush3.msk.msra.mxu0 %vm247_vm4, %v13904_v31  ;;  %13056 = vmatprep.mubr.msk.f32.mxu0 %vm13155_vm0, %v13154_v0  ;;  %v12074_v31 = vld [vmem:[%s14781_s1 + $0x30] sm:$0xff] }
 0x1a0   : > { %v12588_v39 = vpop.f32.mrf.mxu0  ;;  %v3864_v40 = vpop.f32.mrf.mxu1  ;;  %13064 = vmatprep.subr.mxu0 %v13154_v0  ;;  %13072 = vmatmul.mubr.msk.f32.vlgmr.msra.gmra.mxu1 %vm243_vm5, %v12068_v60 }
 0x1a1   : > { %v3698_v44 = vadd.f32 %v3694_v32, %v3619_v2  ;;  %13080 = vmatpush3.msk.msra.mxu1 %vm247_vm4, %v13981_v49  ;;  %13081 = vmatprep.mubr.msk.f32.mxu1 %vm13155_vm0, %v13154_v0  ;;  %v11447_v49 = vpop.permute.xlu1 %11446  ;;  %v2374_v2 = vsel %vm963_vm6, %v14412_v38, 0.0 }
 0x1a2   : > { %v3773_v45 = vpop.f32.mrf.mxu0  ;;  %v12603_v46 = vpop.f32.mrf.mxu1  ;;  %13057 = vmatmul.mubr.msk.f32.vlgmr.msra.gmra.mxu0 %vm243_vm5, %v14064_v53  ;;  %13089 = vmatprep.subr.mxu1 %v13154_v0 }
 0x1a3   : > { %v14547_v3 = vadd.f32 %v3773_v45, %v3698_v44  ;;  %13065 = vmatpush3.msk.msra.mxu0 %vm247_vm4, %v13945_v41  ;;  %13066 = vmatprep.mubr.msk.f32.mxu0 %vm13155_vm0, %v13154_v0 }
 0x1a4   : > { %v12598_v47 = vpop.f32.mrf.mxu0  ;;  %v4011_v34 = vpop.f32.mrf.mxu1  ;;  %13074 = vmatprep.subr.mxu0 %v13154_v0  ;;  %13082 = vmatmul.mubr.msk.f32.vlgmr.msra.gmra.mxu1 %vm243_vm5, %v12074_v31 }
 0x1a5   : > { %3779 = vrot.lane.b32.xlu1 %v14547_v3, %s13159_s23  ;;  %13090 = vmatpush3.msk.msra.mxu1 %vm247_vm4, %v11447_v49  ;;  %v3784_v32 = vsel %vm963_vm6, %v14547_v3, 0.0 }
 0x1a6   : > { %v3937_v53 = vpop.f32.mrf.mxu0  ;;  %v12613_v48 = vpop.f32.mrf.mxu1  ;;  %13067 = vmatmul.mubr.msk.f32.vlgmr.msra.gmra.mxu0 %vm243_vm5, %v14087_v55  ;;  %13091 = vmatprep.mubr.msk.f32.mxu1 %vm13155_vm0, %v13154_v0 }
 0x1a7   : > { %13075 = vmatpush3.msk.msra.mxu0 %vm247_vm4, %v10744_v24  ;;  %13076 = vmatprep.mubr.msk.f32.mxu0 %vm13155_vm0, %v13154_v0  ;;  %v3938_v55 = vadd.f32 %v3937_v53, %v3864_v40 }
 0x1a8   : > { %v12608_v41 = vpop.f32.mrf.mxu0  ;;  %v4161_v22 = vpop.f32.mrf.mxu1  ;;  %13084 = vmatprep.subr.mxu0 %v13154_v0  ;;  %13092 = vmatmul.mubr.msk.f32.vlgmr.msra.gmra.mxu1 %vm243_vm5, %v12080_v61 }
 0x1a9   : > { %2369 = vrot.lane.b32.xlu0 %v14412_v38, %s13160_s28  ;;  %v4015_v52 = vadd.f32 %v4011_v34, %v3938_v55 }
 0x1aa   : > { %v4086_v63 = vpop.f32.mrf.mxu0  ;;  %v12623_v17 = vpop.f32.mrf.mxu1  ;;  %13077 = vmatmul.mubr.msk.f32.vlgmr.msra.gmra.mxu0 %vm243_vm5, %v12071_v29 }
 0x1ab   : > { %13085 = vmatpush3.msk.msra.mxu0 %vm247_vm4, %v11368_v42  ;;  %13086 = vmatprep.mubr.msk.f32.mxu0 %vm13155_vm0, %v13154_v0  ;;  %v4090_v12 = vadd.f32 %v4086_v63, %v4015_v52 }
 0x1ac   : > { %v12618_v4 = vpop.f32.mrf.mxu0  ;;  %v4320_v7 = vpop.f32.mrf.mxu1 }
 0x1ad   : > { %v4165_v15 = vadd.f32 %v4161_v22, %v4090_v12 }
 0x1ae   : > { %v4236_v9 = vpop.f32.mrf.mxu0  ;;  %v12633_v6 = vpop.f32.mrf.mxu1  ;;  %13087 = vmatmul.mubr.msk.f32.vlgmr.msra.gmra.mxu0 %vm243_vm5, %v12077_v18 }
 0x1af   : > { %v4240_v21 = vadd.f32 %v4236_v9, %v4165_v15 }
 0x1b0   : > { %v12628_v10 = vpop.f32.mrf.mxu0  ;;  %v4478_v36 = vpop.f32.mrf.mxu1 }
 0x1b1   : > { %v4324_v54 = vadd.f32 %v4320_v7, %v4240_v21 }
 0x1b2   : > { %v4399_v43 = vpop.f32.mrf.mxu0  ;;  %v12643_v13 = vpop.f32.mrf.mxu1 }
 0x1b3   : > { %v4403_v24 = vadd.f32 %v4399_v43, %v4324_v54 }
 0x1b4   : > { %v12638_v14 = vpop.f32.mrf.mxu0  ;;  %v4642_v8 = vpop.f32.mrf.mxu1 }
 0x1b5   : > { %v14591_v33 = vadd.f32 %v4478_v36, %v4403_v24 }
 0x1b6   : > { %v4569_v19 = vpop.f32.mrf.mxu0  ;;  %v12653_v51 = vpop.f32.mrf.mxu1 }
 0x1b7   : > { %v4643_v30 = vadd.f32 %v4642_v8, %v4569_v19  ;;  %v4489_v40 = vsel %vm963_vm6, %v14591_v33, 0.0 }
 0x1b8   : > { %v12648_v20 = vpop.f32.mrf.mxu0  ;;  %v4791_v59 = vpop.f32.mrf.mxu1 }
 0x1ba   : > { %v4716_v57 = vpop.f32.mrf.mxu0  ;;  %v12663_v16 = vpop.f32.mrf.mxu1 }
 0x1bb   : > { %v4720_v26 = vadd.f32 %v4716_v57, %v4643_v30 }
 0x1bc   : > { %v12658_v23 = vpop.f32.mrf.mxu0  ;;  %v4941_v50 = vpop.f32.mrf.mxu1 }
 0x1bd   : > { %v4795_v35 = vadd.f32 %v4791_v59, %v4720_v26 }
 0x1be   : > { %v4866_v58 = vpop.f32.mrf.mxu0  ;;  %v12673_v1 = vpop.f32.mrf.mxu1 }
 0x1bf   : > { %v4870_v44 = vadd.f32 %v4866_v58, %v4795_v35 }
 0x1c0   : > { %v12668_v56 = vpop.f32.mrf.mxu0  ;;  %v5107_v25 = vpop.f32.mrf.mxu1 }
 0x1c1   : > { %v4945_v34 = vadd.f32 %v4941_v50, %v4870_v44 }
 0x1c2   : > { %v5028_v11 = vpop.f32.mrf.mxu0  ;;  %v12683_v5 = vpop.f32.mrf.mxu1 }
 0x1c3   : > { %v5032_v22 = vadd.f32 %v5028_v11, %v4945_v34 }
 0x1c4   : > { %v12678_v62 = vpop.f32.mrf.mxu0  ;;  %v5277_v27 = vpop.f32.mrf.mxu1 }
 0x1c5   : > { %v5111_v55 = vadd.f32 %v5107_v25, %v5032_v22 }
 0x1c6   : > { %v5186_v37 = vpop.f32.mrf.mxu0  ;;  %v12693_v60 = vpop.f32.mrf.mxu1 }
 0x1c7   : > { %v14599_v18 = vadd.f32 %v5186_v37, %v5111_v55 }
 0x1c8   : > { %2375 = vadd.xlane.f32.xlu0 %v2374_v2  ;;  %v12688_v42 = vpop.f32.mrf.mxu0  ;;  %v5424_v39 = vpop.f32.mrf.mxu1 }
 0x1c9   : > { %3785 = vadd.xlane.f32.xlu1 %v3784_v32 }
 0x1ca   : > { %v5350_v45 = vpop.f32.mrf.mxu0  ;;  %v12703_v46 = vpop.f32.mrf.mxu1 }
 0x1cb   : > { %v5351_v51 = vadd.f32 %v5350_v45, %v5277_v27 }
 0x1cc   : > { %v12698_v31 = vpop.f32.mrf.mxu0  ;;  %v5574_v47 = vpop.f32.mrf.mxu1 }
 0x1cd   : > { %4490 = vadd.xlane.f32.xlu1 %v4489_v40  ;;  %v5428_v54 = vadd.f32 %v5424_v39, %v5351_v51 }
 0x1ce   : > { %v5499_v49 = vpop.f32.mrf.mxu0  ;;  %v12713_v53 = vpop.f32.mrf.mxu1 }
 0x1cf   : > { %v5503_v26 = vadd.f32 %v5499_v49, %v5428_v54  ;;  %v3083_v53 = vmul.f32 %v14480_v28, %v14480_v28 }
 0x1d0   : > { %v12708_v48 = vpop.f32.mrf.mxu0  ;;  %v5732_v41 = vpop.f32.mrf.mxu1 }
 0x1d1   : > { %v5578_v35 = vadd.f32 %v5574_v47, %v5503_v26 }
 0x1d2   : > { %v5649_v38 = vpop.f32.mrf.mxu0  ;;  %v12723_v29 = vpop.f32.mrf.mxu1 }
 0x1d3   : > { %v5653_v39 = vadd.f32 %v5649_v38, %v5578_v35  ;;  %v3788_v38 = vmul.f32 %v14547_v3, %v14547_v3 }
 0x1d4   : > { %v12718_v61 = vpop.f32.mrf.mxu0 }
 0x1d5   : > { %v14597_v17 = vpop.f32.mrf.mxu1  ;;  %v5736_v34 = vadd.f32 %v5732_v41, %v5653_v39 }
 0x1d6   : > { %v5811_v63 = vpop.f32.mrf.mxu0 }
 0x1d7   : > { %v12733_v7 = vpop.f32.mrf.mxu1  ;;  %v5815_v61 = vadd.f32 %v5811_v63, %v5736_v34  ;;  %v3789_v63 = vsel %vm963_vm6, %v3788_v38, 0.0 }
 0x1d8   : > { %v12728_v4 = vpop.f32.mrf.mxu0  ;;  %v3084_v7 = vsel %vm963_vm6, %v3083_v53, 0.0 }
 0x1d9   : > { %v6054_v9 = vpop.f32.mrf.mxu1 }
 0x1da   : > { %v5981_v52 = vpop.f32.mrf.mxu0 }
 0x1db   : > { %v6055_v6 = vadd.f32 %v6054_v9, %v5981_v52  ;;  %v12743_v36 = vpop.f32.mrf.mxu1 }
 0x1dc   : > { %v12738_v10 = vpop.f32.mrf.mxu0 }
 0x1de   : > { %3074 = vrot.lane.b32.xlu0 %v14480_v28, %s13161_s4  ;;  %5192 = vrot.lane.b32.xlu1 %v14599_v18, %s13162_s5  ;;  %v6128_v12 = vpop.f32.mrf.mxu0  ;;  %v6203_v13 = vpop.f32.mrf.mxu1  ;;  %v5197_v28 = vsel %vm963_vm6, %v14599_v18, 0.0 }
 0x1df   : > { %v6132_v43 = vadd.f32 %v6128_v12, %v6055_v6  ;;  %v14617_v6 = vadd.f32 %v14597_v17, %v5815_v61 }
 0x1e0   : > { %v12748_v14 = vpop.f32.mrf.mxu0  ;;  %v12753_v15 = vpop.f32.mrf.mxu1 }
 0x1e1   : > { %v6207_v8 = vadd.f32 %v6203_v13, %v6132_v43  ;;  %v5901_v3 = vsel %vm963_vm6, %v14617_v6, 0.0 }
 0x1e2   : > { %v6278_v19 = vpop.f32.mrf.mxu0 }
 0x1e3   : > { %v6282_v20 = vadd.f32 %v6278_v19, %v6207_v8  ;;  %v6353_v21 = vpop.f32.mrf.mxu1 }
 0x1e4   : > { %v12758_v59 = vpop.f32.mrf.mxu0 }
 0x1e5   : > { %v6357_v57 = vadd.f32 %v6353_v21, %v6282_v20  ;;  %v12763_v23 = vpop.f32.mrf.mxu1 }
 0x1e6   : > { %v6436_v16 = vpop.f32.mrf.mxu0 }
 0x1e7   : > { %v14605_v50 = vpop.xlane.xlu0 %966  ;;  %v6440_v30 = vadd.f32 %v6436_v16, %v6357_v57  ;;  %v6515_v1 = vpop.f32.mrf.mxu1 }
 0x1e8   : > { %v12768_v58 = vpop.f32.mrf.mxu0 }
 0x1e9   : > { %v6519_v56 = vadd.f32 %v6515_v1, %v6440_v30  ;;  %v12773_v24 = vpop.f32.mrf.mxu1  ;;  %v972_v31 = vpop.xlane.xlu1 %971 }
 0x1ea   : > { %v6594_v25 = vpop.f32.mrf.mxu0 }
 0x1eb   : > { %v1665_v11 = vpop.permute.xlu0 %1664  ;;  %v6598_v5 = vadd.f32 %v6594_v25, %v6519_v56  ;;  %v6680_v27 = vpop.f32.mrf.mxu1 }
 0x1ec   : > { %1668 = vst.msk [vmem:[%s14269_s11] sm:$0xff] %vm1667_vm7, %v1665_v11  ;;  %v12778_v62 = vpop.f32.mrf.mxu0 }
 0x1ed   : > { %6599 = vst.msk [vmem:[%s14269_s11 + $0x8] sm:$0xff] %vm963_vm6, %v6598_v5  ;;  %v12783_v32 = vpop.f32.mrf.mxu1  ;;  %v6600_v51 = vsel %vm963_vm6, %v6598_v5, 0.0  ;;  %v6604_v20 = vmul.f32 %v6598_v5, %v6598_v5 }
 0x1ee   : > { %v6753_v37 = vpop.f32.mrf.mxu0 }
 0x1ef   : > { %v6827_v60 = vpop.f32.mrf.mxu1  ;;  %v6754_v10 = vadd.f32 %v6753_v37, %v6680_v27  ;;  %v6605_v54 = vsel %vm963_vm6, %v6604_v20, 0.0 }
 0x1f0   : > { %v12788_v2 = vpop.f32.mrf.mxu0 }
 0x1f1   : > { %v12793_v42 = vpop.f32.mrf.mxu1  ;;  %v6831_v14 = vadd.f32 %v6827_v60, %v6754_v10 }
 0x1f2   : > { %v6902_v40 = vpop.f32.mrf.mxu0 }
 0x1f3   : > { %v6977_v44 = vpop.f32.mrf.mxu1  ;;  %v6906_v59 = vadd.f32 %v6902_v40, %v6831_v14 }
 0x1f4   : > { %v12798_v45 = vpop.f32.mrf.mxu0 }
 0x1f5   : > { %v12803_v46 = vpop.f32.mrf.mxu1  ;;  %v6981_v30 = vadd.f32 %v6977_v44, %v6906_v59 }
 0x1f6   : > { %v7052_v49 = vpop.f32.mrf.mxu0 }
 0x1f7   : > { %v7135_v48 = vpop.f32.mrf.mxu1  ;;  %v7056_v11 = vadd.f32 %v7052_v49, %v6981_v30 }
 0x1f8   : > { %v12808_v22 = vpop.f32.mrf.mxu0 }
 0x1f9   : > { %v12813_v29 = vpop.f32.mrf.mxu1  ;;  %v7139_v35 = vadd.f32 %v7135_v48, %v7056_v11  ;;  %v5201_v11 = vmul.f32 %v14599_v18, %v14599_v18 }
 0x1fa   : > { %v7214_v55 = vpop.f32.mrf.mxu0 }
 0x1fb   : > { %v1676_v47 = vpop.xlane.xlu1 %1675  ;;  %v7293_v52 = vpop.f32.mrf.mxu1  ;;  %v7218_v39 = vadd.f32 %v7214_v55, %v7139_v35 }
 0x1fc   : > { %v1677_v4 = vadd.f32 %v1676_v47, %v972_v31  ;;  %v12818_v9 = vpop.f32.mrf.mxu0 }
 0x1fd   : > { %3085 = vadd.xlane.f32.xlu0 %v3084_v7  ;;  %v12823_v41 = vpop.f32.mrf.mxu1  ;;  %v14646_v31 = vadd.f32 %v7293_v52, %v7218_v39  ;;  %v5202_v39 = vsel %vm963_vm6, %v5201_v11, 0.0 }
 0x1ff   : > { %v7383_v36 = vpop.f32.mrf.mxu0  ;;  %v7456_v12 = vpop.f32.mrf.mxu1 }
 0x200   : > { %v7457_v47 = vadd.f32 %v7456_v12, %v7383_v36 }
 0x201   : > { %3790 = vadd.xlane.f32.xlu0 %v3789_v63  ;;  %v12828_v43 = vpop.f32.mrf.mxu0  ;;  %v12833_v13 = vpop.f32.mrf.mxu1 }
 0x202   : > { %5198 = vadd.xlane.f32.xlu1 %v5197_v28 }
 0x203   : > { %v7530_v8 = vpop.f32.mrf.mxu0  ;;  %v7605_v15 = vpop.f32.mrf.mxu1 }
 0x204   : > { %v7534_v38 = vadd.f32 %v7530_v8, %v7457_v47 }
 0x205   : > { %v12838_v17 = vpop.f32.mrf.mxu0  ;;  %v12843_v19 = vpop.f32.mrf.mxu1 }
 0x206   : > { %5902 = vadd.xlane.f32.xlu1 %v5901_v3  ;;  %v7609_v10 = vadd.f32 %v7605_v15, %v7534_v38 }
 0x207   : > { %v7680_v21 = vpop.f32.mrf.mxu0  ;;  %v14625_v57 = vpop.f32.mrf.mxu1 }
 0x208   : > { %v7684_v36 = vadd.f32 %v7680_v21, %v7609_v10 }
 0x209   : > { %v12848_v16 = vpop.f32.mrf.mxu0  ;;  %v12853_v23 = vpop.f32.mrf.mxu1 }
 0x20a   : > { %6601 = vadd.xlane.f32.xlu1 %v6600_v51  ;;  %v7759_v8 = vadd.f32 %v14625_v57, %v7684_v36  ;;  %v4493_v23 = vmul.f32 %v14591_v33, %v14591_v33 }
 0x20b   : > { %v14628_v58 = vpop.f32.mrf.mxu0  ;;  %v14630_v1 = vpop.f32.mrf.mxu1 }
 0x20c   : > { %v4494_v21 = vsel %vm963_vm6, %v4493_v23, 0.0 }
 0x20d   : > { %v2381_v56 = vpop.xlane.xlu1 %2380  ;;  %v12858_v24 = vpop.f32.mrf.mxu0 }
 0x20e   : > { %v14632_v25 = vadd.f32 %v2381_v56, %v1677_v4  ;;  %6606 = vadd.xlane.f32.xlu1 %v6605_v54  ;;  %v12863_v26 = vpop.f32.mrf.mxu1  ;;  %v7843_v24 = vadd.f32 %v14628_v58, %v7759_v8 }
 0x20f   : > { %v14634_v5 = vpop.f32.mrf.mxu0 }
 0x210   : > { %v14636_v62 = vpop.f32.mrf.mxu1 }
 0x211   : > { %v12868_v27 = vpop.f32.mrf.mxu0 }
 0x212   : > { %v12873_v32 = vpop.f32.mrf.mxu1 }
 0x213   : > { %v8160_v37 = vpop.f32.mrf.mxu0 }
 0x214   : > { %v14638_v60 = vpop.f32.mrf.mxu1 }
 0x215   : > { %v12878_v2 = vpop.f32.mrf.mxu0 }
 0x216   : > { %v12883_v42 = vpop.f32.mrf.mxu1  ;;  %v7922_v2 = vadd.f32 %v14630_v1, %v7843_v24 }
 0x217   : > { %4484 = vrot.lane.b32.xlu0 %v14591_v33, %s13163_s6  ;;  %v14642_v40 = vpop.f32.mrf.mxu0  ;;  %v8161_v33 = vadd.f32 %v8160_v37, %v14636_v62  ;;  %v7303_v37 = vsel %vm963_vm6, %v14646_v31, 0.0 }
 0x218   : > { %v14644_v44 = vpop.f32.mrf.mxu1  ;;  %v14676_v18 = vadd.f32 %v14634_v5, %v7922_v2 }
 0x219   : > { %v12888_v45 = vpop.f32.mrf.mxu0 }
 0x21a   : > { %v12893_v46 = vpop.f32.mrf.mxu1  ;;  %v8011_v38 = vmul.f32 %v14676_v18, %v14676_v18 }
 0x21b   : > { %v14648_v49 = vpop.f32.mrf.mxu0 }
 0x21c   : > { %v1671_v34 = vpop.xlane.xlu0 %1670  ;;  %v14653_v48 = vpop.f32.mrf.mxu1  ;;  %v8012_v10 = vsel %vm963_vm6, %v8011_v38, 0.0 }
 0x21d   : > { %v14651_v53 = vadd.f32 %v1671_v34, %v14605_v50  ;;  %v12898_v22 = vpop.f32.mrf.mxu0 }
 0x21e   : > { %v12903_v29 = vpop.f32.mrf.mxu1  ;;  %v8238_v22 = vadd.f32 %v14638_v60, %v8161_v33 }
 0x21f   : > { %7299 = vrot.lane.b32.xlu1 %v14646_v31, %s13158_s16  ;;  %v14661_v4 = vpop.f32.mrf.mxu0  ;;  %s14749_s16 = scalar_lea.vmem %s14783_s3, %s11666_s8 }
 0x220   : > { %v2370_v61 = vpop.permute.xlu0 %2369  ;;  %v14659_v55 = vpop.f32.mrf.mxu1  ;;  %211 = vst.msk [vmem:[%s14749_s16] sm:$0xff] %vm210_vm14, %v13154_v0 }
 0x221   : > { %2373 = vst.msk [vmem:[%s14269_s11] sm:$0xff] %vm2372_vm8, %v2370_v61  ;;  %v12908_v50 = vpop.f32.mrf.mxu0 }
 0x222   : > { %v12913_v7 = vpop.f32.mrf.mxu1  ;;  %v8313_v50 = vadd.f32 %v14642_v40, %v8238_v22 }
 0x224   : > { %v8864_v52 = vpop.f32.mrf.mxu1 }
 0x225   : > { %v8791_v9 = vpop.f32.mrf.mxu0 }
 0x226   : > { %v8865_v41 = vadd.f32 %v8864_v52, %v8791_v9  ;;  %v12923_v28 = vpop.f32.mrf.mxu1 }
 0x227   : > { %v12918_v63 = vpop.f32.mrf.mxu0 }
 0x228   : > { %v9013_v43 = vpop.f32.mrf.mxu1  ;;  %v8388_v63 = vadd.f32 %v14644_v44, %v8313_v50 }
 0x229   : > { %v8938_v13 = vpop.f32.mrf.mxu0 }
 0x22a   : > { %v8942_v3 = vadd.f32 %v8938_v13, %v8865_v41  ;;  %v12933_v14 = vpop.f32.mrf.mxu1  ;;  %v3081_v13 = vpop.xlane.xlu1 %3080 }
 0x22b   : > { %v12928_v12 = vpop.f32.mrf.mxu0 }
 0x22c   : > { %v9017_v17 = vadd.f32 %v9013_v43, %v8942_v3  ;;  %v9163_v19 = vpop.f32.mrf.mxu1  ;;  %v8463_v12 = vadd.f32 %v14648_v49, %v8388_v63 }
 0x22d   : > { %v9088_v51 = vpop.f32.mrf.mxu0 }
 0x22e   : > { %v9092_v20 = vadd.f32 %v9088_v51, %v9017_v17  ;;  %v12943_v59 = vpop.f32.mrf.mxu1  ;;  %v3780_v8 = vpop.permute.xlu1 %3779 }
 0x22f   : > { %v12938_v16 = vpop.f32.mrf.mxu0 }
 0x230   : > { %v9167_v54 = vadd.f32 %v9163_v19, %v9092_v20  ;;  %v9326_v15 = vpop.f32.mrf.mxu1  ;;  %v8547_v16 = vadd.f32 %v14653_v48, %v8463_v12 }
 0x231   : > { %v9247_v30 = vpop.f32.mrf.mxu0 }
 0x232   : > { %v12953_v56 = vpop.f32.mrf.mxu1  ;;  %v9251_v26 = vadd.f32 %v9247_v30, %v9167_v54  ;;  %v8626_v49 = vadd.f32 %v14661_v4, %v8547_v16 }
 0x233   : > { %v12948_v27 = vpop.f32.mrf.mxu0 }
 0x234   : > { %v9495_v32 = vpop.f32.mrf.mxu1  ;;  %v9330_v57 = vadd.f32 %v9326_v15, %v9251_v26 }
 0x236   : > { %4495 = vadd.xlane.f32.xlu0 %v4494_v21  ;;  %v12963_v35 = vpop.f32.mrf.mxu1 }
 0x237   : > { %v9405_v42 = vpop.f32.mrf.mxu0 }
 0x238   : > { %v14673_v45 = vadd.f32 %v9405_v42, %v9330_v57  ;;  %v9642_v58 = vpop.f32.mrf.mxu1  ;;  %v14695_v57 = vadd.f32 %v14659_v55, %v8626_v49 }
 0x239   : > { %v12958_v46 = vpop.f32.mrf.mxu0 }
 0x23a   : > { %5203 = vadd.xlane.f32.xlu0 %v5202_v39  ;;  %v12973_v34 = vpop.f32.mrf.mxu1 }
 0x23b   : > { %v9568_v29 = vpop.f32.mrf.mxu0 }
 0x23c   : > { %v9569_v61 = vadd.f32 %v9568_v29, %v9495_v32  ;;  %v9792_v47 = vpop.f32.mrf.mxu1 }
 0x23d   : > { %v12968_v1 = vpop.f32.mrf.mxu0 }
 0x23e   : > { %v9646_v7 = vadd.f32 %v9642_v58, %v9569_v61  ;;  %v12983_v62 = vpop.f32.mrf.mxu1 }
 0x23f   : > { %v9717_v52 = vpop.f32.mrf.mxu0 }
 0x240   : > { %v9721_v9 = vadd.f32 %v9717_v52, %v9646_v7  ;;  %v9951_v5 = vpop.f32.mrf.mxu1 }
 0x241   : > { %v12978_v41 = vpop.f32.mrf.mxu0 }
 0x242   : > { %v9796_v60 = vadd.f32 %v9792_v47, %v9721_v9  ;;  %v12993_v28 = vpop.f32.mrf.mxu1 }
 0x243   : > { %7304 = vadd.xlane.f32.xlu1 %v7303_v37  ;;  %v9867_v3 = vpop.f32.mrf.mxu0 }
 0x244   : > { %v10109_v43 = vpop.f32.mrf.mxu1  ;;  %v9871_v14 = vadd.f32 %v9867_v3, %v9796_v60  ;;  %v5905_v60 = vmul.f32 %v14617_v6, %v14617_v6  ;;  %v7307_v3 = vmul.f32 %v14646_v31, %v14646_v31 }
 0x245   : > { %v12988_v40 = vpop.f32.mrf.mxu0 }
 0x246   : > { %v13003_v36 = vpop.f32.mrf.mxu1  ;;  %v9955_v17 = vadd.f32 %v9951_v5, %v9871_v14  ;;  %v7308_v40 = vsel %vm963_vm6, %v7307_v3, 0.0 }
 0x247   : > { %8013 = vadd.xlane.f32.xlu1 %v8012_v10 }
 0x248   : > { %v10272_v19 = vpop.f32.mrf.mxu1 }
 0x249   : > { %v10030_v51 = vpop.f32.mrf.mxu0 }
 0x24a   : > { %v10034_v20 = vadd.f32 %v10030_v51, %v9955_v17  ;;  %v13013_v59 = vpop.f32.mrf.mxu1 }
 0x24b   : > { %v12998_v23 = vpop.f32.mrf.mxu0 }
 0x24c   : > { %v14688_v54 = vadd.f32 %v10109_v43, %v10034_v20  ;;  %v10421_v44 = vpop.f32.mrf.mxu1 }
 0x24d   : > { %v10199_v15 = vpop.f32.mrf.mxu0 }
 0x24e   : > { %v13023_v30 = vpop.f32.mrf.mxu1  ;;  %v10273_v36 = vadd.f32 %v10272_v19, %v10199_v15 }
 0x24f   : > { %v13008_v56 = vpop.f32.mrf.mxu0 }
 0x250   : > { %5896 = vrot.lane.b32.xlu0 %v14617_v6, %s13164_s7  ;;  %v10571_v26 = vpop.f32.mrf.mxu1  ;;  %v8711_v6 = vsel %vm963_vm6, %v14695_v57, 0.0 }
 0x251   : > { %v2376_v24 = vpop.xlane.xlu0 %2375  ;;  %v10346_v11 = vpop.f32.mrf.mxu0 }
 0x252   : > { %v2377_v21 = vadd.f32 %v2376_v24, %v14651_v53  ;;  %v3786_v48 = vpop.xlane.xlu1 %3785  ;;  %v13033_v27 = vpop.f32.mrf.mxu1  ;;  %v10350_v17 = vadd.f32 %v10346_v11, %v10273_v36 }
 0x253   : > { %v13018_v35 = vpop.f32.mrf.mxu0 }
 0x254   : > { %v3082_v32 = vadd.f32 %v3081_v13, %v2377_v21  ;;  %v10737_v33 = vpop.f32.mrf.mxu1  ;;  %v5906_v13 = vsel %vm963_vm6, %v5905_v60, 0.0  ;;  %v10425_v20 = vadd.f32 %v10421_v44, %v10350_v17 }
 0x255   : > { %v3075_v2 = vpop.permute.xlu0 %3074 }
 0x256   : > { %v3787_v4 = vadd.f32 %v3786_v48, %v3082_v32  ;;  %3078 = vst.msk [vmem:[%s14269_s11] sm:$0xff] %vm3077_vm9, %v3075_v2  ;;  %v4491_v42 = vpop.xlane.xlu1 %4490  ;;  %v10496_v39 = vpop.f32.mrf.mxu0 }
 0x257   : > { %3783 = vst.msk [vmem:[%s14269_s11] sm:$0xff] %vm3782_vm10, %v3780_v8  ;;  %v13043_v53 = vpop.f32.mrf.mxu1  ;;  %v10500_v8 = vadd.f32 %v10496_v39, %v10425_v20 }
 0x258   : > { %v4492_v58 = vadd.f32 %v4491_v42, %v3787_v4  ;;  %8707 = vrot.lane.b32.xlu1 %v14695_v57, %s13161_s4  ;;  %v13028_v46 = vpop.f32.mrf.mxu0 }
 0x259   : > { %v10906_v34 = vpop.f32.mrf.mxu1  ;;  %v10575_v23 = vadd.f32 %v10571_v26, %v10500_v8  ;;  %v8715_v46 = vmul.f32 %v14695_v57, %v14695_v57  ;;  %v10123_v57 = vmul.f32 %v14688_v54, %v14688_v54 }
 0x25a   : > { %v10658_v55 = vpop.f32.mrf.mxu0  ;;  %v5193_v31 = vpop.permute.xlu1 %5192 }
 0x25b   : > { %v13053_v22 = vpop.f32.mrf.mxu1  ;;  %v10662_v49 = vadd.f32 %v10658_v55, %v10575_v23  ;;  %v9415_v55 = vsel %vm963_vm6, %v14673_v45, 0.0 }
 0x25c   : > { %v13038_v29 = vpop.f32.mrf.mxu0  ;;  %v9419_v22 = vmul.f32 %v14673_v45, %v14673_v45 }
 0x25d   : > { %v11053_v61 = vpop.f32.mrf.mxu1  ;;  %v10741_v24 = vadd.f32 %v10737_v33, %v10662_v49 }
 0x25e   : > { %v10816_v47 = vpop.f32.mrf.mxu0  ;;  %v9420_v29 = vsel %vm963_vm6, %v9419_v22, 0.0 }
 0x25f   : > { %v13063_v1 = vpop.f32.mrf.mxu1  ;;  %v10820_v26 = vadd.f32 %v10816_v47, %v10741_v24 }
 0x260   : > { %v13048_v7 = vpop.f32.mrf.mxu0 }
 0x261   : > { %v11203_v62 = vpop.f32.mrf.mxu1  ;;  %v10826_v1 = vsel %vm963_vm6, %v10820_v26, 0.0  ;;  %v10830_v7 = vmul.f32 %v10820_v26, %v10820_v26 }
 0x262   : > { %v10979_v37 = vpop.f32.mrf.mxu0 }
 0x263   : > { %v13073_v38 = vpop.f32.mrf.mxu1  ;;  %v10980_v51 = vadd.f32 %v10979_v37, %v10906_v34  ;;  %v8716_v34 = vsel %vm963_vm6, %v8715_v46, 0.0  ;;  %v10831_v37 = vsel %vm963_vm6, %v10830_v7, 0.0 }
 0x264   : > { %v13058_v50 = vpop.f32.mrf.mxu0 }
 0x265   : > { %v11361_v52 = vpop.f32.mrf.mxu1  ;;  %v11057_v59 = vadd.f32 %v11053_v61, %v10980_v51  ;;  %v10124_v61 = vsel %vm963_vm6, %v10123_v57, 0.0 }
 0x266   : > { %v11128_v9 = vpop.f32.mrf.mxu0 }
 0x267   : > { %v13083_v5 = vpop.f32.mrf.mxu1  ;;  %v11132_v16 = vadd.f32 %v11128_v9, %v11057_v59 }
 0x268   : > { %v13068_v41 = vpop.f32.mrf.mxu0 }
 0x269   : > { %v11519_v10 = vpop.f32.mrf.mxu1  ;;  %v11207_v30 = vadd.f32 %v11203_v62, %v11132_v16 }
 0x26a   : > { %v11278_v28 = vpop.f32.mrf.mxu0 }
 0x26b   : > { %v13093_v43 = vpop.f32.mrf.mxu1  ;;  %v11282_v56 = vadd.f32 %v11278_v28, %v11207_v30 }
 0x26c   : > { %v13078_v63 = vpop.f32.mrf.mxu0 }
 0x26d   : > { %v11365_v21 = vadd.f32 %v11361_v52, %v11282_v56 }
 0x26e   : > { %v11440_v14 = vpop.f32.mrf.mxu0 }
 0x26f   : > { %5907 = vadd.xlane.f32.xlu0 %v5906_v13  ;;  %v11444_v32 = vadd.f32 %v11440_v14, %v11365_v21 }
 0x270   : > { %v13088_v12 = vpop.f32.mrf.mxu0 }
 0x271   : > { %v11523_v33 = vadd.f32 %v11519_v10, %v11444_v32 }
 0x273   : > { %7309 = vadd.xlane.f32.xlu0 %v7308_v40  ;;  %v11529_v52 = vsel %vm963_vm6, %v11523_v33, 0.0  ;;  %v11533_v9 = vmul.f32 %v11523_v33, %v11523_v33 }
 0x275   : > { %v11534_v5 = vsel %vm963_vm6, %v11533_v9, 0.0 }
 0x27c   : > { %8712 = vadd.xlane.f32.xlu1 %v8711_v6 }
 0x286   : > { %v3086_v19 = vpop.xlane.xlu0 %3085 }
 0x287   : > { %v3087_v15 = vadd.f32 %v3086_v19, %v14632_v25 }
 0x289   : > { %8003 = vrot.lane.b32.xlu0 %v14676_v18, %s13160_s28 }
 0x28a   : > { %v3791_v44 = vpop.xlane.xlu0 %3790 }
 0x28b   : > { %v3792_v48 = vadd.f32 %v3791_v44, %v3087_v15  ;;  %v5199_v11 = vpop.xlane.xlu1 %5198 }
 0x28c   : > { %v5200_v27 = vadd.f32 %v5199_v11, %v4492_v58  ;;  %v8007_v58 = vsel %vm963_vm6, %v14676_v18, 0.0  ;;  %v10119_v18 = vsel %vm963_vm6, %v14688_v54, 0.0 }
 0x28d   : > { %9411 = vrot.lane.b32.xlu1 %v14673_v45, %s13159_s23 }
 0x28e   : > { %v4485_v35 = vpop.permute.xlu0 %4484 }
 0x28f   : > { %4488 = vst.msk [vmem:[%s14269_s11] sm:$0xff] %vm4487_vm11, %v4485_v35  ;;  %v5903_v25 = vpop.xlane.xlu1 %5902 }
 0x290   : > { %v5904_v2 = vadd.f32 %v5903_v25, %v5200_v27  ;;  %5196 = vst.msk [vmem:[%s14269_s11] sm:$0xff] %vm5195_vm12, %v5193_v31  ;;  %v11538_v27 = vld [vmem:[%s14749_s16] sm:$0xff] }
 0x291   : > { %10822 = vrot.lane.b32.xlu1 %v10820_v26, %s13162_s5 }
 0x293   : > { %v6602_v4 = vpop.xlane.xlu1 %6601 }
 0x294   : > { %v6603_v42 = vadd.f32 %v6602_v4, %v5904_v2 }
 0x295   : > { %11525 = vrot.lane.b32.xlu1 %v11523_v33, %s13164_s7 }
 0x297   : > { %v6607_v39 = vpop.xlane.xlu1 %6606 }
 0x29b   : > { %v7300_v53 = vpop.permute.xlu1 %7299 }
 0x29c   : > { %7302 = vst.msk [vmem:[%s14269_s11 + $0x8] sm:$0xff] %vm1667_vm7, %v7300_v53 }
 0x2a8   : > { %8008 = vadd.xlane.f32.xlu0 %v8007_v58 }
 0x2ac   : > { %8717 = vadd.xlane.f32.xlu0 %v8716_v34 }
 0x2b0   : > { %9416 = vadd.xlane.f32.xlu0 %v9415_v55 }
 0x2b4   : > { %9421 = vadd.xlane.f32.xlu0 %v9420_v29 }
 0x2b8   : > { %10120 = vadd.xlane.f32.xlu0 %v10119_v18 }
 0x2bc   : > { %10125 = vadd.xlane.f32.xlu0 %v10124_v61 }
 0x2bf   : > { %v4496_v47 = vpop.xlane.xlu0 %4495 }
 0x2c0   : > { %v4497_v45 = vadd.f32 %v4496_v47, %v3792_v48  ;;  %10827 = vadd.xlane.f32.xlu0 %v10826_v1 }
 0x2c3   : > { %v5204_v62 = vpop.xlane.xlu0 %5203 }
 0x2c4   : > { %v5205_v38 = vadd.f32 %v5204_v62, %v4497_v45  ;;  %10832 = vadd.xlane.f32.xlu0 %v10831_v37 }
 0x2c7   : > { %v5897_v50 = vpop.permute.xlu0 %5896 }
 0x2c8   : > { %5900 = vst.msk [vmem:[%s14269_s11] sm:$0xff] %vm5899_vm13, %v5897_v50  ;;  %11530 = vadd.xlane.f32.xlu0 %v11529_v52 }
 0x2cc   : > { %v7305_v41 = vpop.xlane.xlu1 %7304  ;;  %11535 = vadd.xlane.f32.xlu0 %v11534_v5 }
 0x2cd   : > { %v7306_v60 = vadd.f32 %v7305_v41, %v6603_v42 }
 0x2d0   : > { %v8014_v63 = vpop.xlane.xlu1 %8013 }
 0x2d4   : > { %v8708_v12 = vpop.permute.xlu1 %8707 }
 0x2e2   : > { %10115 = vrot.lane.b32.xlu0 %v14688_v54, %s13163_s6 }
 0x2f8   : > { %v5908_v28 = vpop.xlane.xlu0 %5907 }
 0x2f9   : > { %v5909_v10 = vadd.f32 %v5908_v28, %v5205_v38 }
 0x2fb   : > { %v6608_v43 = vadd.f32 %v6607_v39, %v5909_v10 }
 0x2fc   : > { %v7310_v13 = vpop.xlane.xlu0 %7309 }
 0x2fd   : > { %v7311_v3 = vadd.f32 %v7310_v13, %v6608_v43 }
 0x2ff   : > { %v8015_v14 = vadd.f32 %v8014_v63, %v7311_v3 }
 0x300   : > { %v8004_v36 = vpop.permute.xlu0 %8003 }
 0x301   : > { %8006 = vst.msk [vmem:[%s14269_s11 + $0x8] sm:$0xff] %vm2372_vm8, %v8004_v36 }
 0x302   : > { %8710 = vst.msk [vmem:[%s14269_s11 + $0x8] sm:$0xff] %vm3077_vm9, %v8708_v12 }
 0x305   : > { %v8713_v40 = vpop.xlane.xlu1 %8712 }
 0x309   : > { %v9412_v17 = vpop.permute.xlu1 %9411 }
 0x30a   : > { %9414 = vst.msk [vmem:[%s14269_s11 + $0x8] sm:$0xff] %vm3782_vm10, %v9412_v17 }
 0x30d   : > { %v10823_v32 = vpop.permute.xlu1 %10822 }
 0x311   : > { %v11526_v33 = vpop.permute.xlu1 %11525 }
 0x331   : > { %v8009_v0 = vpop.xlane.xlu0 %8008 }
 0x332   : > { %v8010_v51 = vadd.f32 %v8009_v0, %v7306_v60 }
 0x334   : > { %v8714_v54 = vadd.f32 %v8713_v40, %v8010_v51 }
 0x335   : > { %v8718_v6 = vpop.xlane.xlu0 %8717 }
 0x336   : > { %v8719_v31 = vadd.f32 %v8718_v6, %v8015_v14 }
 0x339   : > { %v9417_v20 = vpop.xlane.xlu0 %9416 }
 0x33a   : > { %v9418_v49 = vadd.f32 %v9417_v20, %v8714_v54 }
 0x33d   : > { %v9422_v59 = vpop.xlane.xlu0 %9421 }
 0x33e   : > { %v9423_v56 = vadd.f32 %v9422_v59, %v8719_v31 }
 0x341   : > { %v10121_v8 = vpop.xlane.xlu0 %10120 }
 0x342   : > { %v10122_v15 = vadd.f32 %v10121_v8, %v9418_v49 }
 0x345   : > { %v10126_v16 = vpop.xlane.xlu0 %10125 }
 0x346   : > { %v10127_v24 = vadd.f32 %v10126_v16, %v9423_v56 }
 0x349   : > { %v10828_v23 = vpop.xlane.xlu0 %10827 }
 0x34a   : > { %v10829_v21 = vadd.f32 %v10828_v23, %v10122_v15 }
 0x34d   : > { %v10833_v30 = vpop.xlane.xlu0 %10832 }
 0x34e   : > { %v10834_v44 = vadd.f32 %v10833_v30, %v10127_v24 }
 0x351   : > { %v11531_v19 = vpop.xlane.xlu0 %11530 }
 0x352   : > { %v11532_v11 = vadd.f32 %v11531_v19, %v10829_v21 }
 0x355   : > { %v11536_v48 = vpop.xlane.xlu0 %11535 }
 0x356   : > { %v11537_v26 = vadd.f32 %v11536_v48, %v10834_v44 }
 0x358   : > { %v11540_v35 = vsel %vm11539_vm15, %v11532_v11, %v11537_v26 }
 0x359   : > { %v11541_v25 = vadd.f32 %v11540_v35, %v11538_v27  ;;  %v10116_v2 = vpop.permute.xlu0 %10115 }
 0x35a   : > { %10118 = vst.msk [vmem:[%s14269_s11 + $0x8] sm:$0xff] %vm4487_vm11, %v10116_v2 }
 0x35b   : > { %11543 = vst.msk [vmem:[%s14749_s16] sm:$0xff] %vm210_vm14, %v11541_v25 }
 0x35c   : > { %10825 = vst.msk [vmem:[%s14269_s11 + $0x8] sm:$0xff] %vm5195_vm12, %v10823_v32 }
 0x35d   : > { %11528 = vst.msk [vmem:[%s14269_s11 + $0x8] sm:$0xff] %vm5899_vm13, %v11526_v33 }
 0x35e PF: > { %s14_s14 = sadd.s32 1, %s13152_s14   ;;  %s14784_s12 = smov %s13148_s13 }
 0x35f   : > { %p11_p5 = scmp.ge.s32.totalorder %s14_s14, 4   ;;  %s14785_s13 = smov %s14787_s15 }
 0x361   :  { %13 = sbr.rel (!%p11_p5) target bundleno = 2 (0x2), region = 83 }

</bundles_post_ra>
